<compile_context>
chip_gen: v5e
topology: v5e:2x2
jax: 0.10.0
libtpu: 0.0.40
codegen_flags: <defaults>
</compile_context>

<pallas_src>
import math
import numpy as np

import jax
import jax.numpy as jnp
from jax.experimental import pallas as pl
from jax.experimental.pallas import tpu as pltpu


# ----------------------------------------------------------------------------
# Parameter setup (plain numpy / JAX glue): scales + Hermite basis
# ----------------------------------------------------------------------------
def calculate_scales(learn_mode, scales_param, num_scales, basis_min_scale):
    # TODO(synk): exact `calculate_scales` source is not provided; implement a
    # deterministic 'ratio' mode: scales[i] = basis_min_scale * exp(param)**i.
    assert learn_mode == "ratio"
    ratio = float(np.exp(np.asarray(scales_param, dtype=np.float64)))
    return np.array(
        [basis_min_scale * (ratio ** i) for i in range(num_scales)],
        dtype=np.float32,
    )


def _hermite_poly(X, n):
    coeff = np.zeros(n + 1, dtype=np.float64)
    coeff[n] = 1.0
    return np.polynomial.hermite_e.hermeval(X, coeff)


def _onescale_grid_hermite_gaussian(size, scale, max_order):
    X = np.linspace(-(size // 2), size // 2, size)
    order_y, order_x = np.indices([max_order + 1, max_order + 1])
    G = np.exp(-(X ** 2) / (2.0 * scale ** 2)) / scale
    basis_x = np.stack([G * _hermite_poly(X / scale, n) for n in order_x.ravel()])
    basis_y = np.stack([G * _hermite_poly(X / scale, n) for n in order_y.ravel()])
    # [num_funcs, size, size]
    return basis_x[:, :, None] * basis_y[:, None, :]


def hermite_basis_a(size, scales, effective_size):
    # TODO(synk): exact `HermiteBasisA_ref` source unavailable; this follows the
    # SESN `steerable_A` construction (per-scale crop + zero pad to full size).
    max_order = effective_size - 1
    max_scale = float(np.max(scales))
    per_scale = []
    for scale in scales:
        size_before_pad = int(size * float(scale) / max_scale) // 2 * 2 + 1
        size_before_pad = max(size_before_pad, 1)
        b = _onescale_grid_hermite_gaussian(size_before_pad, float(scale), max_order)
        pad = (size - size_before_pad) // 2
        b = np.pad(b, ((0, 0), (pad, pad), (pad, pad)))
        per_scale.append(b)
    # [num_funcs, num_scales, size, size]
    return jnp.asarray(np.stack(per_scale, axis=1), dtype=jnp.float32)


# ----------------------------------------------------------------------------
# Pallas conv kernel (tap-fused im2col matmul, lane-dense output)
# ----------------------------------------------------------------------------
def _round_up(x, m):
    return (x + m - 1) // m * m


def _choose_row_tile(H, Wpad, max_lanes=2048):
    """Pick the largest row-band height TH such that TH divides H,
    TH*Wpad % 128 == 0 (lane-dense output tiles), TH*Wpad <= max_lanes and
    there are >= 2 bands.  Falls back to TH = H (full-dim block is always legal)."""
    th_unit = max(1, 128 // math.gcd(Wpad, 128))
    best = None
    th = th_unit
    while th < H:
        if H % th == 0 and th * Wpad <= max_lanes:
            best = th
        th += th_unit
    return best if best is not None else H


def _make_conv_kernel(k, Wpad, N, Cin):
    def conv_kernel(xb_ref, w_ref, o_ref, rhs_ref):
        # xb_ref : (1, 1, Cin, band_in)  bf16  flattened padded row band (+ halo)
        # w_ref  : (OC, k*k*Cin)         bf16  tap-fused weight matrix
        # o_ref  : (1, OC, N)            f32   lane-dense output tile
        # rhs_ref: (k*k*Cin, N)          bf16  VMEM scratch: im2col RHS
        #
        # Build the im2col RHS once per tile: every tap is a STATIC lane-offset
        # slice of the flattened band (no per-tap reshape/relayout).
        for ky in range(k):
            for kx in range(k):
                off = ky * Wpad + kx
                row = (ky * k + kx) * Cin
                rhs_ref[row:row + Cin, :] = xb_ref[0, 0, :, off:off + N]
        # One tap-fused MXU matmul: [OC, K] @ [K, N] with K = k*k*Cin.
        o_ref[0, :, :] = jnp.dot(w_ref[:, :], rhs_ref[:, :],
                                 preferred_element_type=jnp.float32)

    return conv_kernel


def conv2d_pallas(x_nchw, kern_oihw, *, compute_dtype=jnp.bfloat16):
    """'Same' convolution (stride 1, odd kernel, zero padding).
    NCHW input [B, Cin, H, W], OIHW kernel [OC, Cin, k, k] -> f32 NCHW output."""
    B, Cin, H, W = x_nchw.shape
    OC, Cin2, k, k2 = kern_oihw.shape
    assert Cin2 == Cin and k2 == k and k % 2 == 1
    pad = k // 2
    itemsize = jnp.dtype(compute_dtype).itemsize

    # Pad width up to a multiple of 32 so flattened row-band lengths can be
    # multiples of 128 lanes (lane-dense stores). The extra columns are junk
    # in the output and are cropped at the end.
    Wpad = _round_up(W + 2 * pad, 32)
    Hp = H + 2 * pad
    K = k * k * Cin

    # Row-band height: keep the im2col scratch under ~8 MiB of VMEM.
    rhs_budget = 8 * 1024 * 1024
    max_lanes = max(128, rhs_budget // (K * itemsize))
    TH = _choose_row_tile(H, Wpad, max_lanes=max_lanes)
    nb = H // TH
    N = TH * Wpad                               # flattened band length (lanes)
    halo = (k - 1) * Wpad + (k - 1)
    band_in = _round_up(N + halo, 128)
    L_req = (nb - 1) * N + band_in

    # Zero-pad spatially, flatten rows (row stride = Wpad), pad tail, cast.
    xp = jnp.pad(x_nchw, ((0, 0), (0, 0), (pad, pad), (pad, Wpad - W - pad)))
    x_flat = xp.reshape(B, Cin, Hp * Wpad)
    if L_req > Hp * Wpad:
        x_flat = jnp.pad(x_flat, ((0, 0), (0, 0), (0, L_req - Hp * Wpad)))
    x_flat = x_flat.astype(compute_dtype)

    # Overlapping row bands (core + halo), materialized so that every in-kernel
    # tap offset is a static lane offset.
    # TODO(synk): deliver the halo via an element-offset index_map (pl.Element)
    # instead of materializing overlapping bands, to avoid the extra copy.
    x_bands = jnp.stack(
        [jax.lax.slice_in_dim(x_flat, t * N, t * N + band_in, axis=2)
         for t in range(nb)], axis=1)           # [B, nb, Cin, band_in]

    # Tap-fused 2-D lane-aligned weight operand:
    #   wmat[oc, (ky*k + kx)*Cin + c] = kern[oc, c, ky, kx]
    wmat = jnp.transpose(kern_oihw, (0, 2, 3, 1)).reshape(OC, K).astype(compute_dtype)

    kernel = _make_conv_kernel(k, Wpad, N, Cin)
    out = pl.pallas_call(
        kernel,
        out_shape=jax.ShapeDtypeStruct((B, OC, nb * N), jnp.float32),
        grid_spec=pltpu.PrefetchScalarGridSpec(
            num_scalar_prefetch=0,
            grid=(B, nb),
            in_specs=[
                pl.BlockSpec((1, 1, Cin, band_in), lambda b, t: (b, t, 0, 0)),
                pl.BlockSpec((OC, K), lambda b, t: (0, 0)),
            ],
            out_specs=pl.BlockSpec((1, OC, N), lambda b, t: (b, 0, t)),
            scratch_shapes=[pltpu.VMEM((K, N), compute_dtype)],
        ),
        compiler_params=pltpu.CompilerParams(
            dimension_semantics=("parallel", "parallel"),
            vmem_limit_bytes=32 * 1024 * 1024,
        ),
    )(x_bands, wmat)

    # [B, OC, H*Wpad] is already channel-major; just drop the junk width columns.
    return out.reshape(B, OC, H, Wpad)[:, :, :, :W]


# ----------------------------------------------------------------------------
# Forward pass (mirrors SESConv_Z2_H_Learnable.forward)
# ----------------------------------------------------------------------------
def ses_conv_z2_h_forward(x_nchw, weight, scales_param, *,
                          effective_size, num_scales, basis_min_scale,
                          learn_mode="ratio", init_k=4,
                          largest_kernel_size=None, stride=1, dilation=1,
                          padding_mode="constant", bias=None,
                          use_pallas=True, compute_dtype=jnp.bfloat16):
    assert stride == 1 and dilation == 1, "only defaults implemented"
    assert padding_mode == "constant", "only zero padding implemented"

    O, I, F_ = weight.shape
    scales = calculate_scales(learn_mode, scales_param, num_scales, basis_min_scale)
    S = len(scales)

    if largest_kernel_size is None:
        max_scale = float(np.max(scales))
        if not np.isfinite(max_scale):
            ks = 3
        else:
            ks = int(2 * math.ceil(init_k * max_scale) + 1)
        ks = max(ks, 3)
    else:
        ks = largest_kernel_size

    basis = hermite_basis_a(ks, scales, effective_size)              # [F, S, ks, ks]
    assert basis.shape[0] == F_

    # kernel = basis(weight): [O, I, S, ks, ks]
    kernel = jnp.einsum("oif,fskl->oiskl", weight, basis)
    # permute(0,2,1,3,4).view(O*S, I, ks, ks)  (oc index = o*S + s)
    kern = jnp.transpose(kernel, (0, 2, 1, 3, 4)).reshape(O * S, I, ks, ks)

    pad = ks // 2
    B, _, H, W = x_nchw.shape

    if use_pallas:
        y_flat = conv2d_pallas(x_nchw, kern, compute_dtype=compute_dtype)
    else:
        # Pure-JAX reference path (same bf16 operand rounding, f32 accumulation).
        xp = jnp.pad(x_nchw, ((0, 0), (0, 0), (pad, pad), (pad, pad)))
        y_flat = jax.lax.conv_general_dilated(
            xp.astype(compute_dtype), kern.astype(compute_dtype),
            window_strides=(1, 1), padding="VALID",
            dimension_numbers=("NCHW", "OIHW", "NCHW"),
            preferred_element_type=jnp.float32)

    y = y_flat.reshape(B, O, S, H, W)
    if bias is not None:
        y = y + bias.reshape(1, -1, 1, 1, 1)
    return y


# ----------------------------------------------------------------------------
if __name__ == "__main__":
    key = jax.random.PRNGKey(0)
    k_w, k_x = jax.random.split(key)

    # Small shapes consistent with the module: [B, Cin, H, W] -> [B, Cout, S, H, W]
    B, Cin, H, W = 2, 4, 16, 16
    Cout = 8
    effective_size = 3
    num_scales = 3
    basis_min_scale = 0.5
    num_funcs = effective_size ** 2

    # Deterministic kaiming_uniform(a=sqrt(5)) init: U(-1/sqrt(fan_in), 1/sqrt(fan_in))
    fan_in = Cin * num_funcs
    bound = 1.0 / math.sqrt(fan_in)
    weight = jax.random.uniform(k_w, (Cout, Cin, num_funcs), jnp.float32,
                                minval=-bound, maxval=bound)
    scales_param = jnp.float32(math.log(1.26))   # learnable scale-ratio parameter
    x = jax.random.normal(k_x, (B, Cin, H, W), jnp.float32)

    y = ses_conv_z2_h_forward(
        x, weight, scales_param,
        effective_size=effective_size, num_scales=num_scales,
        basis_min_scale=basis_min_scale, use_pallas=True)
    y = jax.block_until_ready(y)
    assert y.shape == (B, Cout, num_scales, H, W), y.shape

    # Verify against a pure-JAX reference of the same forward (same bf16 rounding).
    y_ref = ses_conv_z2_h_forward(
        x, weight, scales_param,
        effective_size=effective_size, num_scales=num_scales,
        basis_min_scale=basis_min_scale, use_pallas=False)
    y_ref = jax.block_until_ready(y_ref)
    np.testing.assert_allclose(np.asarray(y), np.asarray(y_ref),
                               rtol=1e-2, atol=1e-2)

    print("KERNEL_OK")
</pallas_src>

<mosaic_0001>
module attributes {stable_mosaic.version = 11 : i64} {
  func.func @conv_kernel(%arg0: i32, %arg1: i32, %arg2: memref<1x1x4x640xbf16, #tpu.memory_space<vmem>>, %arg3: memref<24x324xbf16, #tpu.memory_space<vmem>>, %arg4: memref<1x24x256xf32, #tpu.memory_space<vmem>>, %arg5: memref<324x256xbf16, #tpu.memory_space<vmem>>) attributes {dimension_semantics = [#tpu.dimension_semantics<parallel>, #tpu.dimension_semantics<parallel>], iteration_bounds = array<i64: 2, 2>, scalar_prefetch = 0 : i64, scratch_operands = 1 : i64, tpu.core_type = #tpu.core_type<tc>, window_params = [{transform_indices = @transform_0, window_bounds = array<i64: 1, 1, 4, 640>}, {pipeline_mode = #tpu.pipeline_mode<synchronous>, transform_indices = @transform_1, window_bounds = array<i64: 24, 324>}, {transform_indices = @transform_2, window_bounds = array<i64: 1, 24, 256>}]} {
    %c0 = arith.constant 0 : index
    %c0_0 = arith.constant 0 : index
    %c0_1 = arith.constant 0 : index
    %c0_2 = arith.constant 0 : index
    %0 = vector.load %arg2[%c0, %c0_0, %c0_1, %c0_2] : memref<1x1x4x640xbf16, #tpu.memory_space<vmem>>, vector<1x1x4x256xbf16>
    %1 = vector.shape_cast %0 : vector<1x1x4x256xbf16> to vector<4x256xbf16>
    %c0_3 = arith.constant 0 : index
    %c0_4 = arith.constant 0 : index
    %2 = vector.load %arg5[%c0_3, %c0_4] : memref<324x256xbf16, #tpu.memory_space<vmem>>, vector<4x256xbf16>
    tpu.vector_store %arg5[%c0_3, %c0_4], %1 {strides = array<i32>} : memref<324x256xbf16, #tpu.memory_space<vmem>>, vector<4x256xbf16>,
    %c0_5 = arith.constant 0 : index
    %c0_6 = arith.constant 0 : index
    %c0_7 = arith.constant 0 : index
    %c1 = arith.constant 1 : index
    %3 = vector.load %arg2[%c0_5, %c0_6, %c0_7, %c1] : memref<1x1x4x640xbf16, #tpu.memory_space<vmem>>, vector<1x1x4x256xbf16>
    %4 = vector.shape_cast %3 : vector<1x1x4x256xbf16> to vector<4x256xbf16>
    %c4 = arith.constant 4 : index
    %c0_8 = arith.constant 0 : index
    %5 = vector.load %arg5[%c4, %c0_8] : memref<324x256xbf16, #tpu.memory_space<vmem>>, vector<4x256xbf16>
    tpu.vector_store %arg5[%c4, %c0_8], %4 {strides = array<i32>} : memref<324x256xbf16, #tpu.memory_space<vmem>>, vector<4x256xbf16>,
    %c0_9 = arith.constant 0 : index
    %c0_10 = arith.constant 0 : index
    %c0_11 = arith.constant 0 : index
    %c2 = arith.constant 2 : index
    %6 = vector.load %arg2[%c0_9, %c0_10, %c0_11, %c2] : memref<1x1x4x640xbf16, #tpu.memory_space<vmem>>, vector<1x1x4x256xbf16>
    %7 = vector.shape_cast %6 : vector<1x1x4x256xbf16> to vector<4x256xbf16>
    %c8 = arith.constant 8 : index
    %c0_12 = arith.constant 0 : index
    %8 = vector.load %arg5[%c8, %c0_12] : memref<324x256xbf16, #tpu.memory_space<vmem>>, vector<4x256xbf16>
    tpu.vector_store %arg5[%c8, %c0_12], %7 {strides = array<i32>} : memref<324x256xbf16, #tpu.memory_space<vmem>>, vector<4x256xbf16>,
    %c0_13 = arith.constant 0 : index
    %c0_14 = arith.constant 0 : index
    %c0_15 = arith.constant 0 : index
    %c3 = arith.constant 3 : index
    %9 = vector.load %arg2[%c0_13, %c0_14, %c0_15, %c3] : memref<1x1x4x640xbf16, #tpu.memory_space<vmem>>, vector<1x1x4x256xbf16>
    %10 = vector.shape_cast %9 : vector<1x1x4x256xbf16> to vector<4x256xbf16>
    %c12 = arith.constant 12 : index
    %c0_16 = arith.constant 0 : index
    %11 = vector.load %arg5[%c12, %c0_16] : memref<324x256xbf16, #tpu.memory_space<vmem>>, vector<4x256xbf16>
    tpu.vector_store %arg5[%c12, %c0_16], %10 {strides = array<i32>} : memref<324x256xbf16, #tpu.memory_space<vmem>>, vector<4x256xbf16>,
    %c0_17 = arith.constant 0 : index
    %c0_18 = arith.constant 0 : index
    %c0_19 = arith.constant 0 : index
    %c4_20 = arith.constant 4 : index
    %12 = vector.load %arg2[%c0_17, %c0_18, %c0_19, %c4_20] : memref<1x1x4x640xbf16, #tpu.memory_space<vmem>>, vector<1x1x4x256xbf16>
    %13 = vector.shape_cast %12 : vector<1x1x4x256xbf16> to vector<4x256xbf16>
    %c16 = arith.constant 16 : index
    %c0_21 = arith.constant 0 : index
    %14 = vector.load %arg5[%c16, %c0_21] : memref<324x256xbf16, #tpu.memory_space<vmem>>, vector<4x256xbf16>
    tpu.vector_store %arg5[%c16, %c0_21], %13 {strides = array<i32>} : memref<324x256xbf16, #tpu.memory_space<vmem>>, vector<4x256xbf16>,
    %c0_22 = arith.constant 0 : index
    %c0_23 = arith.constant 0 : index
    %c0_24 = arith.constant 0 : index
    %c5 = arith.constant 5 : index
    %15 = vector.load %arg2[%c0_22, %c0_23, %c0_24, %c5] : memref<1x1x4x640xbf16, #tpu.memory_space<vmem>>, vector<1x1x4x256xbf16>
    %16 = vector.shape_cast %15 : vector<1x1x4x256xbf16> to vector<4x256xbf16>
    %c20 = arith.constant 20 : index
    %c0_25 = arith.constant 0 : index
    %17 = vector.load %arg5[%c20, %c0_25] : memref<324x256xbf16, #tpu.memory_space<vmem>>, vector<4x256xbf16>
    tpu.vector_store %arg5[%c20, %c0_25], %16 {strides = array<i32>} : memref<324x256xbf16, #tpu.memory_space<vmem>>, vector<4x256xbf16>,
    %c0_26 = arith.constant 0 : index
    %c0_27 = arith.constant 0 : index
    %c0_28 = arith.constant 0 : index
    %c6 = arith.constant 6 : index
    %18 = vector.load %arg2[%c0_26, %c0_27, %c0_28, %c6] : memref<1x1x4x640xbf16, #tpu.memory_space<vmem>>, vector<1x1x4x256xbf16>
    %19 = vector.shape_cast %18 : vector<1x1x4x256xbf16> to vector<4x256xbf16>
    %c24 = arith.constant 24 : index
    %c0_29 = arith.constant 0 : index
    %20 = vector.load %arg5[%c24, %c0_29] : memref<324x256xbf16, #tpu.memory_space<vmem>>, vector<4x256xbf16>
    tpu.vector_store %arg5[%c24, %c0_29], %19 {strides = array<i32>} : memref<324x256xbf16, #tpu.memory_space<vmem>>, vector<4x256xbf16>,
    %c0_30 = arith.constant 0 : index
    %c0_31 = arith.constant 0 : index
    %c0_32 = arith.constant 0 : index
    %c7 = arith.constant 7 : index
    %21 = vector.load %arg2[%c0_30, %c0_31, %c0_32, %c7] : memref<1x1x4x640xbf16, #tpu.memory_space<vmem>>, vector<1x1x4x256xbf16>
    %22 = vector.shape_cast %21 : vector<1x1x4x256xbf16> to vector<4x256xbf16>
    %c28 = arith.constant 28 : index
    %c0_33 = arith.constant 0 : index
    %23 = vector.load %arg5[%c28, %c0_33] : memref<324x256xbf16, #tpu.memory_space<vmem>>, vector<4x256xbf16>
    tpu.vector_store %arg5[%c28, %c0_33], %22 {strides = array<i32>} : memref<324x256xbf16, #tpu.memory_space<vmem>>, vector<4x256xbf16>,
    %c0_34 = arith.constant 0 : index
    %c0_35 = arith.constant 0 : index
    %c0_36 = arith.constant 0 : index
    %c8_37 = arith.constant 8 : index
    %24 = vector.load %arg2[%c0_34, %c0_35, %c0_36, %c8_37] : memref<1x1x4x640xbf16, #tpu.memory_space<vmem>>, vector<1x1x4x256xbf16>
    %25 = vector.shape_cast %24 : vector<1x1x4x256xbf16> to vector<4x256xbf16>
    %c32 = arith.constant 32 : index
    %c0_38 = arith.constant 0 : index
    %26 = vector.load %arg5[%c32, %c0_38] : memref<324x256xbf16, #tpu.memory_space<vmem>>, vector<4x256xbf16>
    tpu.vector_store %arg5[%c32, %c0_38], %25 {strides = array<i32>} : memref<324x256xbf16, #tpu.memory_space<vmem>>, vector<4x256xbf16>,
    %c0_39 = arith.constant 0 : index
    %c0_40 = arith.constant 0 : index
    %c0_41 = arith.constant 0 : index
    %c32_42 = arith.constant 32 : index
    %27 = vector.load %arg2[%c0_39, %c0_40, %c0_41, %c32_42] : memref<1x1x4x640xbf16, #tpu.memory_space<vmem>>, vector<1x1x4x256xbf16>
    %28 = vector.shape_cast %27 : vector<1x1x4x256xbf16> to vector<4x256xbf16>
    %c36 = arith.constant 36 : index
    %c0_43 = arith.constant 0 : index
    %29 = vector.load %arg5[%c36, %c0_43] : memref<324x256xbf16, #tpu.memory_space<vmem>>, vector<4x256xbf16>
    tpu.vector_store %arg5[%c36, %c0_43], %28 {strides = array<i32>} : memref<324x256xbf16, #tpu.memory_space<vmem>>, vector<4x256xbf16>,
    %c0_44 = arith.constant 0 : index
    %c0_45 = arith.constant 0 : index
    %c0_46 = arith.constant 0 : index
    %c33 = arith.constant 33 : index
    %30 = vector.load %arg2[%c0_44, %c0_45, %c0_46, %c33] : memref<1x1x4x640xbf16, #tpu.memory_space<vmem>>, vector<1x1x4x256xbf16>
    %31 = vector.shape_cast %30 : vector<1x1x4x256xbf16> to vector<4x256xbf16>
    %c40 = arith.constant 40 : index
    %c0_47 = arith.constant 0 : index
    %32 = vector.load %arg5[%c40, %c0_47] : memref<324x256xbf16, #tpu.memory_space<vmem>>, vector<4x256xbf16>
    tpu.vector_store %arg5[%c40, %c0_47], %31 {strides = array<i32>} : memref<324x256xbf16, #tpu.memory_space<vmem>>, vector<4x256xbf16>,
    %c0_48 = arith.constant 0 : index
    %c0_49 = arith.constant 0 : index
    %c0_50 = arith.constant 0 : index
    %c34 = arith.constant 34 : index
    %33 = vector.load %arg2[%c0_48, %c0_49, %c0_50, %c34] : memref<1x1x4x640xbf16, #tpu.memory_space<vmem>>, vector<1x1x4x256xbf16>
    %34 = vector.shape_cast %33 : vector<1x1x4x256xbf16> to vector<4x256xbf16>
    %c44 = arith.constant 44 : index
    %c0_51 = arith.constant 0 : index
    %35 = vector.load %arg5[%c44, %c0_51] : memref<324x256xbf16, #tpu.memory_space<vmem>>, vector<4x256xbf16>
    tpu.vector_store %arg5[%c44, %c0_51], %34 {strides = array<i32>} : memref<324x256xbf16, #tpu.memory_space<vmem>>, vector<4x256xbf16>,
    %c0_52 = arith.constant 0 : index
    %c0_53 = arith.constant 0 : index
    %c0_54 = arith.constant 0 : index
    %c35 = arith.constant 35 : index
    %36 = vector.load %arg2[%c0_52, %c0_53, %c0_54, %c35] : memref<1x1x4x640xbf16, #tpu.memory_space<vmem>>, vector<1x1x4x256xbf16>
    %37 = vector.shape_cast %36 : vector<1x1x4x256xbf16> to vector<4x256xbf16>
    %c48 = arith.constant 48 : index
    %c0_55 = arith.constant 0 : index
    %38 = vector.load %arg5[%c48, %c0_55] : memref<324x256xbf16, #tpu.memory_space<vmem>>, vector<4x256xbf16>
    tpu.vector_store %arg5[%c48, %c0_55], %37 {strides = array<i32>} : memref<324x256xbf16, #tpu.memory_space<vmem>>, vector<4x256xbf16>,
    %c0_56 = arith.constant 0 : index
    %c0_57 = arith.constant 0 : index
    %c0_58 = arith.constant 0 : index
    %c36_59 = arith.constant 36 : index
    %39 = vector.load %arg2[%c0_56, %c0_57, %c0_58, %c36_59] : memref<1x1x4x640xbf16, #tpu.memory_space<vmem>>, vector<1x1x4x256xbf16>
    %40 = vector.shape_cast %39 : vector<1x1x4x256xbf16> to vector<4x256xbf16>
    %c52 = arith.constant 52 : index
    %c0_60 = arith.constant 0 : index
    %41 = vector.load %arg5[%c52, %c0_60] : memref<324x256xbf16, #tpu.memory_space<vmem>>, vector<4x256xbf16>
    tpu.vector_store %arg5[%c52, %c0_60], %40 {strides = array<i32>} : memref<324x256xbf16, #tpu.memory_space<vmem>>, vector<4x256xbf16>,
    %c0_61 = arith.constant 0 : index
    %c0_62 = arith.constant 0 : index
    %c0_63 = arith.constant 0 : index
    %c37 = arith.constant 37 : index
    %42 = vector.load %arg2[%c0_61, %c0_62, %c0_63, %c37] : memref<1x1x4x640xbf16, #tpu.memory_space<vmem>>, vector<1x1x4x256xbf16>
    %43 = vector.shape_cast %42 : vector<1x1x4x256xbf16> to vector<4x256xbf16>
    %c56 = arith.constant 56 : index
    %c0_64 = arith.constant 0 : index
    %44 = vector.load %arg5[%c56, %c0_64] : memref<324x256xbf16, #tpu.memory_space<vmem>>, vector<4x256xbf16>
    tpu.vector_store %arg5[%c56, %c0_64], %43 {strides = array<i32>} : memref<324x256xbf16, #tpu.memory_space<vmem>>, vector<4x256xbf16>,
    %c0_65 = arith.constant 0 : index
    %c0_66 = arith.constant 0 : index
    %c0_67 = arith.constant 0 : index
    %c38 = arith.constant 38 : index
    %45 = vector.load %arg2[%c0_65, %c0_66, %c0_67, %c38] : memref<1x1x4x640xbf16, #tpu.memory_space<vmem>>, vector<1x1x4x256xbf16>
    %46 = vector.shape_cast %45 : vector<1x1x4x256xbf16> to vector<4x256xbf16>
    %c60 = arith.constant 60 : index
    %c0_68 = arith.constant 0 : index
    %47 = vector.load %arg5[%c60, %c0_68] : memref<324x256xbf16, #tpu.memory_space<vmem>>, vector<4x256xbf16>
    tpu.vector_store %arg5[%c60, %c0_68], %46 {strides = array<i32>} : memref<324x256xbf16, #tpu.memory_space<vmem>>, vector<4x256xbf16>,
    %c0_69 = arith.constant 0 : index
    %c0_70 = arith.constant 0 : index
    %c0_71 = arith.constant 0 : index
    %c39 = arith.constant 39 : index
    %48 = vector.load %arg2[%c0_69, %c0_70, %c0_71, %c39] : memref<1x1x4x640xbf16, #tpu.memory_space<vmem>>, vector<1x1x4x256xbf16>
    %49 = vector.shape_cast %48 : vector<1x1x4x256xbf16> to vector<4x256xbf16>
    %c64 = arith.constant 64 : index
    %c0_72 = arith.constant 0 : index
    %50 = vector.load %arg5[%c64, %c0_72] : memref<324x256xbf16, #tpu.memory_space<vmem>>, vector<4x256xbf16>
    tpu.vector_store %arg5[%c64, %c0_72], %49 {strides = array<i32>} : memref<324x256xbf16, #tpu.memory_space<vmem>>, vector<4x256xbf16>,
    %c0_73 = arith.constant 0 : index
    %c0_74 = arith.constant 0 : index
    %c0_75 = arith.constant 0 : index
    %c40_76 = arith.constant 40 : index
    %51 = vector.load %arg2[%c0_73, %c0_74, %c0_75, %c40_76] : memref<1x1x4x640xbf16, #tpu.memory_space<vmem>>, vector<1x1x4x256xbf16>
    %52 = vector.shape_cast %51 : vector<1x1x4x256xbf16> to vector<4x256xbf16>
    %c68 = arith.constant 68 : index
    %c0_77 = arith.constant 0 : index
    %53 = vector.load %arg5[%c68, %c0_77] : memref<324x256xbf16, #tpu.memory_space<vmem>>, vector<4x256xbf16>
    tpu.vector_store %arg5[%c68, %c0_77], %52 {strides = array<i32>} : memref<324x256xbf16, #tpu.memory_space<vmem>>, vector<4x256xbf16>,
    %c0_78 = arith.constant 0 : index
    %c0_79 = arith.constant 0 : index
    %c0_80 = arith.constant 0 : index
    %c64_81 = arith.constant 64 : index
    %54 = vector.load %arg2[%c0_78, %c0_79, %c0_80, %c64_81] : memref<1x1x4x640xbf16, #tpu.memory_space<vmem>>, vector<1x1x4x256xbf16>
    %55 = vector.shape_cast %54 : vector<1x1x4x256xbf16> to vector<4x256xbf16>
    %c72 = arith.constant 72 : index
    %c0_82 = arith.constant 0 : index
    %56 = vector.load %arg5[%c72, %c0_82] : memref<324x256xbf16, #tpu.memory_space<vmem>>, vector<4x256xbf16>
    tpu.vector_store %arg5[%c72, %c0_82], %55 {strides = array<i32>} : memref<324x256xbf16, #tpu.memory_space<vmem>>, vector<4x256xbf16>,
    %c0_83 = arith.constant 0 : index
    %c0_84 = arith.constant 0 : index
    %c0_85 = arith.constant 0 : index
    %c65 = arith.constant 65 : index
    %57 = vector.load %arg2[%c0_83, %c0_84, %c0_85, %c65] : memref<1x1x4x640xbf16, #tpu.memory_space<vmem>>, vector<1x1x4x256xbf16>
    %58 = vector.shape_cast %57 : vector<1x1x4x256xbf16> to vector<4x256xbf16>
    %c76 = arith.constant 76 : index
    %c0_86 = arith.constant 0 : index
    %59 = vector.load %arg5[%c76, %c0_86] : memref<324x256xbf16, #tpu.memory_space<vmem>>, vector<4x256xbf16>
    tpu.vector_store %arg5[%c76, %c0_86], %58 {strides = array<i32>} : memref<324x256xbf16, #tpu.memory_space<vmem>>, vector<4x256xbf16>,
    %c0_87 = arith.constant 0 : index
    %c0_88 = arith.constant 0 : index
    %c0_89 = arith.constant 0 : index
    %c66 = arith.constant 66 : index
    %60 = vector.load %arg2[%c0_87, %c0_88, %c0_89, %c66] : memref<1x1x4x640xbf16, #tpu.memory_space<vmem>>, vector<1x1x4x256xbf16>
    %61 = vector.shape_cast %60 : vector<1x1x4x256xbf16> to vector<4x256xbf16>
    %c80 = arith.constant 80 : index
    %c0_90 = arith.constant 0 : index
    %62 = vector.load %arg5[%c80, %c0_90] : memref<324x256xbf16, #tpu.memory_space<vmem>>, vector<4x256xbf16>
    tpu.vector_store %arg5[%c80, %c0_90], %61 {strides = array<i32>} : memref<324x256xbf16, #tpu.memory_space<vmem>>, vector<4x256xbf16>,
    %c0_91 = arith.constant 0 : index
    %c0_92 = arith.constant 0 : index
    %c0_93 = arith.constant 0 : index
    %c67 = arith.constant 67 : index
    %63 = vector.load %arg2[%c0_91, %c0_92, %c0_93, %c67] : memref<1x1x4x640xbf16, #tpu.memory_space<vmem>>, vector<1x1x4x256xbf16>
    %64 = vector.shape_cast %63 : vector<1x1x4x256xbf16> to vector<4x256xbf16>
    %c84 = arith.constant 84 : index
    %c0_94 = arith.constant 0 : index
    %65 = vector.load %arg5[%c84, %c0_94] : memref<324x256xbf16, #tpu.memory_space<vmem>>, vector<4x256xbf16>
    tpu.vector_store %arg5[%c84, %c0_94], %64 {strides = array<i32>} : memref<324x256xbf16, #tpu.memory_space<vmem>>, vector<4x256xbf16>,
    %c0_95 = arith.constant 0 : index
    %c0_96 = arith.constant 0 : index
    %c0_97 = arith.constant 0 : index
    %c68_98 = arith.constant 68 : index
    %66 = vector.load %arg2[%c0_95, %c0_96, %c0_97, %c68_98] : memref<1x1x4x640xbf16, #tpu.memory_space<vmem>>, vector<1x1x4x256xbf16>
    %67 = vector.shape_cast %66 : vector<1x1x4x256xbf16> to vector<4x256xbf16>
    %c88 = arith.constant 88 : index
    %c0_99 = arith.constant 0 : index
    %68 = vector.load %arg5[%c88, %c0_99] : memref<324x256xbf16, #tpu.memory_space<vmem>>, vector<4x256xbf16>
    tpu.vector_store %arg5[%c88, %c0_99], %67 {strides = array<i32>} : memref<324x256xbf16, #tpu.memory_space<vmem>>, vector<4x256xbf16>,
    %c0_100 = arith.constant 0 : index
    %c0_101 = arith.constant 0 : index
    %c0_102 = arith.constant 0 : index
    %c69 = arith.constant 69 : index
    %69 = vector.load %arg2[%c0_100, %c0_101, %c0_102, %c69] : memref<1x1x4x640xbf16, #tpu.memory_space<vmem>>, vector<1x1x4x256xbf16>
    %70 = vector.shape_cast %69 : vector<1x1x4x256xbf16> to vector<4x256xbf16>
    %c92 = arith.constant 92 : index
    %c0_103 = arith.constant 0 : index
    %71 = vector.load %arg5[%c92, %c0_103] : memref<324x256xbf16, #tpu.memory_space<vmem>>, vector<4x256xbf16>
    tpu.vector_store %arg5[%c92, %c0_103], %70 {strides = array<i32>} : memref<324x256xbf16, #tpu.memory_space<vmem>>, vector<4x256xbf16>,
    %c0_104 = arith.constant 0 : index
    %c0_105 = arith.constant 0 : index
    %c0_106 = arith.constant 0 : index
    %c70 = arith.constant 70 : index
    %72 = vector.load %arg2[%c0_104, %c0_105, %c0_106, %c70] : memref<1x1x4x640xbf16, #tpu.memory_space<vmem>>, vector<1x1x4x256xbf16>
    %73 = vector.shape_cast %72 : vector<1x1x4x256xbf16> to vector<4x256xbf16>
    %c96 = arith.constant 96 : index
    %c0_107 = arith.constant 0 : index
    %74 = vector.load %arg5[%c96, %c0_107] : memref<324x256xbf16, #tpu.memory_space<vmem>>, vector<4x256xbf16>
    tpu.vector_store %arg5[%c96, %c0_107], %73 {strides = array<i32>} : memref<324x256xbf16, #tpu.memory_space<vmem>>, vector<4x256xbf16>,
    %c0_108 = arith.constant 0 : index
    %c0_109 = arith.constant 0 : index
    %c0_110 = arith.constant 0 : index
    %c71 = arith.constant 71 : index
    %75 = vector.load %arg2[%c0_108, %c0_109, %c0_110, %c71] : memref<1x1x4x640xbf16, #tpu.memory_space<vmem>>, vector<1x1x4x256xbf16>
    %76 = vector.shape_cast %75 : vector<1x1x4x256xbf16> to vector<4x256xbf16>
    %c100 = arith.constant 100 : index
    %c0_111 = arith.constant 0 : index
    %77 = vector.load %arg5[%c100, %c0_111] : memref<324x256xbf16, #tpu.memory_space<vmem>>, vector<4x256xbf16>
    tpu.vector_store %arg5[%c100, %c0_111], %76 {strides = array<i32>} : memref<324x256xbf16, #tpu.memory_space<vmem>>, vector<4x256xbf16>,
    %c0_112 = arith.constant 0 : index
    %c0_113 = arith.constant 0 : index
    %c0_114 = arith.constant 0 : index
    %c72_115 = arith.constant 72 : index
    %78 = vector.load %arg2[%c0_112, %c0_113, %c0_114, %c72_115] : memref<1x1x4x640xbf16, #tpu.memory_space<vmem>>, vector<1x1x4x256xbf16>
    %79 = vector.shape_cast %78 : vector<1x1x4x256xbf16> to vector<4x256xbf16>
    %c104 = arith.constant 104 : index
    %c0_116 = arith.constant 0 : index
    %80 = vector.load %arg5[%c104, %c0_116] : memref<324x256xbf16, #tpu.memory_space<vmem>>, vector<4x256xbf16>
    tpu.vector_store %arg5[%c104, %c0_116], %79 {strides = array<i32>} : memref<324x256xbf16, #tpu.memory_space<vmem>>, vector<4x256xbf16>,
    %c0_117 = arith.constant 0 : index
    %c0_118 = arith.constant 0 : index
    %c0_119 = arith.constant 0 : index
    %c96_120 = arith.constant 96 : index
    %81 = vector.load %arg2[%c0_117, %c0_118, %c0_119, %c96_120] : memref<1x1x4x640xbf16, #tpu.memory_space<vmem>>, vector<1x1x4x256xbf16>
    %82 = vector.shape_cast %81 : vector<1x1x4x256xbf16> to vector<4x256xbf16>
    %c108 = arith.constant 108 : index
    %c0_121 = arith.constant 0 : index
    %83 = vector.load %arg5[%c108, %c0_121] : memref<324x256xbf16, #tpu.memory_space<vmem>>, vector<4x256xbf16>
    tpu.vector_store %arg5[%c108, %c0_121], %82 {strides = array<i32>} : memref<324x256xbf16, #tpu.memory_space<vmem>>, vector<4x256xbf16>,
    %c0_122 = arith.constant 0 : index
    %c0_123 = arith.constant 0 : index
    %c0_124 = arith.constant 0 : index
    %c97 = arith.constant 97 : index
    %84 = vector.load %arg2[%c0_122, %c0_123, %c0_124, %c97] : memref<1x1x4x640xbf16, #tpu.memory_space<vmem>>, vector<1x1x4x256xbf16>
    %85 = vector.shape_cast %84 : vector<1x1x4x256xbf16> to vector<4x256xbf16>
    %c112 = arith.constant 112 : index
    %c0_125 = arith.constant 0 : index
    %86 = vector.load %arg5[%c112, %c0_125] : memref<324x256xbf16, #tpu.memory_space<vmem>>, vector<4x256xbf16>
    tpu.vector_store %arg5[%c112, %c0_125], %85 {strides = array<i32>} : memref<324x256xbf16, #tpu.memory_space<vmem>>, vector<4x256xbf16>,
    %c0_126 = arith.constant 0 : index
    %c0_127 = arith.constant 0 : index
    %c0_128 = arith.constant 0 : index
    %c98 = arith.constant 98 : index
    %87 = vector.load %arg2[%c0_126, %c0_127, %c0_128, %c98] : memref<1x1x4x640xbf16, #tpu.memory_space<vmem>>, vector<1x1x4x256xbf16>
    %88 = vector.shape_cast %87 : vector<1x1x4x256xbf16> to vector<4x256xbf16>
    %c116 = arith.constant 116 : index
    %c0_129 = arith.constant 0 : index
    %89 = vector.load %arg5[%c116, %c0_129] : memref<324x256xbf16, #tpu.memory_space<vmem>>, vector<4x256xbf16>
    tpu.vector_store %arg5[%c116, %c0_129], %88 {strides = array<i32>} : memref<324x256xbf16, #tpu.memory_space<vmem>>, vector<4x256xbf16>,
    %c0_130 = arith.constant 0 : index
    %c0_131 = arith.constant 0 : index
    %c0_132 = arith.constant 0 : index
    %c99 = arith.constant 99 : index
    %90 = vector.load %arg2[%c0_130, %c0_131, %c0_132, %c99] : memref<1x1x4x640xbf16, #tpu.memory_space<vmem>>, vector<1x1x4x256xbf16>
    %91 = vector.shape_cast %90 : vector<1x1x4x256xbf16> to vector<4x256xbf16>
    %c120 = arith.constant 120 : index
    %c0_133 = arith.constant 0 : index
    %92 = vector.load %arg5[%c120, %c0_133] : memref<324x256xbf16, #tpu.memory_space<vmem>>, vector<4x256xbf16>
    tpu.vector_store %arg5[%c120, %c0_133], %91 {strides = array<i32>} : memref<324x256xbf16, #tpu.memory_space<vmem>>, vector<4x256xbf16>,
    %c0_134 = arith.constant 0 : index
    %c0_135 = arith.constant 0 : index
    %c0_136 = arith.constant 0 : index
    %c100_137 = arith.constant 100 : index
    %93 = vector.load %arg2[%c0_134, %c0_135, %c0_136, %c100_137] : memref<1x1x4x640xbf16, #tpu.memory_space<vmem>>, vector<1x1x4x256xbf16>
    %94 = vector.shape_cast %93 : vector<1x1x4x256xbf16> to vector<4x256xbf16>
    %c124 = arith.constant 124 : index
    %c0_138 = arith.constant 0 : index
    %95 = vector.load %arg5[%c124, %c0_138] : memref<324x256xbf16, #tpu.memory_space<vmem>>, vector<4x256xbf16>
    tpu.vector_store %arg5[%c124, %c0_138], %94 {strides = array<i32>} : memref<324x256xbf16, #tpu.memory_space<vmem>>, vector<4x256xbf16>,
    %c0_139 = arith.constant 0 : index
    %c0_140 = arith.constant 0 : index
    %c0_141 = arith.constant 0 : index
    %c101 = arith.constant 101 : index
    %96 = vector.load %arg2[%c0_139, %c0_140, %c0_141, %c101] : memref<1x1x4x640xbf16, #tpu.memory_space<vmem>>, vector<1x1x4x256xbf16>
    %97 = vector.shape_cast %96 : vector<1x1x4x256xbf16> to vector<4x256xbf16>
    %c128 = arith.constant 128 : index
    %c0_142 = arith.constant 0 : index
    %98 = vector.load %arg5[%c128, %c0_142] : memref<324x256xbf16, #tpu.memory_space<vmem>>, vector<4x256xbf16>
    tpu.vector_store %arg5[%c128, %c0_142], %97 {strides = array<i32>} : memref<324x256xbf16, #tpu.memory_space<vmem>>, vector<4x256xbf16>,
    %c0_143 = arith.constant 0 : index
    %c0_144 = arith.constant 0 : index
    %c0_145 = arith.constant 0 : index
    %c102 = arith.constant 102 : index
    %99 = vector.load %arg2[%c0_143, %c0_144, %c0_145, %c102] : memref<1x1x4x640xbf16, #tpu.memory_space<vmem>>, vector<1x1x4x256xbf16>
    %100 = vector.shape_cast %99 : vector<1x1x4x256xbf16> to vector<4x256xbf16>
    %c132 = arith.constant 132 : index
    %c0_146 = arith.constant 0 : index
    %101 = vector.load %arg5[%c132, %c0_146] : memref<324x256xbf16, #tpu.memory_space<vmem>>, vector<4x256xbf16>
    tpu.vector_store %arg5[%c132, %c0_146], %100 {strides = array<i32>} : memref<324x256xbf16, #tpu.memory_space<vmem>>, vector<4x256xbf16>,
    %c0_147 = arith.constant 0 : index
    %c0_148 = arith.constant 0 : index
    %c0_149 = arith.constant 0 : index
    %c103 = arith.constant 103 : index
    %102 = vector.load %arg2[%c0_147, %c0_148, %c0_149, %c103] : memref<1x1x4x640xbf16, #tpu.memory_space<vmem>>, vector<1x1x4x256xbf16>
    %103 = vector.shape_cast %102 : vector<1x1x4x256xbf16> to vector<4x256xbf16>
    %c136 = arith.constant 136 : index
    %c0_150 = arith.constant 0 : index
    %104 = vector.load %arg5[%c136, %c0_150] : memref<324x256xbf16, #tpu.memory_space<vmem>>, vector<4x256xbf16>
    tpu.vector_store %arg5[%c136, %c0_150], %103 {strides = array<i32>} : memref<324x256xbf16, #tpu.memory_space<vmem>>, vector<4x256xbf16>,
    %c0_151 = arith.constant 0 : index
    %c0_152 = arith.constant 0 : index
    %c0_153 = arith.constant 0 : index
    %c104_154 = arith.constant 104 : index
    %105 = vector.load %arg2[%c0_151, %c0_152, %c0_153, %c104_154] : memref<1x1x4x640xbf16, #tpu.memory_space<vmem>>, vector<1x1x4x256xbf16>
    %106 = vector.shape_cast %105 : vector<1x1x4x256xbf16> to vector<4x256xbf16>
    %c140 = arith.constant 140 : index
    %c0_155 = arith.constant 0 : index
    %107 = vector.load %arg5[%c140, %c0_155] : memref<324x256xbf16, #tpu.memory_space<vmem>>, vector<4x256xbf16>
    tpu.vector_store %arg5[%c140, %c0_155], %106 {strides = array<i32>} : memref<324x256xbf16, #tpu.memory_space<vmem>>, vector<4x256xbf16>,
    %c0_156 = arith.constant 0 : index
    %c0_157 = arith.constant 0 : index
    %c0_158 = arith.constant 0 : index
    %c128_159 = arith.constant 128 : index
    %108 = vector.load %arg2[%c0_156, %c0_157, %c0_158, %c128_159] : memref<1x1x4x640xbf16, #tpu.memory_space<vmem>>, vector<1x1x4x256xbf16>
    %109 = vector.shape_cast %108 : vector<1x1x4x256xbf16> to vector<4x256xbf16>
    %c144 = arith.constant 144 : index
    %c0_160 = arith.constant 0 : index
    %110 = vector.load %arg5[%c144, %c0_160] : memref<324x256xbf16, #tpu.memory_space<vmem>>, vector<4x256xbf16>
    tpu.vector_store %arg5[%c144, %c0_160], %109 {strides = array<i32>} : memref<324x256xbf16, #tpu.memory_space<vmem>>, vector<4x256xbf16>,
    %c0_161 = arith.constant 0 : index
    %c0_162 = arith.constant 0 : index
    %c0_163 = arith.constant 0 : index
    %c129 = arith.constant 129 : index
    %111 = vector.load %arg2[%c0_161, %c0_162, %c0_163, %c129] : memref<1x1x4x640xbf16, #tpu.memory_space<vmem>>, vector<1x1x4x256xbf16>
    %112 = vector.shape_cast %111 : vector<1x1x4x256xbf16> to vector<4x256xbf16>
    %c148 = arith.constant 148 : index
    %c0_164 = arith.constant 0 : index
    %113 = vector.load %arg5[%c148, %c0_164] : memref<324x256xbf16, #tpu.memory_space<vmem>>, vector<4x256xbf16>
    tpu.vector_store %arg5[%c148, %c0_164], %112 {strides = array<i32>} : memref<324x256xbf16, #tpu.memory_space<vmem>>, vector<4x256xbf16>,
    %c0_165 = arith.constant 0 : index
    %c0_166 = arith.constant 0 : index
    %c0_167 = arith.constant 0 : index
    %c130 = arith.constant 130 : index
    %114 = vector.load %arg2[%c0_165, %c0_166, %c0_167, %c130] : memref<1x1x4x640xbf16, #tpu.memory_space<vmem>>, vector<1x1x4x256xbf16>
    %115 = vector.shape_cast %114 : vector<1x1x4x256xbf16> to vector<4x256xbf16>
    %c152 = arith.constant 152 : index
    %c0_168 = arith.constant 0 : index
    %116 = vector.load %arg5[%c152, %c0_168] : memref<324x256xbf16, #tpu.memory_space<vmem>>, vector<4x256xbf16>
    tpu.vector_store %arg5[%c152, %c0_168], %115 {strides = array<i32>} : memref<324x256xbf16, #tpu.memory_space<vmem>>, vector<4x256xbf16>,
    %c0_169 = arith.constant 0 : index
    %c0_170 = arith.constant 0 : index
    %c0_171 = arith.constant 0 : index
    %c131 = arith.constant 131 : index
    %117 = vector.load %arg2[%c0_169, %c0_170, %c0_171, %c131] : memref<1x1x4x640xbf16, #tpu.memory_space<vmem>>, vector<1x1x4x256xbf16>
    %118 = vector.shape_cast %117 : vector<1x1x4x256xbf16> to vector<4x256xbf16>
    %c156 = arith.constant 156 : index
    %c0_172 = arith.constant 0 : index
    %119 = vector.load %arg5[%c156, %c0_172] : memref<324x256xbf16, #tpu.memory_space<vmem>>, vector<4x256xbf16>
    tpu.vector_store %arg5[%c156, %c0_172], %118 {strides = array<i32>} : memref<324x256xbf16, #tpu.memory_space<vmem>>, vector<4x256xbf16>,
    %c0_173 = arith.constant 0 : index
    %c0_174 = arith.constant 0 : index
    %c0_175 = arith.constant 0 : index
    %c132_176 = arith.constant 132 : index
    %120 = vector.load %arg2[%c0_173, %c0_174, %c0_175, %c132_176] : memref<1x1x4x640xbf16, #tpu.memory_space<vmem>>, vector<1x1x4x256xbf16>
    %121 = vector.shape_cast %120 : vector<1x1x4x256xbf16> to vector<4x256xbf16>
    %c160 = arith.constant 160 : index
    %c0_177 = arith.constant 0 : index
    %122 = vector.load %arg5[%c160, %c0_177] : memref<324x256xbf16, #tpu.memory_space<vmem>>, vector<4x256xbf16>
    tpu.vector_store %arg5[%c160, %c0_177], %121 {strides = array<i32>} : memref<324x256xbf16, #tpu.memory_space<vmem>>, vector<4x256xbf16>,
    %c0_178 = arith.constant 0 : index
    %c0_179 = arith.constant 0 : index
    %c0_180 = arith.constant 0 : index
    %c133 = arith.constant 133 : index
    %123 = vector.load %arg2[%c0_178, %c0_179, %c0_180, %c133] : memref<1x1x4x640xbf16, #tpu.memory_space<vmem>>, vector<1x1x4x256xbf16>
    %124 = vector.shape_cast %123 : vector<1x1x4x256xbf16> to vector<4x256xbf16>
    %c164 = arith.constant 164 : index
    %c0_181 = arith.constant 0 : index
    %125 = vector.load %arg5[%c164, %c0_181] : memref<324x256xbf16, #tpu.memory_space<vmem>>, vector<4x256xbf16>
    tpu.vector_store %arg5[%c164, %c0_181], %124 {strides = array<i32>} : memref<324x256xbf16, #tpu.memory_space<vmem>>, vector<4x256xbf16>,
    %c0_182 = arith.constant 0 : index
    %c0_183 = arith.constant 0 : index
    %c0_184 = arith.constant 0 : index
    %c134 = arith.constant 134 : index
    %126 = vector.load %arg2[%c0_182, %c0_183, %c0_184, %c134] : memref<1x1x4x640xbf16, #tpu.memory_space<vmem>>, vector<1x1x4x256xbf16>
    %127 = vector.shape_cast %126 : vector<1x1x4x256xbf16> to vector<4x256xbf16>
    %c168 = arith.constant 168 : index
    %c0_185 = arith.constant 0 : index
    %128 = vector.load %arg5[%c168, %c0_185] : memref<324x256xbf16, #tpu.memory_space<vmem>>, vector<4x256xbf16>
    tpu.vector_store %arg5[%c168, %c0_185], %127 {strides = array<i32>} : memref<324x256xbf16, #tpu.memory_space<vmem>>, vector<4x256xbf16>,
    %c0_186 = arith.constant 0 : index
    %c0_187 = arith.constant 0 : index
    %c0_188 = arith.constant 0 : index
    %c135 = arith.constant 135 : index
    %129 = vector.load %arg2[%c0_186, %c0_187, %c0_188, %c135] : memref<1x1x4x640xbf16, #tpu.memory_space<vmem>>, vector<1x1x4x256xbf16>
    %130 = vector.shape_cast %129 : vector<1x1x4x256xbf16> to vector<4x256xbf16>
    %c172 = arith.constant 172 : index
    %c0_189 = arith.constant 0 : index
    %131 = vector.load %arg5[%c172, %c0_189] : memref<324x256xbf16, #tpu.memory_space<vmem>>, vector<4x256xbf16>
    tpu.vector_store %arg5[%c172, %c0_189], %130 {strides = array<i32>} : memref<324x256xbf16, #tpu.memory_space<vmem>>, vector<4x256xbf16>,
    %c0_190 = arith.constant 0 : index
    %c0_191 = arith.constant 0 : index
    %c0_192 = arith.constant 0 : index
    %c136_193 = arith.constant 136 : index
    %132 = vector.load %arg2[%c0_190, %c0_191, %c0_192, %c136_193] : memref<1x1x4x640xbf16, #tpu.memory_space<vmem>>, vector<1x1x4x256xbf16>
    %133 = vector.shape_cast %132 : vector<1x1x4x256xbf16> to vector<4x256xbf16>
    %c176 = arith.constant 176 : index
    %c0_194 = arith.constant 0 : index
    %134 = vector.load %arg5[%c176, %c0_194] : memref<324x256xbf16, #tpu.memory_space<vmem>>, vector<4x256xbf16>
    tpu.vector_store %arg5[%c176, %c0_194], %133 {strides = array<i32>} : memref<324x256xbf16, #tpu.memory_space<vmem>>, vector<4x256xbf16>,
    %c0_195 = arith.constant 0 : index
    %c0_196 = arith.constant 0 : index
    %c0_197 = arith.constant 0 : index
    %c160_198 = arith.constant 160 : index
    %135 = vector.load %arg2[%c0_195, %c0_196, %c0_197, %c160_198] : memref<1x1x4x640xbf16, #tpu.memory_space<vmem>>, vector<1x1x4x256xbf16>
    %136 = vector.shape_cast %135 : vector<1x1x4x256xbf16> to vector<4x256xbf16>
    %c180 = arith.constant 180 : index
    %c0_199 = arith.constant 0 : index
    %137 = vector.load %arg5[%c180, %c0_199] : memref<324x256xbf16, #tpu.memory_space<vmem>>, vector<4x256xbf16>
    tpu.vector_store %arg5[%c180, %c0_199], %136 {strides = array<i32>} : memref<324x256xbf16, #tpu.memory_space<vmem>>, vector<4x256xbf16>,
    %c0_200 = arith.constant 0 : index
    %c0_201 = arith.constant 0 : index
    %c0_202 = arith.constant 0 : index
    %c161 = arith.constant 161 : index
    %138 = vector.load %arg2[%c0_200, %c0_201, %c0_202, %c161] : memref<1x1x4x640xbf16, #tpu.memory_space<vmem>>, vector<1x1x4x256xbf16>
    %139 = vector.shape_cast %138 : vector<1x1x4x256xbf16> to vector<4x256xbf16>
    %c184 = arith.constant 184 : index
    %c0_203 = arith.constant 0 : index
    %140 = vector.load %arg5[%c184, %c0_203] : memref<324x256xbf16, #tpu.memory_space<vmem>>, vector<4x256xbf16>
    tpu.vector_store %arg5[%c184, %c0_203], %139 {strides = array<i32>} : memref<324x256xbf16, #tpu.memory_space<vmem>>, vector<4x256xbf16>,
    %c0_204 = arith.constant 0 : index
    %c0_205 = arith.constant 0 : index
    %c0_206 = arith.constant 0 : index
    %c162 = arith.constant 162 : index
    %141 = vector.load %arg2[%c0_204, %c0_205, %c0_206, %c162] : memref<1x1x4x640xbf16, #tpu.memory_space<vmem>>, vector<1x1x4x256xbf16>
    %142 = vector.shape_cast %141 : vector<1x1x4x256xbf16> to vector<4x256xbf16>
    %c188 = arith.constant 188 : index
    %c0_207 = arith.constant 0 : index
    %143 = vector.load %arg5[%c188, %c0_207] : memref<324x256xbf16, #tpu.memory_space<vmem>>, vector<4x256xbf16>
    tpu.vector_store %arg5[%c188, %c0_207], %142 {strides = array<i32>} : memref<324x256xbf16, #tpu.memory_space<vmem>>, vector<4x256xbf16>,
    %c0_208 = arith.constant 0 : index
    %c0_209 = arith.constant 0 : index
    %c0_210 = arith.constant 0 : index
    %c163 = arith.constant 163 : index
    %144 = vector.load %arg2[%c0_208, %c0_209, %c0_210, %c163] : memref<1x1x4x640xbf16, #tpu.memory_space<vmem>>, vector<1x1x4x256xbf16>
    %145 = vector.shape_cast %144 : vector<1x1x4x256xbf16> to vector<4x256xbf16>
    %c192 = arith.constant 192 : index
    %c0_211 = arith.constant 0 : index
    %146 = vector.load %arg5[%c192, %c0_211] : memref<324x256xbf16, #tpu.memory_space<vmem>>, vector<4x256xbf16>
    tpu.vector_store %arg5[%c192, %c0_211], %145 {strides = array<i32>} : memref<324x256xbf16, #tpu.memory_space<vmem>>, vector<4x256xbf16>,
    %c0_212 = arith.constant 0 : index
    %c0_213 = arith.constant 0 : index
    %c0_214 = arith.constant 0 : index
    %c164_215 = arith.constant 164 : index
    %147 = vector.load %arg2[%c0_212, %c0_213, %c0_214, %c164_215] : memref<1x1x4x640xbf16, #tpu.memory_space<vmem>>, vector<1x1x4x256xbf16>
    %148 = vector.shape_cast %147 : vector<1x1x4x256xbf16> to vector<4x256xbf16>
    %c196 = arith.constant 196 : index
    %c0_216 = arith.constant 0 : index
    %149 = vector.load %arg5[%c196, %c0_216] : memref<324x256xbf16, #tpu.memory_space<vmem>>, vector<4x256xbf16>
    tpu.vector_store %arg5[%c196, %c0_216], %148 {strides = array<i32>} : memref<324x256xbf16, #tpu.memory_space<vmem>>, vector<4x256xbf16>,
    %c0_217 = arith.constant 0 : index
    %c0_218 = arith.constant 0 : index
    %c0_219 = arith.constant 0 : index
    %c165 = arith.constant 165 : index
    %150 = vector.load %arg2[%c0_217, %c0_218, %c0_219, %c165] : memref<1x1x4x640xbf16, #tpu.memory_space<vmem>>, vector<1x1x4x256xbf16>
    %151 = vector.shape_cast %150 : vector<1x1x4x256xbf16> to vector<4x256xbf16>
    %c200 = arith.constant 200 : index
    %c0_220 = arith.constant 0 : index
    %152 = vector.load %arg5[%c200, %c0_220] : memref<324x256xbf16, #tpu.memory_space<vmem>>, vector<4x256xbf16>
    tpu.vector_store %arg5[%c200, %c0_220], %151 {strides = array<i32>} : memref<324x256xbf16, #tpu.memory_space<vmem>>, vector<4x256xbf16>,
    %c0_221 = arith.constant 0 : index
    %c0_222 = arith.constant 0 : index
    %c0_223 = arith.constant 0 : index
    %c166 = arith.constant 166 : index
    %153 = vector.load %arg2[%c0_221, %c0_222, %c0_223, %c166] : memref<1x1x4x640xbf16, #tpu.memory_space<vmem>>, vector<1x1x4x256xbf16>
    %154 = vector.shape_cast %153 : vector<1x1x4x256xbf16> to vector<4x256xbf16>
    %c204 = arith.constant 204 : index
    %c0_224 = arith.constant 0 : index
    %155 = vector.load %arg5[%c204, %c0_224] : memref<324x256xbf16, #tpu.memory_space<vmem>>, vector<4x256xbf16>
    tpu.vector_store %arg5[%c204, %c0_224], %154 {strides = array<i32>} : memref<324x256xbf16, #tpu.memory_space<vmem>>, vector<4x256xbf16>,
    %c0_225 = arith.constant 0 : index
    %c0_226 = arith.constant 0 : index
    %c0_227 = arith.constant 0 : index
    %c167 = arith.constant 167 : index
    %156 = vector.load %arg2[%c0_225, %c0_226, %c0_227, %c167] : memref<1x1x4x640xbf16, #tpu.memory_space<vmem>>, vector<1x1x4x256xbf16>
    %157 = vector.shape_cast %156 : vector<1x1x4x256xbf16> to vector<4x256xbf16>
    %c208 = arith.constant 208 : index
    %c0_228 = arith.constant 0 : index
    %158 = vector.load %arg5[%c208, %c0_228] : memref<324x256xbf16, #tpu.memory_space<vmem>>, vector<4x256xbf16>
    tpu.vector_store %arg5[%c208, %c0_228], %157 {strides = array<i32>} : memref<324x256xbf16, #tpu.memory_space<vmem>>, vector<4x256xbf16>,
    %c0_229 = arith.constant 0 : index
    %c0_230 = arith.constant 0 : index
    %c0_231 = arith.constant 0 : index
    %c168_232 = arith.constant 168 : index
    %159 = vector.load %arg2[%c0_229, %c0_230, %c0_231, %c168_232] : memref<1x1x4x640xbf16, #tpu.memory_space<vmem>>, vector<1x1x4x256xbf16>
    %160 = vector.shape_cast %159 : vector<1x1x4x256xbf16> to vector<4x256xbf16>
    %c212 = arith.constant 212 : index
    %c0_233 = arith.constant 0 : index
    %161 = vector.load %arg5[%c212, %c0_233] : memref<324x256xbf16, #tpu.memory_space<vmem>>, vector<4x256xbf16>
    tpu.vector_store %arg5[%c212, %c0_233], %160 {strides = array<i32>} : memref<324x256xbf16, #tpu.memory_space<vmem>>, vector<4x256xbf16>,
    %c0_234 = arith.constant 0 : index
    %c0_235 = arith.constant 0 : index
    %c0_236 = arith.constant 0 : index
    %c192_237 = arith.constant 192 : index
    %162 = vector.load %arg2[%c0_234, %c0_235, %c0_236, %c192_237] : memref<1x1x4x640xbf16, #tpu.memory_space<vmem>>, vector<1x1x4x256xbf16>
    %163 = vector.shape_cast %162 : vector<1x1x4x256xbf16> to vector<4x256xbf16>
    %c216 = arith.constant 216 : index
    %c0_238 = arith.constant 0 : index
    %164 = vector.load %arg5[%c216, %c0_238] : memref<324x256xbf16, #tpu.memory_space<vmem>>, vector<4x256xbf16>
    tpu.vector_store %arg5[%c216, %c0_238], %163 {strides = array<i32>} : memref<324x256xbf16, #tpu.memory_space<vmem>>, vector<4x256xbf16>,
    %c0_239 = arith.constant 0 : index
    %c0_240 = arith.constant 0 : index
    %c0_241 = arith.constant 0 : index
    %c193 = arith.constant 193 : index
    %165 = vector.load %arg2[%c0_239, %c0_240, %c0_241, %c193] : memref<1x1x4x640xbf16, #tpu.memory_space<vmem>>, vector<1x1x4x256xbf16>
    %166 = vector.shape_cast %165 : vector<1x1x4x256xbf16> to vector<4x256xbf16>
    %c220 = arith.constant 220 : index
    %c0_242 = arith.constant 0 : index
    %167 = vector.load %arg5[%c220, %c0_242] : memref<324x256xbf16, #tpu.memory_space<vmem>>, vector<4x256xbf16>
    tpu.vector_store %arg5[%c220, %c0_242], %166 {strides = array<i32>} : memref<324x256xbf16, #tpu.memory_space<vmem>>, vector<4x256xbf16>,
    %c0_243 = arith.constant 0 : index
    %c0_244 = arith.constant 0 : index
    %c0_245 = arith.constant 0 : index
    %c194 = arith.constant 194 : index
    %168 = vector.load %arg2[%c0_243, %c0_244, %c0_245, %c194] : memref<1x1x4x640xbf16, #tpu.memory_space<vmem>>, vector<1x1x4x256xbf16>
    %169 = vector.shape_cast %168 : vector<1x1x4x256xbf16> to vector<4x256xbf16>
    %c224 = arith.constant 224 : index
    %c0_246 = arith.constant 0 : index
    %170 = vector.load %arg5[%c224, %c0_246] : memref<324x256xbf16, #tpu.memory_space<vmem>>, vector<4x256xbf16>
    tpu.vector_store %arg5[%c224, %c0_246], %169 {strides = array<i32>} : memref<324x256xbf16, #tpu.memory_space<vmem>>, vector<4x256xbf16>,
    %c0_247 = arith.constant 0 : index
    %c0_248 = arith.constant 0 : index
    %c0_249 = arith.constant 0 : index
    %c195 = arith.constant 195 : index
    %171 = vector.load %arg2[%c0_247, %c0_248, %c0_249, %c195] : memref<1x1x4x640xbf16, #tpu.memory_space<vmem>>, vector<1x1x4x256xbf16>
    %172 = vector.shape_cast %171 : vector<1x1x4x256xbf16> to vector<4x256xbf16>
    %c228 = arith.constant 228 : index
    %c0_250 = arith.constant 0 : index
    %173 = vector.load %arg5[%c228, %c0_250] : memref<324x256xbf16, #tpu.memory_space<vmem>>, vector<4x256xbf16>
    tpu.vector_store %arg5[%c228, %c0_250], %172 {strides = array<i32>} : memref<324x256xbf16, #tpu.memory_space<vmem>>, vector<4x256xbf16>,
    %c0_251 = arith.constant 0 : index
    %c0_252 = arith.constant 0 : index
    %c0_253 = arith.constant 0 : index
    %c196_254 = arith.constant 196 : index
    %174 = vector.load %arg2[%c0_251, %c0_252, %c0_253, %c196_254] : memref<1x1x4x640xbf16, #tpu.memory_space<vmem>>, vector<1x1x4x256xbf16>
    %175 = vector.shape_cast %174 : vector<1x1x4x256xbf16> to vector<4x256xbf16>
    %c232 = arith.constant 232 : index
    %c0_255 = arith.constant 0 : index
    %176 = vector.load %arg5[%c232, %c0_255] : memref<324x256xbf16, #tpu.memory_space<vmem>>, vector<4x256xbf16>
    tpu.vector_store %arg5[%c232, %c0_255], %175 {strides = array<i32>} : memref<324x256xbf16, #tpu.memory_space<vmem>>, vector<4x256xbf16>,
    %c0_256 = arith.constant 0 : index
    %c0_257 = arith.constant 0 : index
    %c0_258 = arith.constant 0 : index
    %c197 = arith.constant 197 : index
    %177 = vector.load %arg2[%c0_256, %c0_257, %c0_258, %c197] : memref<1x1x4x640xbf16, #tpu.memory_space<vmem>>, vector<1x1x4x256xbf16>
    %178 = vector.shape_cast %177 : vector<1x1x4x256xbf16> to vector<4x256xbf16>
    %c236 = arith.constant 236 : index
    %c0_259 = arith.constant 0 : index
    %179 = vector.load %arg5[%c236, %c0_259] : memref<324x256xbf16, #tpu.memory_space<vmem>>, vector<4x256xbf16>
    tpu.vector_store %arg5[%c236, %c0_259], %178 {strides = array<i32>} : memref<324x256xbf16, #tpu.memory_space<vmem>>, vector<4x256xbf16>,
    %c0_260 = arith.constant 0 : index
    %c0_261 = arith.constant 0 : index
    %c0_262 = arith.constant 0 : index
    %c198 = arith.constant 198 : index
    %180 = vector.load %arg2[%c0_260, %c0_261, %c0_262, %c198] : memref<1x1x4x640xbf16, #tpu.memory_space<vmem>>, vector<1x1x4x256xbf16>
    %181 = vector.shape_cast %180 : vector<1x1x4x256xbf16> to vector<4x256xbf16>
    %c240 = arith.constant 240 : index
    %c0_263 = arith.constant 0 : index
    %182 = vector.load %arg5[%c240, %c0_263] : memref<324x256xbf16, #tpu.memory_space<vmem>>, vector<4x256xbf16>
    tpu.vector_store %arg5[%c240, %c0_263], %181 {strides = array<i32>} : memref<324x256xbf16, #tpu.memory_space<vmem>>, vector<4x256xbf16>,
    %c0_264 = arith.constant 0 : index
    %c0_265 = arith.constant 0 : index
    %c0_266 = arith.constant 0 : index
    %c199 = arith.constant 199 : index
    %183 = vector.load %arg2[%c0_264, %c0_265, %c0_266, %c199] : memref<1x1x4x640xbf16, #tpu.memory_space<vmem>>, vector<1x1x4x256xbf16>
    %184 = vector.shape_cast %183 : vector<1x1x4x256xbf16> to vector<4x256xbf16>
    %c244 = arith.constant 244 : index
    %c0_267 = arith.constant 0 : index
    %185 = vector.load %arg5[%c244, %c0_267] : memref<324x256xbf16, #tpu.memory_space<vmem>>, vector<4x256xbf16>
    tpu.vector_store %arg5[%c244, %c0_267], %184 {strides = array<i32>} : memref<324x256xbf16, #tpu.memory_space<vmem>>, vector<4x256xbf16>,
    %c0_268 = arith.constant 0 : index
    %c0_269 = arith.constant 0 : index
    %c0_270 = arith.constant 0 : index
    %c200_271 = arith.constant 200 : index
    %186 = vector.load %arg2[%c0_268, %c0_269, %c0_270, %c200_271] : memref<1x1x4x640xbf16, #tpu.memory_space<vmem>>, vector<1x1x4x256xbf16>
    %187 = vector.shape_cast %186 : vector<1x1x4x256xbf16> to vector<4x256xbf16>
    %c248 = arith.constant 248 : index
    %c0_272 = arith.constant 0 : index
    %188 = vector.load %arg5[%c248, %c0_272] : memref<324x256xbf16, #tpu.memory_space<vmem>>, vector<4x256xbf16>
    tpu.vector_store %arg5[%c248, %c0_272], %187 {strides = array<i32>} : memref<324x256xbf16, #tpu.memory_space<vmem>>, vector<4x256xbf16>,
    %c0_273 = arith.constant 0 : index
    %c0_274 = arith.constant 0 : index
    %c0_275 = arith.constant 0 : index
    %c224_276 = arith.constant 224 : index
    %189 = vector.load %arg2[%c0_273, %c0_274, %c0_275, %c224_276] : memref<1x1x4x640xbf16, #tpu.memory_space<vmem>>, vector<1x1x4x256xbf16>
    %190 = vector.shape_cast %189 : vector<1x1x4x256xbf16> to vector<4x256xbf16>
    %c252 = arith.constant 252 : index
    %c0_277 = arith.constant 0 : index
    %191 = vector.load %arg5[%c252, %c0_277] : memref<324x256xbf16, #tpu.memory_space<vmem>>, vector<4x256xbf16>
    tpu.vector_store %arg5[%c252, %c0_277], %190 {strides = array<i32>} : memref<324x256xbf16, #tpu.memory_space<vmem>>, vector<4x256xbf16>,
    %c0_278 = arith.constant 0 : index
    %c0_279 = arith.constant 0 : index
    %c0_280 = arith.constant 0 : index
    %c225 = arith.constant 225 : index
    %192 = vector.load %arg2[%c0_278, %c0_279, %c0_280, %c225] : memref<1x1x4x640xbf16, #tpu.memory_space<vmem>>, vector<1x1x4x256xbf16>
    %193 = vector.shape_cast %192 : vector<1x1x4x256xbf16> to vector<4x256xbf16>
    %c256 = arith.constant 256 : index
    %c0_281 = arith.constant 0 : index
    %194 = vector.load %arg5[%c256, %c0_281] : memref<324x256xbf16, #tpu.memory_space<vmem>>, vector<4x256xbf16>
    tpu.vector_store %arg5[%c256, %c0_281], %193 {strides = array<i32>} : memref<324x256xbf16, #tpu.memory_space<vmem>>, vector<4x256xbf16>,
    %c0_282 = arith.constant 0 : index
    %c0_283 = arith.constant 0 : index
    %c0_284 = arith.constant 0 : index
    %c226 = arith.constant 226 : index
    %195 = vector.load %arg2[%c0_282, %c0_283, %c0_284, %c226] : memref<1x1x4x640xbf16, #tpu.memory_space<vmem>>, vector<1x1x4x256xbf16>
    %196 = vector.shape_cast %195 : vector<1x1x4x256xbf16> to vector<4x256xbf16>
    %c260 = arith.constant 260 : index
    %c0_285 = arith.constant 0 : index
    %197 = vector.load %arg5[%c260, %c0_285] : memref<324x256xbf16, #tpu.memory_space<vmem>>, vector<4x256xbf16>
    tpu.vector_store %arg5[%c260, %c0_285], %196 {strides = array<i32>} : memref<324x256xbf16, #tpu.memory_space<vmem>>, vector<4x256xbf16>,
    %c0_286 = arith.constant 0 : index
    %c0_287 = arith.constant 0 : index
    %c0_288 = arith.constant 0 : index
    %c227 = arith.constant 227 : index
    %198 = vector.load %arg2[%c0_286, %c0_287, %c0_288, %c227] : memref<1x1x4x640xbf16, #tpu.memory_space<vmem>>, vector<1x1x4x256xbf16>
    %199 = vector.shape_cast %198 : vector<1x1x4x256xbf16> to vector<4x256xbf16>
    %c264 = arith.constant 264 : index
    %c0_289 = arith.constant 0 : index
    %200 = vector.load %arg5[%c264, %c0_289] : memref<324x256xbf16, #tpu.memory_space<vmem>>, vector<4x256xbf16>
    tpu.vector_store %arg5[%c264, %c0_289], %199 {strides = array<i32>} : memref<324x256xbf16, #tpu.memory_space<vmem>>, vector<4x256xbf16>,
    %c0_290 = arith.constant 0 : index
    %c0_291 = arith.constant 0 : index
    %c0_292 = arith.constant 0 : index
    %c228_293 = arith.constant 228 : index
    %201 = vector.load %arg2[%c0_290, %c0_291, %c0_292, %c228_293] : memref<1x1x4x640xbf16, #tpu.memory_space<vmem>>, vector<1x1x4x256xbf16>
    %202 = vector.shape_cast %201 : vector<1x1x4x256xbf16> to vector<4x256xbf16>
    %c268 = arith.constant 268 : index
    %c0_294 = arith.constant 0 : index
    %203 = vector.load %arg5[%c268, %c0_294] : memref<324x256xbf16, #tpu.memory_space<vmem>>, vector<4x256xbf16>
    tpu.vector_store %arg5[%c268, %c0_294], %202 {strides = array<i32>} : memref<324x256xbf16, #tpu.memory_space<vmem>>, vector<4x256xbf16>,
    %c0_295 = arith.constant 0 : index
    %c0_296 = arith.constant 0 : index
    %c0_297 = arith.constant 0 : index
    %c229 = arith.constant 229 : index
    %204 = vector.load %arg2[%c0_295, %c0_296, %c0_297, %c229] : memref<1x1x4x640xbf16, #tpu.memory_space<vmem>>, vector<1x1x4x256xbf16>
    %205 = vector.shape_cast %204 : vector<1x1x4x256xbf16> to vector<4x256xbf16>
    %c272 = arith.constant 272 : index
    %c0_298 = arith.constant 0 : index
    %206 = vector.load %arg5[%c272, %c0_298] : memref<324x256xbf16, #tpu.memory_space<vmem>>, vector<4x256xbf16>
    tpu.vector_store %arg5[%c272, %c0_298], %205 {strides = array<i32>} : memref<324x256xbf16, #tpu.memory_space<vmem>>, vector<4x256xbf16>,
    %c0_299 = arith.constant 0 : index
    %c0_300 = arith.constant 0 : index
    %c0_301 = arith.constant 0 : index
    %c230 = arith.constant 230 : index
    %207 = vector.load %arg2[%c0_299, %c0_300, %c0_301, %c230] : memref<1x1x4x640xbf16, #tpu.memory_space<vmem>>, vector<1x1x4x256xbf16>
    %208 = vector.shape_cast %207 : vector<1x1x4x256xbf16> to vector<4x256xbf16>
    %c276 = arith.constant 276 : index
    %c0_302 = arith.constant 0 : index
    %209 = vector.load %arg5[%c276, %c0_302] : memref<324x256xbf16, #tpu.memory_space<vmem>>, vector<4x256xbf16>
    tpu.vector_store %arg5[%c276, %c0_302], %208 {strides = array<i32>} : memref<324x256xbf16, #tpu.memory_space<vmem>>, vector<4x256xbf16>,
    %c0_303 = arith.constant 0 : index
    %c0_304 = arith.constant 0 : index
    %c0_305 = arith.constant 0 : index
    %c231 = arith.constant 231 : index
    %210 = vector.load %arg2[%c0_303, %c0_304, %c0_305, %c231] : memref<1x1x4x640xbf16, #tpu.memory_space<vmem>>, vector<1x1x4x256xbf16>
    %211 = vector.shape_cast %210 : vector<1x1x4x256xbf16> to vector<4x256xbf16>
    %c280 = arith.constant 280 : index
    %c0_306 = arith.constant 0 : index
    %212 = vector.load %arg5[%c280, %c0_306] : memref<324x256xbf16, #tpu.memory_space<vmem>>, vector<4x256xbf16>
    tpu.vector_store %arg5[%c280, %c0_306], %211 {strides = array<i32>} : memref<324x256xbf16, #tpu.memory_space<vmem>>, vector<4x256xbf16>,
    %c0_307 = arith.constant 0 : index
    %c0_308 = arith.constant 0 : index
    %c0_309 = arith.constant 0 : index
    %c232_310 = arith.constant 232 : index
    %213 = vector.load %arg2[%c0_307, %c0_308, %c0_309, %c232_310] : memref<1x1x4x640xbf16, #tpu.memory_space<vmem>>, vector<1x1x4x256xbf16>
    %214 = vector.shape_cast %213 : vector<1x1x4x256xbf16> to vector<4x256xbf16>
    %c284 = arith.constant 284 : index
    %c0_311 = arith.constant 0 : index
    %215 = vector.load %arg5[%c284, %c0_311] : memref<324x256xbf16, #tpu.memory_space<vmem>>, vector<4x256xbf16>
    tpu.vector_store %arg5[%c284, %c0_311], %214 {strides = array<i32>} : memref<324x256xbf16, #tpu.memory_space<vmem>>, vector<4x256xbf16>,
    %c0_312 = arith.constant 0 : index
    %c0_313 = arith.constant 0 : index
    %c0_314 = arith.constant 0 : index
    %c256_315 = arith.constant 256 : index
    %216 = vector.load %arg2[%c0_312, %c0_313, %c0_314, %c256_315] : memref<1x1x4x640xbf16, #tpu.memory_space<vmem>>, vector<1x1x4x256xbf16>
    %217 = vector.shape_cast %216 : vector<1x1x4x256xbf16> to vector<4x256xbf16>
    %c288 = arith.constant 288 : index
    %c0_316 = arith.constant 0 : index
    %218 = vector.load %arg5[%c288, %c0_316] : memref<324x256xbf16, #tpu.memory_space<vmem>>, vector<4x256xbf16>
    tpu.vector_store %arg5[%c288, %c0_316], %217 {strides = array<i32>} : memref<324x256xbf16, #tpu.memory_space<vmem>>, vector<4x256xbf16>,
    %c0_317 = arith.constant 0 : index
    %c0_318 = arith.constant 0 : index
    %c0_319 = arith.constant 0 : index
    %c257 = arith.constant 257 : index
    %219 = vector.load %arg2[%c0_317, %c0_318, %c0_319, %c257] : memref<1x1x4x640xbf16, #tpu.memory_space<vmem>>, vector<1x1x4x256xbf16>
    %220 = vector.shape_cast %219 : vector<1x1x4x256xbf16> to vector<4x256xbf16>
    %c292 = arith.constant 292 : index
    %c0_320 = arith.constant 0 : index
    %221 = vector.load %arg5[%c292, %c0_320] : memref<324x256xbf16, #tpu.memory_space<vmem>>, vector<4x256xbf16>
    tpu.vector_store %arg5[%c292, %c0_320], %220 {strides = array<i32>} : memref<324x256xbf16, #tpu.memory_space<vmem>>, vector<4x256xbf16>,
    %c0_321 = arith.constant 0 : index
    %c0_322 = arith.constant 0 : index
    %c0_323 = arith.constant 0 : index
    %c258 = arith.constant 258 : index
    %222 = vector.load %arg2[%c0_321, %c0_322, %c0_323, %c258] : memref<1x1x4x640xbf16, #tpu.memory_space<vmem>>, vector<1x1x4x256xbf16>
    %223 = vector.shape_cast %222 : vector<1x1x4x256xbf16> to vector<4x256xbf16>
    %c296 = arith.constant 296 : index
    %c0_324 = arith.constant 0 : index
    %224 = vector.load %arg5[%c296, %c0_324] : memref<324x256xbf16, #tpu.memory_space<vmem>>, vector<4x256xbf16>
    tpu.vector_store %arg5[%c296, %c0_324], %223 {strides = array<i32>} : memref<324x256xbf16, #tpu.memory_space<vmem>>, vector<4x256xbf16>,
    %c0_325 = arith.constant 0 : index
    %c0_326 = arith.constant 0 : index
    %c0_327 = arith.constant 0 : index
    %c259 = arith.constant 259 : index
    %225 = vector.load %arg2[%c0_325, %c0_326, %c0_327, %c259] : memref<1x1x4x640xbf16, #tpu.memory_space<vmem>>, vector<1x1x4x256xbf16>
    %226 = vector.shape_cast %225 : vector<1x1x4x256xbf16> to vector<4x256xbf16>
    %c300 = arith.constant 300 : index
    %c0_328 = arith.constant 0 : index
    %227 = vector.load %arg5[%c300, %c0_328] : memref<324x256xbf16, #tpu.memory_space<vmem>>, vector<4x256xbf16>
    tpu.vector_store %arg5[%c300, %c0_328], %226 {strides = array<i32>} : memref<324x256xbf16, #tpu.memory_space<vmem>>, vector<4x256xbf16>,
    %c0_329 = arith.constant 0 : index
    %c0_330 = arith.constant 0 : index
    %c0_331 = arith.constant 0 : index
    %c260_332 = arith.constant 260 : index
    %228 = vector.load %arg2[%c0_329, %c0_330, %c0_331, %c260_332] : memref<1x1x4x640xbf16, #tpu.memory_space<vmem>>, vector<1x1x4x256xbf16>
    %229 = vector.shape_cast %228 : vector<1x1x4x256xbf16> to vector<4x256xbf16>
    %c304 = arith.constant 304 : index
    %c0_333 = arith.constant 0 : index
    %230 = vector.load %arg5[%c304, %c0_333] : memref<324x256xbf16, #tpu.memory_space<vmem>>, vector<4x256xbf16>
    tpu.vector_store %arg5[%c304, %c0_333], %229 {strides = array<i32>} : memref<324x256xbf16, #tpu.memory_space<vmem>>, vector<4x256xbf16>,
    %c0_334 = arith.constant 0 : index
    %c0_335 = arith.constant 0 : index
    %c0_336 = arith.constant 0 : index
    %c261 = arith.constant 261 : index
    %231 = vector.load %arg2[%c0_334, %c0_335, %c0_336, %c261] : memref<1x1x4x640xbf16, #tpu.memory_space<vmem>>, vector<1x1x4x256xbf16>
    %232 = vector.shape_cast %231 : vector<1x1x4x256xbf16> to vector<4x256xbf16>
    %c308 = arith.constant 308 : index
    %c0_337 = arith.constant 0 : index
    %233 = vector.load %arg5[%c308, %c0_337] : memref<324x256xbf16, #tpu.memory_space<vmem>>, vector<4x256xbf16>
    tpu.vector_store %arg5[%c308, %c0_337], %232 {strides = array<i32>} : memref<324x256xbf16, #tpu.memory_space<vmem>>, vector<4x256xbf16>,
    %c0_338 = arith.constant 0 : index
    %c0_339 = arith.constant 0 : index
    %c0_340 = arith.constant 0 : index
    %c262 = arith.constant 262 : index
    %234 = vector.load %arg2[%c0_338, %c0_339, %c0_340, %c262] : memref<1x1x4x640xbf16, #tpu.memory_space<vmem>>, vector<1x1x4x256xbf16>
    %235 = vector.shape_cast %234 : vector<1x1x4x256xbf16> to vector<4x256xbf16>
    %c312 = arith.constant 312 : index
    %c0_341 = arith.constant 0 : index
    %236 = vector.load %arg5[%c312, %c0_341] : memref<324x256xbf16, #tpu.memory_space<vmem>>, vector<4x256xbf16>
    tpu.vector_store %arg5[%c312, %c0_341], %235 {strides = array<i32>} : memref<324x256xbf16, #tpu.memory_space<vmem>>, vector<4x256xbf16>,
    %c0_342 = arith.constant 0 : index
    %c0_343 = arith.constant 0 : index
    %c0_344 = arith.constant 0 : index
    %c263 = arith.constant 263 : index
    %237 = vector.load %arg2[%c0_342, %c0_343, %c0_344, %c263] : memref<1x1x4x640xbf16, #tpu.memory_space<vmem>>, vector<1x1x4x256xbf16>
    %238 = vector.shape_cast %237 : vector<1x1x4x256xbf16> to vector<4x256xbf16>
    %c316 = arith.constant 316 : index
    %c0_345 = arith.constant 0 : index
    %239 = vector.load %arg5[%c316, %c0_345] : memref<324x256xbf16, #tpu.memory_space<vmem>>, vector<4x256xbf16>
    tpu.vector_store %arg5[%c316, %c0_345], %238 {strides = array<i32>} : memref<324x256xbf16, #tpu.memory_space<vmem>>, vector<4x256xbf16>,
    %c0_346 = arith.constant 0 : index
    %c0_347 = arith.constant 0 : index
    %c0_348 = arith.constant 0 : index
    %c264_349 = arith.constant 264 : index
    %240 = vector.load %arg2[%c0_346, %c0_347, %c0_348, %c264_349] : memref<1x1x4x640xbf16, #tpu.memory_space<vmem>>, vector<1x1x4x256xbf16>
    %241 = vector.shape_cast %240 : vector<1x1x4x256xbf16> to vector<4x256xbf16>
    %c320 = arith.constant 320 : index
    %c0_350 = arith.constant 0 : index
    %242 = vector.load %arg5[%c320, %c0_350] : memref<324x256xbf16, #tpu.memory_space<vmem>>, vector<4x256xbf16>
    tpu.vector_store %arg5[%c320, %c0_350], %241 {strides = array<i32>} : memref<324x256xbf16, #tpu.memory_space<vmem>>, vector<4x256xbf16>,
    %c0_351 = arith.constant 0 : index
    %c0_352 = arith.constant 0 : index
    %243 = vector.load %arg3[%c0_351, %c0_352] : memref<24x324xbf16, #tpu.memory_space<vmem>>, vector<24x324xbf16>
    %c0_353 = arith.constant 0 : index
    %c0_354 = arith.constant 0 : index
    %244 = vector.load %arg5[%c0_353, %c0_354] : memref<324x256xbf16, #tpu.memory_space<vmem>>, vector<324x256xbf16>
    %cst = arith.constant dense<0.000000e+00> : vector<24x256xf32>
    %245 = tpu.matmul %243, %244, %cst {dimension_numbers = #tpu.dot_dimension_numbers<[1], [0], [0], [1], [0, 0, 1, 1], [], []>} : vector<24x324xbf16>, vector<324x256xbf16>, vector<24x256xf32> -> vector<24x256xf32>
    %c0_355 = arith.constant 0 : index
    %c0_356 = arith.constant 0 : index
    %c0_357 = arith.constant 0 : index
    %246 = vector.load %arg4[%c0_355, %c0_356, %c0_357] : memref<1x24x256xf32, #tpu.memory_space<vmem>>, vector<1x24x256xf32>
    %247 = vector.shape_cast %246 : vector<1x24x256xf32> to vector<24x256xf32>
    %248 = vector.shape_cast %245 : vector<24x256xf32> to vector<1x24x256xf32>
    tpu.vector_store %arg4[%c0_355, %c0_356, %c0_357], %248 {strides = array<i32>} : memref<1x24x256xf32, #tpu.memory_space<vmem>>, vector<1x24x256xf32>,
    return
  }
  func.func @transform_0(%arg0: i32, %arg1: i32) -> (i32, i32, i32, i32) {
    %c0_i32 = arith.constant 0 : i32
    %c0_i32_0 = arith.constant 0 : i32
    %c0_i32_1 = arith.constant 0 : i32
    return %arg0, %arg1, %c0_i32, %c0_i32_0 : i32, i32, i32, i32
  }
  func.func @transform_1(%arg0: i32, %arg1: i32) -> (i32, i32) {
    %c0_i32 = arith.constant 0 : i32
    %c0_i32_0 = arith.constant 0 : i32
    %c0_i32_1 = arith.constant 0 : i32
    return %c0_i32, %c0_i32_0 : i32, i32
  }
  func.func @transform_2(%arg0: i32, %arg1: i32) -> (i32, i32, i32) {
    %c0_i32 = arith.constant 0 : i32
    %c0_i32_0 = arith.constant 0 : i32
    return %arg0, %c0_i32, %arg1 : i32, i32, i32
  }
}

</mosaic_0001>

<bundles_post_ra>
// kernel: tpu_custom_call.1
= control target key start
LH: loop header
LB: loop body
LE: loop exit
PB: predicated region body
PF: predicated region fallthrough
CT: control target
= control target key end

     0   :  { %s3405_s0 = inlined_call_operand.hbm [shape: bf16[2,2,4,640], index: 0, kind: input, shape index: {}]   ;;  %s3406_s1 = inlined_call_operand.hbm [shape: bf16[24,324], index: 1, kind: input, shape index: {}]   ;;  %s3407_s2 = inlined_call_operand.hbm [shape: f32[2,24,512], index: 2, kind: output, shape index: {}]  }
   0x1   :  { %3467 = sst [smem:[#allocation14_spill]] %s3406_s1 }
   0x2   :  { %7 = vsyncpa [#allocation4], 0 }
   0x3   :  { %9 = vsyncpa [#allocation4 + $0x1], 0 }
   0x4   :  { %10 = vsyncpa [#allocation7], 0 }
   0x5   :  { %11 = vsyncpa [#allocation5], 0 }
   0x6   :  { %13 = vsyncpa [#allocation5 + $0x1], 0  ;;  %s2741_s9 = smov 0   ;;  %s2743_s10 = smov 0  }
   0x7   :  { %s2745_s11 = smov 0   ;;  %s2747_s12 = smov 0  }
   0x8   :  { %s2749_s13 = smov 0   ;;  %s2751_s14 = smov 0  }
   0x9   :  { %s2753_s15 = smov 0   ;;  %s2755_s16 = smov 0  }
   0xa LB: > { %s2142_s17 = sadd.s32 4294967295, %s2683_s16   ;;  %p2144_p0 = scmp.ge.s32.totalorder %s2683_s16, 1  ;;  %s2683_s16 = sphi %s2755_s16, %s19_s16   ;;  %s2679_s15 = sphi %s2753_s15, %s3528_s15   ;;  %s2675_s14 = sphi %s2751_s14, %s3527_s14   ;;  %s2671_s13 = sphi %s2749_s13, %s3526_s13   ;;  %s2667_s12 = sphi %s2747_s12, %s3525_s12   ;;  %s2663_s11 = sphi %s2745_s11, %s3524_s11   ;;  %s2659_s10 = sphi %s2743_s10, %s3523_s10   ;;  %s2655_s9 = sphi %s2741_s9, %s3522_s9  }
   0xb   : > { %p2783_p1 = scmp.eq.s32.totalorder %s2142_s17, 0  ;;  %p113_p2 = scmp.lt.s32.totalorder %s2683_s16, 5 }
   0xc   : > { %s3469_s1 = sld [smem:[#allocation14_spill]]  ;;  %s2685_s23 = smov [#allocation6]  }
   0xd   : > { %p2791_p3 = pnand %p2144_p0, %p113_p2  ;;  %s126_s24 = sshll.u32 %s2685_s23, 4  ;;  %s127_s24 = int_to_ptr.vmem [resolvable:$true] %s126_s24 }
   0xe   : > { %s2686_s25 = smov 192   ;;  %s2687_s26 = smov 12  }
   0xf   : > { %p2400_p4 = pneg %p2791_p3  ;;  %s2143_s27 = sadd.s32 4294967294, %s2683_s16  }
  0x10   : > { %s28_s28 = sadd.s32 1, %s2675_s14  ;;  %s31_s29 = sadd.s32 1, %s2679_s15 }
  0x11   : > { %p2401_p5 = pnand %p2400_p4, %p2783_p1  ;;  %p29_p6 = scmp.ge.s32.totalorder %s28_s28, 2 }
  0x12   : > { %s124_s21 = sshll.u32 %s3469_s1, 4  ;;  %s40_s30 = sadd.s32 1, %s2663_s11  ;;  %s125_s21 = int_to_ptr.hbm [resolvable:$true] %s124_s21 }
  0x13   : > { %2403 = dma.hbm_to_vmem [thread:$0]  (!%p2401_p5), %s125_s21, 576, %s127_s24, [#allocation7], %s2686_s25, %s2686_s25, %s2687_s26  }
  0x14   : > { %p47_p7 = scmp.ne.s32.totalorder %s2663_s11, %s2659_s10  ;;  %s3530_s28 = smov (%p29_p6, %s28_s28), 0 }
  0x15   : > { %3471 = sst [smem:[#allocation12_spill]] %s3530_s28  ;;  %s3532_s29 = smov (!%p29_p6, %s31_s29), %s2679_s15 }
  0x16   : > { %s36_s3 = ssub.s32 %s2675_s14, %s3530_s28  ;;  %p48_p8 = scmp.eq.s32.totalorder %s2683_s16, 0 }
  0x17   : > { %p33_p9 = scmp.ge.s32.totalorder %s3532_s29, 2  ;;  %p53_p10 = scmp.ne.s32.totalorder %s2659_s10, %s2655_s9 }
  0x18   : > { %p100_p11 = scmp.eq.s32.totalorder %s2142_s17, 3  ;;  %p106_p12 = scmp.eq.s32.totalorder %s2143_s27, 3 }
  0x19   : > { %s3534_s29 = smov (%p33_p9, %s3532_s29), 0  ;;  %p2817_p13 = por %p2783_p1, %p53_p10 }
  0x1a   : > { %3472 = sst [smem:[#allocation13_spill]] %s3534_s29  ;;  %p2824_p0 = por %p100_p11, %p47_p7 }
  0x1b   : > { %s35_s6 = ssub.s32 %s2679_s15, %s3534_s29  ;;  %p2830_p2 = por %p106_p12, %p53_p10 }
  0x1c   : > { %s37_s8 = sor.u32 %s36_s3, %s35_s6  ;;  %p49_p4 = por %p48_p8, %p47_p7 }
  0x1d   : > { %p38_p5 = scmp.eq.s32.totalorder %s37_s8, 0  ;;  %s140_s17 = sand.u32 1, %s2663_s11  }
  0x1e   : > { %p2413_p6 = scmp.lt.s32.totalorder %s2683_s16, 4  ;;  %s2386_s19 = smul.u32 10, %s140_s17 }
  0x1f   : > { %s2840_s20 = scalar_select %p38_p5, %s2663_s11, %s40_s30  }
  0x20   : > { %s2387_s21 = smul.u32 5, %s2675_s14  ;;  %s144_s24 = scalar_lea.vmem [#allocation3], %s2386_s19 }
  0x21   : > { %s2388_s23 = smul.u32 10, %s2679_s15  ;;  %s155_s25 = sshll.u32 %s144_s24, 4  ;;  %s156_s25 = int_to_ptr.vmem [resolvable:$true] %s155_s25 }
  0x22   : > { %p2405_p9 = pnand %p2413_p6, %p49_p4  ;;  %s141_s6 = scalar_lea.sflag [#allocation4], %s140_s17 }
  0x23   : > { %s149_s26 = sadd.s32 %s2388_s23, %s2387_s21  ;;  %164 = sbr.rel (%p2791_p3) target bundleno = 1030 (0x406), region = 28 }
  0x24   : > { %s2147_s27 = sshll.u32 %s149_s26, 1  ;;  %s2850_s30 = sand.u32 (!%p2791_p3), 1, %s2659_s10  }
  0x25   : > { %s151_s28 = scalar_lea.hbm %s3405_s0, %s2147_s27  ;;  %s2389_s8 = smul.u32 (!%p2791_p3), 10, %s2850_s30 }
  0x26   : > { %s153_s3 = sshll.u32 %s151_s28, 4  ;;  %s167_s19 = scalar_lea.sflag (!%p2791_p3), [#allocation4], %s2850_s30  ;;  %s154_s3 = int_to_ptr.hbm [resolvable:$true] %s153_s3 }
  0x27   : > { %2407 = dma.hbm_to_vmem [thread:$0]  (!%p2405_p9), %s154_s3, 160, %s156_s25, %s141_s6  }
  0x28   : > { %s2854_s21 = scalar_lea.vmem [#allocation3], %s2389_s8 }
  0x29   : > { %2642 = dma.done.wait (%p2817_p13), %s167_s19, 160  }
  0x2a   : > { %2644 = vsyncadd (%p2817_p13), %s167_s19, 4294967136 }
  0x2b   : > { %2646 = dma.done.wait (%p2783_p1), [#allocation7], 576  }
  0x2c   : > { %2648 = vsyncadd (%p2783_p1), [#allocation7], 4294966720  ;;  %v199_v0 = vld [vmem:[%s2854_s21] sm:$0xf]  ;;  %s2688_s1 = smov 127   ;;  %s3420_s18 = smov 126  }
  0x2d   : > { %201 = vst [vmem:[#allocation1] ss:$2 sm:$0xff] %v199_v0  ;;  %v205_v1 = vld [vmem:[%s2854_s21] sm:$0x3f]  ;;  %s3418_s22 = smov 125   ;;  %s3416_s28 = smov 124  }
  0x2e   : > { %v225_v3 = vld [vmem:[%s2854_s21] sm:$0x3f]  ;;  %s3414_s29 = smov 123   ;;  %s3412_s4 = smov 122   ;;  %vm221_vm0 = vcmask 1039360   ;;  %vm3453_vm1 = vcmask 1031168  }
  0x2f   : > { %v243_v6 = vld [vmem:[%s2854_s21] sm:$0x3f]  ;;  %s3410_s17 = smov 121   ;;  %s2695_s23 = smov 120   ;;  %vm219_vm2 = vcmask 1043456   ;;  %vm3447_vm3 = vcmask 1014784  }
  0x30   : > { %v262_v9 = vld [vmem:[%s2854_s21] sm:$0x3f]  ;;  %s2696_s24 = smov 96   ;;  %s2697_s25 = smov 95   ;;  %vm3450_vm4 = vcmask 1022976   ;;  %vm3446_vm5 = vcmask 1006592  }
  0x31   : > { %v280_v12 = vld [vmem:[%s2854_s21] sm:$0x3f]  ;;  %s2698_s26 = smov 94   ;;  %s2699_s27 = smov 93   ;;  %vm3443_vm6 = vcmask 998400   ;;  %vm3440_vm7 = vcmask 990208  }
  0x32   : > { %v299_v15 = vld [vmem:[%s2854_s21] sm:$0x3f]  ;;  %s2700_s3 = smov 92   ;;  %s2701_s6 = smov 91   ;;  %vm3466_vm8 = vcmask 982016   ;;  %vm369_vm9 = vcmask 785408  }
  0x33   : > { %v317_v18 = vld [vmem:[%s2854_s21] sm:$0x3f]  ;;  %s2702_s8 = smov 90   ;;  %s2703_s19 = smov 89   ;;  %vm387_vm10 = vcmask 777216   ;;  %vm406_vm11 = vcmask 769024  }
  0x34   : > { %v202_v2 = vld.sshfl [vmem:[#allocation1] sm:$0xff pattern:$0x75643120]  ;;  %v336_v21 = vld [vmem:[%s2854_s21] sm:$0x3f]  ;;  %vm424_vm12 = vcmask 760832  }
  0x35   : > { %208 = vst [vmem:[#allocation1 + $0x1] ss:$2 sm:$0xff] %v205_v1  ;;  %v354_v24 = vld [vmem:[%s2854_s21] sm:$0x3f]  ;;  %vm443_vm13 = vcmask 752640   ;;  %vm461_vm14 = vcmask 744448  }
  0x36   : > { %204 = vst [vmem:[#allocation2] sm:$0x33] %v202_v2  ;;  %v373_v27 = vld [vmem:[%s2854_s21] sm:$0x3f]  ;;  %vm480_vm15 = vcmask 736256  }
  0x37   : > { %v391_v30 = vld [vmem:[%s2854_s21] sm:$0x3f] }
  0x38   : > { %v410_v33 = vld [vmem:[%s2854_s21] sm:$0x3f] }
  0x39   : > { %v428_v36 = vld [vmem:[%s2854_s21] sm:$0x3f] }
  0x3a   : > { %v447_v39 = vld [vmem:[%s2854_s21] sm:$0x3f] }
  0x3b   : > { %v465_v42 = vld [vmem:[%s2854_s21] sm:$0x3f] }
  0x3c   : > { %v209_v4 = vld.sshfl [vmem:[#allocation1] sm:$0xff pattern:$0x75643120]  ;;  %v211_v5 = vld.sshfl [vmem:[#allocation1 + $0x8] sm:$0xff pattern:$0x75643120] }
  0x3d   : > { %213 = vrot.lane.b32.xlu0 %v209_v4, %s2688_s1  ;;  %227 = vst [vmem:[#allocation1] ss:$2 sm:$0xff] %v225_v3  ;;  %v484_v45 = vld [vmem:[%s2854_s21] sm:$0x3f] }
  0x3e   : > { %v502_v48 = vld [vmem:[%s2854_s21] sm:$0x3f] }
  0x3f   : > { %v521_v51 = vld [vmem:[%s2854_s21] sm:$0x3f] }
  0x40   : > { %v539_v54 = vld [vmem:[%s2854_s21] sm:$0x3f] }
  0x41   : > { %v558_v57 = vld [vmem:[%s2854_s21] sm:$0x3f] }
  0x42   : > { %v576_v62 = vld [vmem:[%s2854_s21] sm:$0x3f] }
  0x44   : > { %v228_v7 = vld.sshfl [vmem:[#allocation1] sm:$0xff pattern:$0x75643120]  ;;  %v230_v8 = vld.sshfl [vmem:[#allocation1 + $0x8] sm:$0xff pattern:$0x75643120] }
  0x45   : > { %232 = vrot.lane.b32.xlu1 %v228_v7, %s3420_s18  ;;  %215 = vrot.lane.b32.xlu0 %v211_v5, %s2688_s1  ;;  %246 = vst [vmem:[#allocation1 + $0x1] ss:$2 sm:$0xff] %v243_v6 }
  0x4c   : > { %v247_v10 = vld.sshfl [vmem:[#allocation1] sm:$0xff pattern:$0x75643120]  ;;  %v249_v11 = vld.sshfl [vmem:[#allocation1 + $0x8] sm:$0xff pattern:$0x75643120] }
  0x4d   : > { %234 = vrot.lane.b32.xlu1 %v230_v8, %s3420_s18  ;;  %264 = vst [vmem:[#allocation1] ss:$2 sm:$0xff] %v262_v9  ;;  %251 = vrot.lane.b32.xlu2 %v247_v10, %s3418_s22  ;;  %s3424_s18 = smov 60  }
  0x54   : > { %v267_v13 = vld.sshfl [vmem:[#allocation1 + $0x8] sm:$0xff pattern:$0x75643120]  ;;  %v265_v14 = vld.sshfl [vmem:[#allocation1] sm:$0xff pattern:$0x75643120] }
  0x55   : > { %271 = vrot.lane.b32.xlu1 %v267_v13, %s3416_s28  ;;  %269 = vrot.lane.b32.xlu0 %v265_v14, %s3416_s28  ;;  %283 = vst [vmem:[#allocation1 + $0x1] ss:$2 sm:$0xff] %v280_v12  ;;  %s2707_s28 = smov 62   ;;  %v595_v12 = vld [vmem:[%s2854_s21] sm:$0x3f] }
  0x56   : > { %253 = vrot.lane.b32.xlu2 %v249_v11, %s3418_s22  ;;  %s3422_s22 = smov 61  }
  0x5c   : > { %v286_v16 = vld.sshfl [vmem:[#allocation1 + $0x8] sm:$0xff pattern:$0x75643120]  ;;  %v284_v17 = vld.sshfl [vmem:[#allocation1] sm:$0xff pattern:$0x75643120] }
  0x5d   : > { %290 = vrot.lane.b32.xlu0 %v286_v16, %s3414_s29  ;;  %301 = vst [vmem:[#allocation1] ss:$2 sm:$0xff] %v299_v15 }
  0x5e   : > { %288 = vrot.lane.b32.xlu2 %v284_v17, %s3414_s29  ;;  %s2706_s29 = smov 63  }
  0x64   : > { %v302_v19 = vld.sshfl [vmem:[#allocation1] sm:$0xff pattern:$0x75643120]  ;;  %v304_v20 = vld.sshfl [vmem:[#allocation1 + $0x8] sm:$0xff pattern:$0x75643120] }
  0x65   : > { %306 = vrot.lane.b32.xlu1 %v302_v19, %s3412_s4  ;;  %320 = vst [vmem:[#allocation1 + $0x1] ss:$2 sm:$0xff] %v317_v18 }
  0x66   : > { %308 = vrot.lane.b32.xlu2 %v304_v20, %s3412_s4  ;;  %s2705_s4 = smov 64  }
  0x6c   : > { %v323_v22 = vld.sshfl [vmem:[#allocation1 + $0x8] sm:$0xff pattern:$0x75643120]  ;;  %v321_v23 = vld.sshfl [vmem:[#allocation1] sm:$0xff pattern:$0x75643120] }
  0x6d   : > { %327 = vrot.lane.b32.xlu1 %v323_v22, %s3410_s17  ;;  %325 = vrot.lane.b32.xlu0 %v321_v23, %s3410_s17  ;;  %338 = vst [vmem:[#allocation1] ss:$2 sm:$0xff] %v336_v21  ;;  %s2704_s17 = smov 88  }
  0x74   : > { %v341_v25 = vld.sshfl [vmem:[#allocation1 + $0x8] sm:$0xff pattern:$0x75643120]  ;;  %v339_v26 = vld.sshfl [vmem:[#allocation1] sm:$0xff pattern:$0x75643120] }
  0x75   : > { %345 = vrot.lane.b32.xlu0 %v341_v25, %s2695_s23  ;;  %357 = vst [vmem:[#allocation1 + $0x1] ss:$2 sm:$0xff] %v354_v24  ;;  %343 = vrot.lane.b32.xlu2 %v339_v26, %s2695_s23  ;;  %v613_v25 = vld [vmem:[%s2854_s21] sm:$0x3f] }
  0x7c   : > { %v358_v28 = vld.sshfl [vmem:[#allocation1] sm:$0xff pattern:$0x75643120]  ;;  %v360_v29 = vld.sshfl [vmem:[#allocation1 + $0x8] sm:$0xff pattern:$0x75643120] }
  0x7d   : > { %362 = vrot.lane.b32.xlu1 %v358_v28, %s2696_s24  ;;  %375 = vst [vmem:[#allocation1] ss:$2 sm:$0xff] %v373_v27  ;;  %364 = vrot.lane.b32.xlu2 %v360_v29, %s2696_s24  ;;  %v632_v29 = vld [vmem:[%s2854_s21] sm:$0x3f] }
  0x84   : > { %v378_v31 = vld.sshfl [vmem:[#allocation1 + $0x8] sm:$0xff pattern:$0x75643120]  ;;  %v376_v32 = vld.sshfl [vmem:[#allocation1] sm:$0xff pattern:$0x75643120] }
  0x85   : > { %382 = vrot.lane.b32.xlu1 %v378_v31, %s2697_s25  ;;  %380 = vrot.lane.b32.xlu0 %v376_v32, %s2697_s25  ;;  %394 = vst [vmem:[#allocation1 + $0x1] ss:$2 sm:$0xff] %v391_v30 }
  0x8c   : > { %v397_v34 = vld.sshfl [vmem:[#allocation1 + $0x8] sm:$0xff pattern:$0x75643120]  ;;  %v395_v35 = vld.sshfl [vmem:[#allocation1] sm:$0xff pattern:$0x75643120] }
  0x8d   : > { %401 = vrot.lane.b32.xlu0 %v397_v34, %s2698_s26  ;;  %412 = vst [vmem:[#allocation1] ss:$2 sm:$0xff] %v410_v33  ;;  %399 = vrot.lane.b32.xlu2 %v395_v35, %s2698_s26 }
  0x94   : > { %v413_v37 = vld.sshfl [vmem:[#allocation1] sm:$0xff pattern:$0x75643120]  ;;  %v415_v38 = vld.sshfl [vmem:[#allocation1 + $0x8] sm:$0xff pattern:$0x75643120] }
  0x95   : > { %417 = vrot.lane.b32.xlu1 %v413_v37, %s2699_s27  ;;  %431 = vst [vmem:[#allocation1 + $0x1] ss:$2 sm:$0xff] %v428_v36  ;;  %419 = vrot.lane.b32.xlu2 %v415_v38, %s2699_s27 }
  0x9c   : > { %v434_v40 = vld.sshfl [vmem:[#allocation1 + $0x8] sm:$0xff pattern:$0x75643120]  ;;  %v432_v41 = vld.sshfl [vmem:[#allocation1] sm:$0xff pattern:$0x75643120] }
  0x9d   : > { %438 = vrot.lane.b32.xlu1 %v434_v40, %s2700_s3  ;;  %436 = vrot.lane.b32.xlu0 %v432_v41, %s2700_s3  ;;  %449 = vst [vmem:[#allocation1] ss:$2 sm:$0xff] %v447_v39  ;;  %v650_v39 = vld [vmem:[%s2854_s21] sm:$0x3f] }
  0xa4   : > { %v452_v43 = vld.sshfl [vmem:[#allocation1 + $0x8] sm:$0xff pattern:$0x75643120]  ;;  %v450_v44 = vld.sshfl [vmem:[#allocation1] sm:$0xff pattern:$0x75643120] }
  0xa5   : > { %456 = vrot.lane.b32.xlu0 %v452_v43, %s2701_s6  ;;  %468 = vst [vmem:[#allocation1 + $0x1] ss:$2 sm:$0xff] %v465_v42  ;;  %454 = vrot.lane.b32.xlu2 %v450_v44, %s2701_s6 }
  0xa7   : > { %v252_v7 = vpop.permute.xlu2 %251 }
  0xa8   : > { %v255_v15 = vrot.slane %v252_v7, 4 }
  0xac   : > { %v469_v46 = vld.sshfl [vmem:[#allocation1] sm:$0xff pattern:$0x75643120]  ;;  %v471_v47 = vld.sshfl [vmem:[#allocation1 + $0x8] sm:$0xff pattern:$0x75643120] }
  0xad   : > { %473 = vrot.lane.b32.xlu1 %v469_v46, %s2702_s8  ;;  %486 = vst [vmem:[#allocation1] ss:$2 sm:$0xff] %v484_v45  ;;  %475 = vrot.lane.b32.xlu2 %v471_v47, %s2702_s8 }
  0xaf   : > { %v214_v58 = vpop.permute.xlu0 %213 }
  0xb0   : > { %v217_v63 = vrot.slane %v214_v58, 4  ;;  %v254_v18 = vpop.permute.xlu2 %253 }
  0xb1   : > { %v256_v21 = vrot.slane %v254_v18, 4 }
  0xb3   : > { %v257_v23 = vsel %vm219_vm2, %v255_v15, %v256_v21  ;;  %v724_v15 = vld [vmem:[%s2854_s21] sm:$0x3f] }
  0xb4   : > { %v489_v49 = vld.sshfl [vmem:[#allocation1 + $0x8] sm:$0xff pattern:$0x75643120]  ;;  %v487_v50 = vld.sshfl [vmem:[#allocation1] sm:$0xff pattern:$0x75643120]  ;;  %v259_v26 = vsel %vm3450_vm4, %v252_v7, %v257_v23 }
  0xb5   : > { %493 = vrot.lane.b32.xlu1 %v489_v49, %s2703_s19  ;;  %491 = vrot.lane.b32.xlu0 %v487_v50, %s2703_s19  ;;  %505 = vst [vmem:[#allocation1 + $0x1] ss:$2 sm:$0xff] %v502_v48  ;;  %vm3454_vm4 = vcmask 506880  }
  0xb6   : > { %261 = vst [vmem:[#allocation2 + $0x8] sm:$0xcc] %v259_v26  ;;  %v743_v26 = vld [vmem:[%s2854_s21] sm:$0x3f] }
  0xb7   : > { %v233_v59 = vpop.permute.xlu1 %232  ;;  %v216_v3 = vpop.permute.xlu0 %215 }
  0xb8   : > { %v236_v0 = vrot.slane %v233_v59, 4  ;;  %v218_v5 = vrot.slane %v216_v3, 4  ;;  %v289_v33 = vpop.permute.xlu2 %288 }
  0xb9   : > { %v292_v35 = vrot.slane %v289_v33, 4 }
  0xba   : > { %v220_v8 = vsel %vm219_vm2, %v217_v63, %v218_v5 }
  0xbb   : > { %v222_v10 = vsel %vm221_vm0, %v214_v58, %v220_v8 }
  0xbc   : > { %v508_v52 = vld.sshfl [vmem:[#allocation1 + $0x8] sm:$0xff pattern:$0x75643120]  ;;  %v506_v53 = vld.sshfl [vmem:[#allocation1] sm:$0xff pattern:$0x75643120] }
  0xbd   : > { %512 = vrot.lane.b32.xlu0 %v508_v52, %s2704_s17  ;;  %523 = vst [vmem:[#allocation1] ss:$2 sm:$0xff] %v521_v51  ;;  %510 = vrot.lane.b32.xlu2 %v506_v53, %s2704_s17  ;;  %v669_v52 = vld [vmem:[%s2854_s21] sm:$0x3f] }
  0xbe   : > { %224 = vst [vmem:[#allocation2] sm:$0xcc] %v222_v10 }
  0xbf   : > { %v235_v4 = vpop.permute.xlu1 %234 }
  0xc0   : > { %v237_v6 = vrot.slane %v235_v4, 4  ;;  %v309_v43 = vpop.permute.xlu2 %308 }
  0xc1   : > { %v311_v45 = vrot.slane %v309_v43, 4 }
  0xc2   : > { %v238_v9 = vsel %vm219_vm2, %v236_v0, %v237_v6 }
  0xc3   : > { %v240_v11 = vsel %vm3453_vm1, %v233_v59, %v238_v9  ;;  %vm3455_vm1 = vcmask 498688  }
  0xc4   : > { %v524_v55 = vld.sshfl [vmem:[#allocation1] sm:$0xff pattern:$0x75643120]  ;;  %v526_v56 = vld.sshfl [vmem:[#allocation1 + $0x8] sm:$0xff pattern:$0x75643120] }
  0xc5   : > { %528 = vrot.lane.b32.xlu1 %v524_v55, %s2705_s4  ;;  %542 = vst [vmem:[#allocation1 + $0x1] ss:$2 sm:$0xff] %v539_v54  ;;  %530 = vrot.lane.b32.xlu2 %v526_v56, %s2705_s4  ;;  %v687_v56 = vld [vmem:[%s2854_s21] sm:$0x3f] }
  0xc6   : > { %242 = vst [vmem:[#allocation2 + $0x8] sm:$0x33] %v240_v11 }
  0xc7   : > { %v272_v16 = vpop.permute.xlu1 %271  ;;  %v270_v17 = vpop.permute.xlu0 %269 }
  0xc8   : > { %v274_v19 = vrot.slane %v272_v16, 4  ;;  %v273_v20 = vrot.slane %v270_v17, 4 }
  0xca   : > { %v275_v22 = vsel %vm219_vm2, %v273_v20, %v274_v19 }
  0xcb   : > { %v277_v24 = vsel %vm3447_vm3, %v270_v17, %v275_v22  ;;  %vm554_vm3 = vcmask 515072  }
  0xcc   : > { %v545_v60 = vld.sshfl [vmem:[#allocation1 + $0x8] sm:$0xff pattern:$0x75643120]  ;;  %v543_v61 = vld.sshfl [vmem:[#allocation1] sm:$0xff pattern:$0x75643120] }
  0xcd   : > { %549 = vrot.lane.b32.xlu1 %v545_v60, %s2706_s29  ;;  %547 = vrot.lane.b32.xlu0 %v543_v61, %s2706_s29  ;;  %560 = vst [vmem:[#allocation1] ss:$2 sm:$0xff] %v558_v57 }
  0xce   : > { %279 = vst [vmem:[#allocation2 + $0x10] sm:$0x33] %v277_v24 }
  0xcf   : > { %v291_v32 = vpop.permute.xlu0 %290  ;;  %v344_v60 = vpop.permute.xlu2 %343 }
  0xd0   : > { %v293_v34 = vrot.slane %v291_v32, 4 }
  0xd2   : > { %v294_v37 = vsel %vm219_vm2, %v292_v35, %v293_v34 }
  0xd3   : > { %v296_v38 = vsel %vm3446_vm5, %v289_v33, %v294_v37  ;;  %vm535_vm5 = vcmask 523264  }
  0xd4   : > { %v563_v1 = vld.sshfl [vmem:[#allocation1 + $0x8] sm:$0xff pattern:$0x75643120]  ;;  %v561_v2 = vld.sshfl [vmem:[#allocation1] sm:$0xff pattern:$0x75643120] }
  0xd5   : > { %567 = vrot.lane.b32.xlu0 %v563_v1, %s2707_s28  ;;  %579 = vst [vmem:[#allocation1 + $0x1] ss:$2 sm:$0xff] %v576_v62  ;;  %565 = vrot.lane.b32.xlu2 %v561_v2, %s2707_s28  ;;  %v347_v62 = vrot.slane %v344_v60, 4  ;;  %v706_v2 = vld [vmem:[%s2854_s21] sm:$0x3f] }
  0xd6   : > { %298 = vst [vmem:[#allocation2 + $0x10] sm:$0xcc] %v296_v38 }
  0xd7   : > { %v307_v36 = vpop.permute.xlu1 %306  ;;  %v365_v6 = vpop.permute.xlu2 %364 }
  0xd8   : > { %v310_v40 = vrot.slane %v307_v36, 4  ;;  %v367_v8 = vrot.slane %v365_v6, 4 }
  0xda   : > { %v312_v49 = vsel %vm219_vm2, %v310_v40, %v311_v45 }
  0xdb   : > { %v314_v50 = vsel %vm3443_vm6, %v307_v36, %v312_v49  ;;  %vm517_vm6 = vcmask 719872  }
  0xdc   : > { %v580_v13 = vld.sshfl [vmem:[#allocation1] sm:$0xff pattern:$0x75643120]  ;;  %v582_v14 = vld.sshfl [vmem:[#allocation1 + $0x8] sm:$0xff pattern:$0x75643120] }
  0xdd   : > { %584 = vrot.lane.b32.xlu1 %v580_v13, %s3422_s22  ;;  %597 = vst [vmem:[#allocation1] ss:$2 sm:$0xff] %v595_v12  ;;  %586 = vrot.lane.b32.xlu2 %v582_v14, %s3422_s22  ;;  %s3428_s22 = smov 59  }
  0xde   : > { %316 = vst [vmem:[#allocation2 + $0x18] sm:$0x33] %v314_v50  ;;  %v780_v50 = vld [vmem:[%s2854_s21] sm:$0x3f] }
  0xdf   : > { %v326_v44 = vpop.permute.xlu0 %325  ;;  %v328_v46 = vpop.permute.xlu1 %327 }
  0xe0   : > { %v329_v47 = vrot.slane %v326_v44, 4  ;;  %v330_v48 = vrot.slane %v328_v46, 4 }
  0xe2   : > { %v331_v51 = vsel %vm219_vm2, %v329_v47, %v330_v48 }
  0xe3   : > { %v333_v53 = vsel %vm3440_vm7, %v326_v44, %v331_v51  ;;  %vm498_vm7 = vcmask 728064  }
  0xe4   : > { %v600_v27 = vld.sshfl [vmem:[#allocation1 + $0x8] sm:$0xff pattern:$0x75643120]  ;;  %v598_v28 = vld.sshfl [vmem:[#allocation1] sm:$0xff pattern:$0x75643120] }
  0xe5   : > { %604 = vrot.lane.b32.xlu1 %v600_v27, %s3424_s18  ;;  %602 = vrot.lane.b32.xlu0 %v598_v28, %s3424_s18  ;;  %616 = vst [vmem:[#allocation1 + $0x1] ss:$2 sm:$0xff] %v613_v25  ;;  %s3426_s18 = smov 58  }
  0xe6   : > { %335 = vst [vmem:[#allocation2 + $0x18] sm:$0xcc] %v333_v53 }
  0xe7   : > { %v346_v59 = vpop.permute.xlu0 %345  ;;  %v400_v20 = vpop.permute.xlu2 %399 }
  0xe8   : > { %v348_v61 = vrot.slane %v346_v59, 4  ;;  %v403_v22 = vrot.slane %v400_v20, 4 }
  0xea   : > { %v349_v0 = vsel %vm219_vm2, %v347_v62, %v348_v61 }
  0xeb   : > { %v351_v1 = vsel %vm3466_vm8, %v344_v60, %v349_v0  ;;  %v798_v0 = vld [vmem:[%s2854_s21] sm:$0x3f] }
  0xec   : > { %v619_v30 = vld.sshfl [vmem:[#allocation1 + $0x8] sm:$0xff pattern:$0x75643120]  ;;  %v617_v31 = vld.sshfl [vmem:[#allocation1] sm:$0xff pattern:$0x75643120] }
  0xed   : > { %623 = vrot.lane.b32.xlu0 %v619_v30, %s3428_s22  ;;  %634 = vst [vmem:[#allocation1] ss:$2 sm:$0xff] %v632_v29  ;;  %621 = vrot.lane.b32.xlu2 %v617_v31, %s3428_s22  ;;  %s3434_s22 = smov 56  }
  0xee   : > { %353 = vst [vmem:[#allocation2 + $0x20] sm:$0x33] %v351_v1 }
  0xef   : > { %v363_v63 = vpop.permute.xlu1 %362  ;;  %v420_v30 = vpop.permute.xlu2 %419 }
  0xf0   : > { %v366_v3 = vrot.slane %v363_v63, 4  ;;  %v422_v32 = vrot.slane %v420_v30, 4 }
  0xf2   : > { %v368_v12 = vsel %vm219_vm2, %v366_v3, %v367_v8 }
  0xf3   : > { %v370_v13 = vsel %vm369_vm9, %v363_v63, %v368_v12 }
  0xf4   : > { %v635_v41 = vld.sshfl [vmem:[#allocation1] sm:$0xff pattern:$0x75643120]  ;;  %v637_v42 = vld.sshfl [vmem:[#allocation1 + $0x8] sm:$0xff pattern:$0x75643120] }
  0xf5   : > { %639 = vrot.lane.b32.xlu1 %v635_v41, %s3426_s18  ;;  %653 = vst [vmem:[#allocation1 + $0x1] ss:$2 sm:$0xff] %v650_v39  ;;  %641 = vrot.lane.b32.xlu2 %v637_v42, %s3426_s18  ;;  %s3430_s18 = smov 57   ;;  %v761_v39 = vld [vmem:[%s2854_s21] sm:$0x3f] }
  0xf6   : > { %372 = vst [vmem:[#allocation2 + $0x20] sm:$0xcc] %v370_v13 }
  0xf7   : > { %v381_v7 = vpop.permute.xlu0 %380  ;;  %v383_v9 = vpop.permute.xlu1 %382 }
  0xf8   : > { %v384_v10 = vrot.slane %v381_v7, 4  ;;  %v385_v11 = vrot.slane %v383_v9, 4 }
  0xfa   : > { %v386_v14 = vsel %vm219_vm2, %v384_v10, %v385_v11  ;;  %v817_v10 = vld [vmem:[%s2854_s21] sm:$0x3f] }
  0xfb   : > { %v388_v16 = vsel %vm387_vm10, %v381_v7, %v386_v14 }
  0xfc   : > { %v656_v54 = vld.sshfl [vmem:[#allocation1 + $0x8] sm:$0xff pattern:$0x75643120]  ;;  %v654_v55 = vld.sshfl [vmem:[#allocation1] sm:$0xff pattern:$0x75643120] }
  0xfd   : > { %660 = vrot.lane.b32.xlu1 %v656_v54, %s3430_s18  ;;  %658 = vrot.lane.b32.xlu0 %v654_v55, %s3430_s18  ;;  %671 = vst [vmem:[#allocation1] ss:$2 sm:$0xff] %v669_v52  ;;  %s3432_s18 = smov 32  }
  0xfe   : > { %390 = vst [vmem:[#allocation2 + $0x28] sm:$0x33] %v388_v16 }
  0xff   : > { %v402_v19 = vpop.permute.xlu0 %401  ;;  %v455_v44 = vpop.permute.xlu2 %454 }
 0x100   : > { %v404_v21 = vrot.slane %v402_v19, 4  ;;  %v458_v46 = vrot.slane %v455_v44, 4 }
 0x102   : > { %v405_v24 = vsel %vm219_vm2, %v403_v22, %v404_v21 }
 0x103   : > { %v407_v25 = vsel %vm406_vm11, %v400_v20, %v405_v24  ;;  %v835_v24 = vld [vmem:[%s2854_s21] sm:$0x3f] }
 0x104   : > { %v674_v57 = vld.sshfl [vmem:[#allocation1 + $0x8] sm:$0xff pattern:$0x75643120]  ;;  %v672_v58 = vld.sshfl [vmem:[#allocation1] sm:$0xff pattern:$0x75643120] }
 0x105   : > { %678 = vrot.lane.b32.xlu0 %v674_v57, %s3434_s22  ;;  %690 = vst [vmem:[#allocation1 + $0x1] ss:$2 sm:$0xff] %v687_v56  ;;  %676 = vrot.lane.b32.xlu2 %v672_v58, %s3434_s22  ;;  %s3436_s22 = smov 30  }
 0x106   : > { %409 = vst [vmem:[#allocation2 + $0x28] sm:$0xcc] %v407_v25 }
 0x107   : > { %v418_v23 = vpop.permute.xlu1 %417  ;;  %v476_v54 = vpop.permute.xlu2 %475 }
 0x108   : > { %v421_v27 = vrot.slane %v418_v23, 4  ;;  %v478_v56 = vrot.slane %v476_v54, 4 }
 0x10a   : > { %v423_v36 = vsel %vm219_vm2, %v421_v27, %v422_v32 }
 0x10b   : > { %v425_v37 = vsel %vm424_vm12, %v418_v23, %v423_v36 }
 0x10c   : > { %v691_v4 = vld.sshfl [vmem:[#allocation1] sm:$0xff pattern:$0x75643120]  ;;  %v693_v5 = vld.sshfl [vmem:[#allocation1 + $0x8] sm:$0xff pattern:$0x75643120] }
 0x10d   : > { %695 = vrot.lane.b32.xlu1 %v691_v4, %s3432_s18  ;;  %708 = vst [vmem:[#allocation1] ss:$2 sm:$0xff] %v706_v2  ;;  %697 = vrot.lane.b32.xlu2 %v693_v5, %s3432_s18  ;;  %s3438_s18 = smov 31  }
 0x10e   : > { %427 = vst [vmem:[#allocation2 + $0x30] sm:$0x33] %v425_v37 }
 0x10f   : > { %v437_v31 = vpop.permute.xlu0 %436  ;;  %v439_v33 = vpop.permute.xlu1 %438 }
 0x110   : > { %v440_v34 = vrot.slane %v437_v31, 4  ;;  %v441_v35 = vrot.slane %v439_v33, 4  ;;  %v854_v33 = vld [vmem:[%s2854_s21 + $0x2] sm:$0xf] }
 0x112   : > { %v442_v38 = vsel %vm219_vm2, %v440_v34, %v441_v35 }
 0x113   : > { %v444_v40 = vsel %vm443_vm13, %v437_v31, %v442_v38 }
 0x114   : > { %v711_v17 = vld.sshfl [vmem:[#allocation1 + $0x8] sm:$0xff pattern:$0x75643120]  ;;  %v709_v18 = vld.sshfl [vmem:[#allocation1] sm:$0xff pattern:$0x75643120] }
 0x115   : > { %715 = vrot.lane.b32.xlu1 %v711_v17, %s3438_s18  ;;  %713 = vrot.lane.b32.xlu0 %v709_v18, %s3438_s18  ;;  %727 = vst [vmem:[#allocation1 + $0x1] ss:$2 sm:$0xff] %v724_v15  ;;  %s3441_s18 = smov 28  }
 0x116   : > { %446 = vst [vmem:[#allocation2 + $0x30] sm:$0xcc] %v444_v40 }
 0x117   : > { %v457_v43 = vpop.permute.xlu0 %456  ;;  %v511_v4 = vpop.permute.xlu2 %510 }
 0x118   : > { %v459_v45 = vrot.slane %v457_v43, 4  ;;  %v514_v6 = vrot.slane %v511_v4, 4 }
 0x11a   : > { %v460_v48 = vsel %vm219_vm2, %v458_v46, %v459_v45 }
 0x11b   : > { %v462_v49 = vsel %vm461_vm14, %v455_v44, %v460_v48 }
 0x11c   : > { %v730_v28 = vld.sshfl [vmem:[#allocation1 + $0x8] sm:$0xff pattern:$0x75643120]  ;;  %v728_v29 = vld.sshfl [vmem:[#allocation1] sm:$0xff pattern:$0x75643120] }
 0x11d   : > { %734 = vrot.lane.b32.xlu0 %v730_v28, %s3436_s22  ;;  %745 = vst [vmem:[#allocation1] ss:$2 sm:$0xff] %v743_v26  ;;  %732 = vrot.lane.b32.xlu2 %v728_v29, %s3436_s22  ;;  %s3444_s22 = smov 29  }
 0x11e   : > { %464 = vst [vmem:[#allocation2 + $0x38] sm:$0x33] %v462_v49 }
 0x11f   : > { %v474_v47 = vpop.permute.xlu1 %473  ;;  %v531_v14 = vpop.permute.xlu2 %530 }
 0x120   : > { %v477_v51 = vrot.slane %v474_v47, 4  ;;  %v533_v15 = vrot.slane %v531_v14, 4  ;;  %v930_v14 = vld [vmem:[%s2854_s21 + $0x2] sm:$0x3f] }
 0x122   : > { %v479_v60 = vsel %vm219_vm2, %v477_v51, %v478_v56  ;;  %v878_v51 = vld [vmem:[%s2854_s21 + $0x2] sm:$0x3f] }
 0x123   : > { %v481_v61 = vsel %vm480_vm15, %v474_v47, %v479_v60 }
 0x124   : > { %v746_v41 = vld.sshfl [vmem:[#allocation1] sm:$0xff pattern:$0x75643120]  ;;  %v748_v42 = vld.sshfl [vmem:[#allocation1 + $0x8] sm:$0xff pattern:$0x75643120] }
 0x125   : > { %750 = vrot.lane.b32.xlu1 %v746_v41, %s3444_s22  ;;  %764 = vst [vmem:[#allocation1 + $0x1] ss:$2 sm:$0xff] %v761_v39  ;;  %752 = vrot.lane.b32.xlu2 %v748_v42, %s3444_s22  ;;  %s3448_s22 = smov 26   ;;  %v860_v42 = vld [vmem:[%s2854_s21 + $0x2] sm:$0x3f] }
 0x126   : > { %483 = vst [vmem:[#allocation2 + $0x38] sm:$0xcc] %v481_v61 }
 0x127   : > { %v492_v55 = vpop.permute.xlu0 %491  ;;  %v494_v57 = vpop.permute.xlu1 %493 }
 0x128   : > { %v495_v58 = vrot.slane %v492_v55, 4  ;;  %v496_v59 = vrot.slane %v494_v57, 4 }
 0x12a   : > { %v497_v62 = vsel %vm219_vm2, %v495_v58, %v496_v59  ;;  %v895_v59 = vld [vmem:[%s2854_s21 + $0x2] sm:$0x3f] }
 0x12b   : > { %v499_v63 = vsel %vm498_vm7, %v492_v55, %v497_v62 }
 0x12c   : > { %v767_v52 = vld.sshfl [vmem:[#allocation1 + $0x8] sm:$0xff pattern:$0x75643120]  ;;  %v765_v53 = vld.sshfl [vmem:[#allocation1] sm:$0xff pattern:$0x75643120] }
 0x12d   : > { %771 = vrot.lane.b32.xlu1 %v767_v52, %s3441_s18  ;;  %769 = vrot.lane.b32.xlu0 %v765_v53, %s3441_s18  ;;  %782 = vst [vmem:[#allocation1] ss:$2 sm:$0xff] %v780_v50  ;;  %s3451_s18 = smov 27  }
 0x12e   : > { %501 = vst [vmem:[#allocation2 + $0x40] sm:$0x33] %v499_v63 }
 0x12f   : > { %v513_v3 = vpop.permute.xlu0 %512  ;;  %v566_v26 = vpop.permute.xlu2 %565 }
 0x130   : > { %v515_v5 = vrot.slane %v513_v3, 4  ;;  %v569_v28 = vrot.slane %v566_v26, 4 }
 0x132   : > { %v516_v8 = vsel %vm219_vm2, %v514_v6, %v515_v5 }
 0x133   : > { %v518_v9 = vsel %vm517_vm6, %v511_v4, %v516_v8  ;;  %v913_v4 = vld [vmem:[%s2854_s21 + $0x2] sm:$0x3f] }
 0x134   : > { %v785_v1 = vld.sshfl [vmem:[#allocation1 + $0x8] sm:$0xff pattern:$0x75643120]  ;;  %v783_v2 = vld.sshfl [vmem:[#allocation1] sm:$0xff pattern:$0x75643120] }
 0x135   : > { %789 = vrot.lane.b32.xlu0 %v785_v1, %s3451_s18  ;;  %787 = vrot.lane.b32.xlu2 %v783_v2, %s3451_s18  ;;  %801 = vst [vmem:[#allocation1 + $0x1] ss:$2 sm:$0xff] %v798_v0  ;;  %s2722_s18 = smov 24  }
 0x136   : > { %520 = vst [vmem:[#allocation2 + $0x40] sm:$0xcc] %v518_v9 }
 0x137   : > { %v529_v7 = vpop.permute.xlu1 %528  ;;  %v587_v34 = vpop.permute.xlu2 %586 }
 0x138   : > { %v532_v11 = vrot.slane %v529_v7, 4  ;;  %v589_v37 = vrot.slane %v587_v34, 4 }
 0x13a   : > { %v534_v18 = vsel %vm219_vm2, %v532_v11, %v533_v15 }
 0x13b   : > { %v536_v21 = vsel %vm535_vm5, %v529_v7, %v534_v18 }
 0x13c   : > { %v804_v12 = vld.sshfl [vmem:[#allocation1 + $0x8] sm:$0xff pattern:$0x75643120]  ;;  %v802_v13 = vld.sshfl [vmem:[#allocation1] sm:$0xff pattern:$0x75643120] }
 0x13d   : > { %808 = vrot.lane.b32.xlu2 %v804_v12, %s3448_s22  ;;  %806 = vrot.lane.b32.xlu1 %v802_v13, %s3448_s22  ;;  %819 = vst [vmem:[#allocation1] ss:$2 sm:$0xff] %v817_v10  ;;  %s2721_s22 = smov 25  }
 0x13e   : > { %538 = vst [vmem:[#allocation2 + $0x48] sm:$0x33] %v536_v21 }
 0x13f   : > { %v550_v16 = vpop.permute.xlu1 %549  ;;  %v548_v17 = vpop.permute.xlu0 %547 }
 0x140   : > { %v552_v19 = vrot.slane %v550_v16, 4  ;;  %v551_v20 = vrot.slane %v548_v17, 4 }
 0x142   : > { %v553_v22 = vsel %vm219_vm2, %v551_v20, %v552_v19 }
 0x143   : > { %v555_v23 = vsel %vm554_vm3, %v548_v17, %v553_v22  ;;  %v948_v22 = vld [vmem:[%s2854_s21 + $0x2] sm:$0x3f] }
 0x144   : > { %557 = vst [vmem:[#allocation2 + $0x48] sm:$0xcc] %v555_v23  ;;  %v820_v25 = vld.sshfl [vmem:[#allocation1] sm:$0xff pattern:$0x75643120] }
 0x145   : > { %824 = vrot.lane.b32.xlu0 %v820_v25, %s2721_s22  ;;  %v822_v27 = vld.sshfl [vmem:[#allocation1 + $0x8] sm:$0xff pattern:$0x75643120] }
 0x146   : > { %826 = vrot.lane.b32.xlu1 %v822_v27, %s2721_s22  ;;  %838 = vst [vmem:[#allocation1 + $0x1] ss:$2 sm:$0xff] %v835_v24 }
 0x147   : > { %v568_v29 = vpop.permute.xlu0 %567  ;;  %v622_v50 = vpop.permute.xlu2 %621 }
 0x148   : > { %v570_v30 = vrot.slane %v568_v29, 4  ;;  %v625_v54 = vrot.slane %v622_v50, 4 }
 0x14a   : > { %v571_v31 = vsel %vm219_vm2, %v569_v28, %v570_v30 }
 0x14b   : > { %v573_v32 = vsel %vm3454_vm4, %v566_v26, %v571_v31  ;;  %vm3456_vm4 = vcmask 490496   ;;  %v965_v31 = vld [vmem:[%s2854_s21 + $0x2] sm:$0x3f] }
 0x14c   : > { %575 = vst [vmem:[#allocation2 + $0x50] sm:$0x33] %v573_v32 }
 0x14d   : > { %v841_v35 = vld.sshfl [vmem:[#allocation1 + $0x8] sm:$0xff pattern:$0x75643120]  ;;  %v839_v36 = vld.sshfl [vmem:[#allocation1] sm:$0xff pattern:$0x75643120] }
 0x14e   : > { %845 = vrot.lane.b32.xlu0 %v841_v35, %s2722_s18  ;;  %843 = vrot.lane.b32.xlu2 %v839_v36, %s2722_s18  ;;  %856 = vst [vmem:[#allocation1] ss:$2 sm:$0xff] %v854_v33 }
 0x14f   : > { %v585_v38 = vpop.permute.xlu1 %584  ;;  %v642_v60 = vpop.permute.xlu2 %641 }
 0x150   : > { %v588_v39 = vrot.slane %v585_v38, 4  ;;  %v644_v63 = vrot.slane %v642_v60, 4 }
 0x152   : > { %v590_v40 = vsel %vm219_vm2, %v588_v39, %v589_v37 }
 0x153   : > { %v592_v41 = vsel %vm3455_vm1, %v585_v38, %v590_v40  ;;  %vm3457_vm1 = vcmask 482304  }
 0x154   : > { %594 = vst [vmem:[#allocation2 + $0x50] sm:$0xcc] %v592_v41  ;;  %v983_v41 = vld [vmem:[%s2854_s21 + $0x2] sm:$0x3f] }
 0x155   : > { %v857_v43 = vld.sshfl [vmem:[#allocation1] sm:$0xff pattern:$0x75643120] }
 0x156   : > { %863 = vst [vmem:[#allocation1 + $0x1] ss:$2 sm:$0xff] %v860_v42 }
 0x157   : > { %v605_v44 = vpop.permute.xlu1 %604  ;;  %v603_v45 = vpop.permute.xlu0 %602  ;;  %859 = vst [vmem:[#allocation2 + $0x90] sm:$0x33] %v857_v43 }
 0x158   : > { %v607_v46 = vrot.slane %v605_v44, 4  ;;  %v606_v47 = vrot.slane %v603_v45, 4 }
 0x15a   : > { %v608_v48 = vsel %vm219_vm2, %v606_v47, %v607_v46 }
 0x15b   : > { %v610_v49 = vsel %vm3456_vm4, %v603_v45, %v608_v48  ;;  %vm3458_vm4 = vcmask 474112  }
 0x15c   : > { %612 = vst [vmem:[#allocation2 + $0x58] sm:$0x33] %v610_v49 }
 0x15d   : > { %v866_v52 = vld.sshfl [vmem:[#allocation1 + $0x8] sm:$0xff pattern:$0x75643120]  ;;  %v864_v53 = vld.sshfl [vmem:[#allocation1] sm:$0xff pattern:$0x75643120] }
 0x15e   : > { %870 = vrot.lane.b32.xlu2 %v866_v52, %s2688_s1  ;;  %880 = vst [vmem:[#allocation1] ss:$2 sm:$0xff] %v878_v51  ;;  %868 = vrot.lane.b32.xlu1 %v864_v53, %s2688_s1 }
 0x15f   : > { %v624_v55 = vpop.permute.xlu0 %623  ;;  %v677_v13 = vpop.permute.xlu2 %676 }
 0x160   : > { %v626_v56 = vrot.slane %v624_v55, 4  ;;  %v680_v17 = vrot.slane %v677_v13, 4 }
 0x162   : > { %v627_v57 = vsel %vm219_vm2, %v625_v54, %v626_v56 }
 0x163   : > { %v629_v58 = vsel %vm3457_vm1, %v622_v50, %v627_v57  ;;  %vm3459_vm1 = vcmask 465920   ;;  %v1000_v50 = vld [vmem:[%s2854_s21 + $0x2] sm:$0x3f] }
 0x164   : > { %631 = vst [vmem:[#allocation2 + $0x58] sm:$0xcc] %v629_v58  ;;  %v1018_v58 = vld [vmem:[%s2854_s21 + $0x2] sm:$0x3f] }
 0x165   : > { %v3022_v61 = vld.sshfl [vmem:[#allocation1] sm:$0xff pattern:$0x75643120]  ;;  %v3024_v62 = vld.sshfl [vmem:[#allocation1 + $0x8] sm:$0xff pattern:$0x75643120] }
 0x166   : > { %898 = vst [vmem:[#allocation1 + $0x1] ss:$2 sm:$0xff] %v895_v59 }
 0x167   : > { %v640_v0 = vpop.permute.xlu1 %639  ;;  %v698_v23 = vpop.permute.xlu2 %697 }
 0x168   : > { %v643_v1 = vrot.slane %v640_v0, 4  ;;  %v700_v26 = vrot.slane %v698_v23, 4 }
 0x16a   : > { %v645_v2 = vsel %vm219_vm2, %v643_v1, %v644_v63 }
 0x16b   : > { %v647_v3 = vsel %vm3458_vm4, %v640_v0, %v645_v2  ;;  %vm3460_vm4 = vcmask 457728  }
 0x16c   : > { %649 = vst [vmem:[#allocation2 + $0x60] sm:$0x33] %v647_v3 }
 0x16d   : > { %v3029_v5 = vld.sshfl [vmem:[#allocation1] sm:$0xff pattern:$0x75643120]  ;;  %v3031_v6 = vld.sshfl [vmem:[#allocation1 + $0x8] sm:$0xff pattern:$0x75643120] }
 0x16e   : > { %915 = vst [vmem:[#allocation1] ss:$2 sm:$0xff] %v913_v4 }
 0x16f   : > { %v661_v7 = vpop.permute.xlu1 %660  ;;  %v659_v8 = vpop.permute.xlu0 %658 }
 0x170   : > { %v663_v9 = vrot.slane %v661_v7, 4  ;;  %v662_v10 = vrot.slane %v659_v8, 4  ;;  %v1035_v7 = vld [vmem:[%s2854_s21 + $0x2] sm:$0x3f] }
 0x172   : > { %v664_v11 = vsel %vm219_vm2, %v662_v10, %v663_v9 }
 0x173   : > { %v666_v12 = vsel %vm3459_vm1, %v659_v8, %v664_v11  ;;  %vm3461_vm1 = vcmask 261120  }
 0x174   : > { %668 = vst [vmem:[#allocation2 + $0x60] sm:$0xcc] %v666_v12 }
 0x175   : > { %v3036_v15 = vld.sshfl [vmem:[#allocation1] sm:$0xff pattern:$0x75643120]  ;;  %v3038_v16 = vld.sshfl [vmem:[#allocation1 + $0x8] sm:$0xff pattern:$0x75643120] }
 0x176   : > { %933 = vst [vmem:[#allocation1 + $0x1] ss:$2 sm:$0xff] %v930_v14 }
 0x177   : > { %v679_v18 = vpop.permute.xlu0 %678  ;;  %v733_v38 = vpop.permute.xlu2 %732 }
 0x178   : > { %v681_v19 = vrot.slane %v679_v18, 4  ;;  %v736_v44 = vrot.slane %v733_v38, 4 }
 0x17a   : > { %v682_v20 = vsel %vm219_vm2, %v680_v17, %v681_v19 }
 0x17b   : > { %v684_v21 = vsel %vm3460_vm4, %v677_v13, %v682_v20  ;;  %vm3462_vm4 = vcmask 252928   ;;  %v2212_v12 = vld [vmem:[#allocation2 + $0x60] sm:$0xf]  ;;  %v2345_v14 = vld [vmem:[#allocation2 + $0x64] sm:$0xf] }
 0x17c   : > { %686 = vst [vmem:[#allocation2 + $0x68] sm:$0x33] %v684_v21  ;;  %v1053_v20 = vld [vmem:[%s2854_s21 + $0x2] sm:$0x3f] }
 0x17d   : > { %v3043_v24 = vld.sshfl [vmem:[#allocation1] sm:$0xff pattern:$0x75643120]  ;;  %v3045_v25 = vld.sshfl [vmem:[#allocation1 + $0x8] sm:$0xff pattern:$0x75643120] }
 0x17e   : > { %950 = vst [vmem:[#allocation1] ss:$2 sm:$0xff] %v948_v22 }
 0x17f   : > { %v696_v27 = vpop.permute.xlu1 %695  ;;  %v753_v49 = vpop.permute.xlu2 %752 }
 0x180   : > { %v699_v28 = vrot.slane %v696_v27, 4  ;;  %v755_v53 = vrot.slane %v753_v49, 4  ;;  %v2340_v49 = vld [vmem:[#allocation2 + $0x34] sm:$0xf0] }
 0x182   : > { %v701_v29 = vsel %vm219_vm2, %v699_v28, %v700_v26 }
 0x183   : > { %v703_v30 = vsel %vm3461_vm1, %v696_v27, %v701_v29  ;;  %vm3463_vm1 = vcmask 244736   ;;  %v2204_v29 = vld [vmem:[#allocation2 + $0x50] sm:$0xf] }
 0x184   : > { %705 = vst [vmem:[#allocation2 + $0x68] sm:$0xcc] %v703_v30  ;;  %v2344_v30 = vld [vmem:[#allocation2 + $0x54] sm:$0xf0] }
 0x185   : > { %v3050_v32 = vld.sshfl [vmem:[#allocation1] sm:$0xff pattern:$0x75643120]  ;;  %v3052_v33 = vld.sshfl [vmem:[#allocation1 + $0x8] sm:$0xff pattern:$0x75643120] }
 0x186   : > { %968 = vst [vmem:[#allocation1 + $0x1] ss:$2 sm:$0xff] %v965_v31  ;;  %v2343_v31 = vld [vmem:[#allocation2 + $0x54] sm:$0xf] }
 0x187   : > { %v716_v34 = vpop.permute.xlu1 %715  ;;  %v714_v35 = vpop.permute.xlu0 %713 }
 0x188   : > { %v718_v36 = vrot.slane %v716_v34, 4  ;;  %v717_v37 = vrot.slane %v714_v35, 4  ;;  %v2206_v34 = vld [vmem:[#allocation2 + $0x58] sm:$0xf0] }
 0x18a   : > { %v719_v39 = vsel %vm219_vm2, %v717_v37, %v718_v36  ;;  %v2209_v36 = vor.u32 %v2343_v31, %v2206_v34  ;;  %v2196_v37 = vld [vmem:[#allocation2 + $0x40] sm:$0xf]  ;;  %v1175_v31 = vld [vmem:[%s2854_s21 + $0x2] sm:$0x3f] }
 0x18b   : > { %v721_v40 = vsel %vm3462_vm4, %v714_v35, %v719_v39  ;;  %vm3465_vm4 = vcmask 236544   ;;  %v2346_v13 = vld [vmem:[#allocation2 + $0x64] sm:$0xf0]  ;;  %v2214_v17 = vld [vmem:[#allocation2 + $0x68] sm:$0xf0]  ;;  %v2205_v35 = vor.u32 %v2344_v30, %v2204_v29 }
 0x18c   : > { %723 = vst [vmem:[#allocation2 + $0x70] sm:$0x33] %v721_v40  ;;  %v2213_v27 = vor.u32 %v2346_v13, %v2212_v12  ;;  %v2217_v28 = vor.u32 %v2345_v14, %v2214_v17  ;;  %v2341_v39 = vld [vmem:[#allocation2 + $0x44] sm:$0xf]  ;;  %v2198_v40 = vld [vmem:[#allocation2 + $0x48] sm:$0xf0] }
 0x18d   : > { %v3057_v42 = vld.sshfl [vmem:[#allocation1] sm:$0xff pattern:$0x75643120]  ;;  %v3059_v43 = vld.sshfl [vmem:[#allocation1 + $0x8] sm:$0xff pattern:$0x75643120] }
 0x18e   : > { %985 = vst [vmem:[#allocation1] ss:$2 sm:$0xff] %v983_v41  ;;  %v1070_v41 = vld [vmem:[%s2854_s21 + $0x2] sm:$0x3f]  ;;  %v2333_v12 = vld [vmem:[#allocation2 + $0x4] sm:$0xf] }
 0x18f   : > { %v735_v45 = vpop.permute.xlu0 %734  ;;  %v2166_v13 = vld [vmem:[#allocation2 + $0x8] sm:$0xf0] }
 0x190   : > { %v737_v46 = vrot.slane %v735_v45, 4 }
 0x192   : > { %v738_v47 = vsel %vm219_vm2, %v736_v44, %v737_v46 }
 0x193   : > { %v740_v48 = vsel %vm3463_vm1, %v733_v38, %v738_v47  ;;  %vm3464_vm1 = vcmask 228352   ;;  %v2342_v38 = vld [vmem:[#allocation2 + $0x44] sm:$0xf0]  ;;  %v2201_v47 = vor.u32 %v2341_v39, %v2198_v40 }
 0x194   : > { %742 = vst [vmem:[#allocation2 + $0x70] sm:$0xcc] %v740_v48  ;;  %v2197_v46 = vor.u32 %v2342_v38, %v2196_v37  ;;  %v2188_v48 = vld [vmem:[#allocation2 + $0x30] sm:$0xf]  ;;  %v1193_v37 = vld [vmem:[%s2854_s21 + $0x2] sm:$0x3f] }
 0x195   : > { %v988_v51 = vld.sshfl [vmem:[#allocation1 + $0x8] sm:$0xff pattern:$0x75643120]  ;;  %v986_v52 = vld.sshfl [vmem:[#allocation1] sm:$0xff pattern:$0x75643120] }
 0x196   : > { %992 = vrot.lane.b32.xlu0 %v988_v51, %s2695_s23  ;;  %990 = vrot.lane.b32.xlu2 %v986_v52, %s2695_s23  ;;  %1003 = vst [vmem:[#allocation1 + $0x1] ss:$2 sm:$0xff] %v1000_v50  ;;  %v2339_v50 = vld [vmem:[#allocation2 + $0x34] sm:$0xf]  ;;  %v2190_v51 = vld [vmem:[#allocation2 + $0x38] sm:$0xf0]  ;;  %v2189_v52 = vor.u32 %v2340_v49, %v2188_v48 }
 0x197   : > { %v751_v54 = vpop.permute.xlu1 %750  ;;  %v1210_v40 = vld [vmem:[%s2854_s21 + $0x2] sm:$0x3f] }
 0x198   : > { %v754_v55 = vrot.slane %v751_v54, 4 }
 0x19a   : > { %v756_v56 = vsel %vm219_vm2, %v754_v55, %v755_v53  ;;  %v2193_v53 = vor.u32 %v2339_v50, %v2190_v51  ;;  %v2338_v55 = vld [vmem:[#allocation2 + $0x24] sm:$0xf0] }
 0x19b   : > { %v758_v57 = vsel %vm3465_vm4, %v751_v54, %v756_v56  ;;  %v2220_v10 = vld [vmem:[#allocation2 + $0x70] sm:$0xf]  ;;  %v2347_v11 = vld [vmem:[#allocation2 + $0x74] sm:$0xf]  ;;  %v2180_v54 = vld [vmem:[#allocation2 + $0x20] sm:$0xf] }
 0x19c   : > { %760 = vst [vmem:[#allocation2 + $0x78] sm:$0x33] %v758_v57  ;;  %v2337_v56 = vld [vmem:[#allocation2 + $0x24] sm:$0xf]  ;;  %v2182_v57 = vld [vmem:[#allocation2 + $0x28] sm:$0xf0] }
 0x19d   : > { %v1004_v59 = vld.sshfl [vmem:[#allocation1] sm:$0xff pattern:$0x75643120]  ;;  %v1006_v60 = vld.sshfl [vmem:[#allocation1 + $0x8] sm:$0xff pattern:$0x75643120] }
 0x19e   : > { %1008 = vrot.lane.b32.xlu1 %v1004_v59, %s2696_s24  ;;  %1020 = vst [vmem:[#allocation1] ss:$2 sm:$0xff] %v1018_v58  ;;  %1010 = vrot.lane.b32.xlu2 %v1006_v60, %s2696_s24  ;;  %v1088_v58 = vld [vmem:[%s2854_s21 + $0x2] sm:$0x3f]  ;;  %vm831_vm4 = vcmask 203776   ;;  %s3480_s24 = smov 57  }
 0x19f   : > { %v772_v63 = vpop.permute.xlu1 %771  ;;  %v770_v0 = vpop.permute.xlu0 %769  ;;  %v1245_v50 = vld [vmem:[%s2854_s21 + $0x2] sm:$0x3f] }
 0x1a0   : > { %v774_v1 = vrot.slane %v772_v63, 4  ;;  %v773_v2 = vrot.slane %v770_v0, 4  ;;  %v2181_v63 = vor.u32 %v2338_v55, %v2180_v54  ;;  %v1263_v55 = vld [vmem:[%s2854_s21 + $0x2] sm:$0x3f] }
 0x1a2   : > { %v775_v3 = vsel %vm219_vm2, %v773_v2, %v774_v1  ;;  %v2172_v1 = vld [vmem:[#allocation2 + $0x10] sm:$0xf]  ;;  %v2336_v2 = vld [vmem:[#allocation2 + $0x14] sm:$0xf0] }
 0x1a3   : > { %v777_v4 = vsel %vm3464_vm1, %v770_v0, %v775_v3  ;;  %v2185_v0 = vor.u32 %v2337_v56, %v2182_v57  ;;  %v2335_v3 = vld [vmem:[#allocation2 + $0x14] sm:$0xf]  ;;  %vm813_vm1 = vcmask 211968  }
 0x1a4   : > { %779 = vst [vmem:[#allocation2 + $0x78] sm:$0xcc] %v777_v4  ;;  %v2174_v4 = vld [vmem:[#allocation2 + $0x18] sm:$0xf0] }
 0x1a5   : > { %v1021_v8 = vld.sshfl [vmem:[#allocation1] sm:$0xff pattern:$0x75643120]  ;;  %v1023_v9 = vld.sshfl [vmem:[#allocation1 + $0x8] sm:$0xff pattern:$0x75643120] }
 0x1a6   : > { %1025 = vrot.lane.b32.xlu0 %v1021_v8, %s2697_s25  ;;  %1027 = vrot.lane.b32.xlu1 %v1023_v9, %s2697_s25  ;;  %1038 = vst [vmem:[#allocation1 + $0x1] ss:$2 sm:$0xff] %v1035_v7  ;;  %v2173_v7 = vor.u32 %v2336_v2, %v2172_v1  ;;  %v2177_v8 = vor.u32 %v2335_v3, %v2174_v4  ;;  %v2164_v9 = vld [vmem:[#allocation2] sm:$0xf]  ;;  %v1280_v3 = vld [vmem:[%s2854_s21 + $0x2] sm:$0x3f] }
 0x1a7   : > { %s3481_s25 = smov 56  }
 0x1ab   : > { %v2348_v18 = vld [vmem:[#allocation2 + $0x74] sm:$0xf0]  ;;  %v2222_v19 = vld [vmem:[#allocation2 + $0x78] sm:$0xf0] }
 0x1ac   : > { %v2221_v21 = vor.u32 %v2348_v18, %v2220_v10  ;;  %v2225_v22 = vor.u32 %v2347_v11, %v2222_v19  ;;  %v1105_v10 = vld [vmem:[%s2854_s21 + $0x2] sm:$0x3f]  ;;  %v2169_v19 = vor.u32 %v2333_v12, %v2166_v13 }
 0x1ad   : > { %v1041_v23 = vld.sshfl [vmem:[#allocation1 + $0x8] sm:$0xff pattern:$0x75643120]  ;;  %v1039_v26 = vld.sshfl [vmem:[#allocation1] sm:$0xff pattern:$0x75643120] }
 0x1ae   : > { %1910 = vmatpush.bf16.msra.mxu0 %v2221_v21  ;;  %1964 = vmatpush.bf16.msra.mxu3 %v2225_v22  ;;  %1055 = vst [vmem:[#allocation1] ss:$2 sm:$0xff] %v1053_v20  ;;  %v2334_v11 = vld [vmem:[#allocation2 + $0x4] sm:$0xf0] }
 0x1af   : > { %1045 = vrot.lane.b32.xlu0 %v1041_v23, %s2698_s26  ;;  %1043 = vrot.lane.b32.xlu2 %v1039_v26, %s2698_s26  ;;  %v2165_v18 = vor.u32 %v2334_v11, %v2164_v9  ;;  %v1123_v20 = vld [vmem:[%s2854_s21 + $0x2] sm:$0x3f]  ;;  %s3482_s26 = smov 32  }
 0x1b0   : > { %v1140_v23 = vld [vmem:[%s2854_s21 + $0x2] sm:$0x3f] }
 0x1b2   : > { %1911 = vmatpush.bf16.msra.mxu0 %v2213_v27  ;;  %1965 = vmatpush.bf16.msra.mxu3 %v2217_v28  ;;  %v1158_v28 = vld [vmem:[%s2854_s21 + $0x2] sm:$0x3f] }
 0x1b5   : > { %v1056_v44 = vld.sshfl [vmem:[#allocation1] sm:$0xff pattern:$0x75643120]  ;;  %v1058_v45 = vld.sshfl [vmem:[#allocation1 + $0x8] sm:$0xff pattern:$0x75643120] }
 0x1b6   : > { %1912 = vmatpush.bf16.msra.mxu0 %v2205_v35  ;;  %1966 = vmatpush.bf16.msra.mxu3 %v2209_v36  ;;  %1073 = vst [vmem:[#allocation1 + $0x1] ss:$2 sm:$0xff] %v1070_v41  ;;  %v3100_v36 = vpop.permute.xlu2 %787 }
 0x1b7   : > { %1060 = vrot.lane.b32.xlu1 %v1056_v44, %s2699_s27  ;;  %1062 = vrot.lane.b32.xlu2 %v1058_v45, %s2699_s27  ;;  %s3483_s27 = smov 31  }
 0x1ba   : > { %1913 = vmatpush.bf16.msra.mxu0 %v2197_v46  ;;  %1967 = vmatpush.bf16.msra.mxu3 %v2201_v47  ;;  %v1228_v46 = vld [vmem:[%s2854_s21 + $0x2] sm:$0x3f] }
 0x1bd   : > { %v1074_v59 = vld.sshfl [vmem:[#allocation1] sm:$0xff pattern:$0x75643120]  ;;  %v1076_v60 = vld.sshfl [vmem:[#allocation1 + $0x8] sm:$0xff pattern:$0x75643120] }
 0x1be   : > { %1914 = vmatpush.bf16.msra.mxu0 %v2189_v52  ;;  %1968 = vmatpush.bf16.msra.mxu3 %v2193_v53  ;;  %1090 = vst [vmem:[#allocation1] ss:$2 sm:$0xff] %v1088_v58  ;;  %v809_v41 = vpop.permute.xlu2 %808  ;;  %v3116_v53 = vpop.permute.xlu0 %789 }
 0x1bf   : > { %1078 = vrot.lane.b32.xlu0 %v1074_v59, %s2700_s3  ;;  %1080 = vrot.lane.b32.xlu1 %v1076_v60, %s2700_s3  ;;  %v811_v56 = vrot.slane %v809_v41, 4  ;;  %v807_v59 = vpop.permute.xlu1 %806  ;;  %s3484_s3 = smov 30  }
 0x1c2   : > { %1915 = vmatpush.bf16.msra.mxu0 %v2181_v63  ;;  %1969 = vmatpush.bf16.msra.mxu3 %v2185_v0  ;;  %v810_v63 = vrot.slane %v807_v59, 4 }
 0x1c4   : > { %v812_v1 = vsel %vm219_vm2, %v810_v63, %v811_v56 }
 0x1c5   : > { %v1093_v14 = vld.sshfl [vmem:[#allocation1 + $0x8] sm:$0xff pattern:$0x75643120]  ;;  %v1091_v17 = vld.sshfl [vmem:[#allocation1] sm:$0xff pattern:$0x75643120]  ;;  %v814_v2 = vsel %vm813_vm1, %v807_v59, %v812_v1 }
 0x1c6   : > { %1916 = vmatpush.bf16.msra.mxu0 %v2173_v7  ;;  %1970 = vmatpush.bf16.msra.mxu3 %v2177_v8  ;;  %1108 = vst [vmem:[#allocation1 + $0x1] ss:$2 sm:$0xff] %v1105_v10  ;;  %v3109_v49 = vpop.permute.xlu2 %843  ;;  %v825_v60 = vpop.permute.xlu0 %824 }
 0x1c7   : > { %1097 = vrot.lane.b32.xlu0 %v1093_v14, %s2701_s6  ;;  %1095 = vrot.lane.b32.xlu2 %v1091_v17, %s2701_s6  ;;  %816 = vst [vmem:[#allocation2 + $0x80] sm:$0xcc] %v814_v2  ;;  %v828_v4 = vrot.slane %v825_v60, 4  ;;  %v827_v9 = vpop.permute.xlu1 %826  ;;  %v1298_v17 = vld [vmem:[%s2854_s21 + $0x2] sm:$0x3f]  ;;  %s3485_s6 = smov 29  }
 0x1c8   : > { %v829_v11 = vrot.slane %v827_v9, 4  ;;  %v1350_v9 = vld [vmem:[%s2854_s21 + $0x2] sm:$0x3f] }
 0x1ca   : > { %1917 = vmatpush.bf16.msra.mxu0 %v2165_v18  ;;  %1971 = vmatpush.bf16.msra.mxu3 %v2169_v19  ;;  %v830_v13 = vsel %vm219_vm2, %v828_v4, %v829_v11 }
 0x1cb   : > { %v832_v14 = vsel %vm831_vm4, %v825_v60, %v830_v13 }
 0x1cc   : > { %834 = vst [vmem:[#allocation2 + $0x88] sm:$0x33] %v832_v14 }
 0x1cd   : > { %v1109_v21 = vld.sshfl [vmem:[#allocation1] sm:$0xff pattern:$0x75643120]  ;;  %v1111_v22 = vld.sshfl [vmem:[#allocation1 + $0x8] sm:$0xff pattern:$0x75643120] }
 0x1ce   : > { %1113 = vrot.lane.b32.xlu1 %v1109_v21, %s2702_s8  ;;  %1125 = vst [vmem:[#allocation1] ss:$2 sm:$0xff] %v1123_v20  ;;  %v871_v54 = vpop.permute.xlu2 %870  ;;  %v3126_v10 = vpop.permute.xlu0 %845 }
 0x1cf   : > { %1115 = vrot.lane.b32.xlu2 %v1111_v22, %s2702_s8  ;;  %v873_v18 = vrot.slane %v871_v54, 4  ;;  %s3486_s8 = smov 28  }
 0x1d0   : > { %v869_v22 = vpop.permute.xlu1 %868 }
 0x1d5   : > { %v1128_v26 = vld.sshfl [vmem:[#allocation1 + $0x8] sm:$0xff pattern:$0x75643120]  ;;  %v1126_v27 = vld.sshfl [vmem:[#allocation1] sm:$0xff pattern:$0x75643120] }
 0x1d6   : > { %1132 = vrot.lane.b32.xlu0 %v1128_v26, %s2703_s19  ;;  %1143 = vst [vmem:[#allocation1 + $0x1] ss:$2 sm:$0xff] %v1140_v23  ;;  %v872_v26 = vrot.slane %v869_v22, 4 }
 0x1d7   : > { %1130 = vrot.lane.b32.xlu2 %v1126_v27, %s2703_s19  ;;  %s3487_s19 = smov 27  }
 0x1dd   : > { %v1144_v29 = vld.sshfl [vmem:[#allocation1] sm:$0xff pattern:$0x75643120]  ;;  %v1146_v30 = vld.sshfl [vmem:[#allocation1 + $0x8] sm:$0xff pattern:$0x75643120] }
 0x1de   : > { %1148 = vrot.lane.b32.xlu1 %v1144_v29, %s2704_s17  ;;  %1160 = vst [vmem:[#allocation1] ss:$2 sm:$0xff] %v1158_v28  ;;  %v874_v29 = vsel %vm219_vm2, %v872_v26, %v873_v18 }
 0x1df   : > { %1150 = vrot.lane.b32.xlu2 %v1146_v30, %s2704_s17  ;;  %s3479_s17 = smov 58  }
 0x1e5   : > { %v1161_v34 = vld.sshfl [vmem:[#allocation1] sm:$0xff pattern:$0x75643120]  ;;  %v1163_v35 = vld.sshfl [vmem:[#allocation1 + $0x8] sm:$0xff pattern:$0x75643120] }
 0x1e6   : > { %1165 = vrot.lane.b32.xlu0 %v1161_v34, %s2705_s4  ;;  %1167 = vrot.lane.b32.xlu1 %v1163_v35, %s2705_s4  ;;  %1178 = vst [vmem:[#allocation1 + $0x1] ss:$2 sm:$0xff] %v1175_v31  ;;  %s3476_s4 = smov 61   ;;  %v875_v31 = vsel %vm221_vm0, %v869_v22, %v874_v29  ;;  %v1315_v35 = vld [vmem:[%s2854_s21 + $0x2] sm:$0x3f] }
 0x1e7   : > { %877 = vst [vmem:[#allocation2 + $0x90] sm:$0xcc] %v875_v31  ;;  %v1368_v22 = vld [vmem:[%s2854_s21 + $0x2] sm:$0x3f] }
 0x1ed   : > { %v1181_v38 = vld.sshfl [vmem:[#allocation1 + $0x8] sm:$0xff pattern:$0x75643120]  ;;  %v1179_v39 = vld.sshfl [vmem:[#allocation1] sm:$0xff pattern:$0x75643120] }
 0x1ee   : > { %1185 = vrot.lane.b32.xlu0 %v1181_v38, %s2706_s29  ;;  %1195 = vst [vmem:[#allocation1] ss:$2 sm:$0xff] %v1193_v37  ;;  %1183 = vrot.lane.b32.xlu2 %v1179_v39, %s2706_s29  ;;  %s3477_s29 = smov 60  }
 0x1f0   : > { %v991_v0 = vpop.permute.xlu2 %990 }
 0x1f1   : > { %v994_v19 = vrot.slane %v991_v0, 4 }
 0x1f5   : > { %v1196_v44 = vld.sshfl [vmem:[#allocation1] sm:$0xff pattern:$0x75643120]  ;;  %v1198_v45 = vld.sshfl [vmem:[#allocation1 + $0x8] sm:$0xff pattern:$0x75643120] }
 0x1f6   : > { %1200 = vrot.lane.b32.xlu1 %v1196_v44, %s2707_s28  ;;  %1213 = vst [vmem:[#allocation1 + $0x1] ss:$2 sm:$0xff] %v1210_v40  ;;  %1202 = vrot.lane.b32.xlu2 %v1198_v45, %s2707_s28  ;;  %s3478_s28 = smov 59  }
 0x1f8   : > { %v1011_v12 = vpop.permute.xlu2 %1010 }
 0x1f9   : > { %v1013_v37 = vrot.slane %v1011_v12, 4 }
 0x1fd   : > { %v1214_v47 = vld.sshfl [vmem:[#allocation1] sm:$0xff pattern:$0x75643120]  ;;  %v1216_v48 = vld.sshfl [vmem:[#allocation1 + $0x8] sm:$0xff pattern:$0x75643120] }
 0x1fe   : > { %1218 = vrot.lane.b32.xlu0 %v1214_v47, %s3476_s4  ;;  %1220 = vrot.lane.b32.xlu1 %v1216_v48, %s3476_s4  ;;  %1230 = vst [vmem:[#allocation1] ss:$2 sm:$0xff] %v1228_v46  ;;  %v1333_v48 = vld [vmem:[%s2854_s21 + $0x2] sm:$0x3f]  ;;  %s3488_s4 = smov 26  }
 0x205   : > { %v1233_v51 = vld.sshfl [vmem:[#allocation1 + $0x8] sm:$0xff pattern:$0x75643120]  ;;  %v1231_v52 = vld.sshfl [vmem:[#allocation1] sm:$0xff pattern:$0x75643120] }
 0x206   : > { %1237 = vrot.lane.b32.xlu0 %v1233_v51, %s3477_s29  ;;  %1248 = vst [vmem:[#allocation1 + $0x1] ss:$2 sm:$0xff] %v1245_v50  ;;  %1235 = vrot.lane.b32.xlu2 %v1231_v52, %s3477_s29  ;;  %v791_v50 = vrot.slane %v3100_v36, 4  ;;  %v792_v51 = vrot.slane %v3116_v53, 4  ;;  %s3499_s29 = smov 123  }
 0x208   : > { %v993_v23 = vpop.permute.xlu0 %992  ;;  %v793_v53 = vsel %vm219_vm2, %v791_v50, %v792_v51 }
 0x209   : > { %v995_v27 = vrot.slane %v993_v23, 4  ;;  %v1044_v28 = vpop.permute.xlu2 %1043 }
 0x20a   : > { %v1047_v52 = vrot.slane %v1044_v28, 4 }
 0x20b   : > { %v996_v30 = vsel %vm219_vm2, %v994_v19, %v995_v27 }
 0x20c   : > { %v997_v34 = vsel %vm3466_vm8, %v991_v0, %v996_v30  ;;  %vm850_vm8 = vcmask 195584  }
 0x20d   : > { %v1249_v57 = vld.sshfl [vmem:[#allocation1] sm:$0xff pattern:$0x75643120]  ;;  %v1251_v58 = vld.sshfl [vmem:[#allocation1 + $0x8] sm:$0xff pattern:$0x75643120] }
 0x20e   : > { %1253 = vrot.lane.b32.xlu1 %v1249_v57, %s3478_s28  ;;  %1265 = vst [vmem:[#allocation1] ss:$2 sm:$0xff] %v1263_v55  ;;  %1255 = vrot.lane.b32.xlu2 %v1251_v58, %s3478_s28  ;;  %v847_v57 = vrot.slane %v3109_v49, 4  ;;  %v848_v58 = vrot.slane %v3126_v10, 4  ;;  %s3501_s28 = smov 122  }
 0x20f   : > { %999 = vst [vmem:[#allocation2 + $0xb0] sm:$0x33] %v997_v34 }
 0x210   : > { %v1009_v40 = vpop.permute.xlu1 %1008  ;;  %v849_v4 = vsel %vm219_vm2, %v847_v57, %v848_v58 }
 0x211   : > { %v1012_v44 = vrot.slane %v1009_v40, 4  ;;  %v1063_v45 = vpop.permute.xlu2 %1062  ;;  %v851_v14 = vsel %vm850_vm8, %v3109_v49, %v849_v4 }
 0x212   : > { %v1065_v10 = vrot.slane %v1063_v45, 4  ;;  %853 = vst [vmem:[#allocation2 + $0x88] sm:$0xcc] %v851_v14 }
 0x213   : > { %v1014_v46 = vsel %vm219_vm2, %v1012_v44, %v1013_v37 }
 0x214   : > { %v1015_v47 = vsel %vm369_vm9, %v1009_v40, %v1014_v46  ;;  %vm794_vm9 = vcmask 220160  }
 0x215   : > { %v1266_v7 = vld.sshfl [vmem:[#allocation1] sm:$0xff pattern:$0x75643120]  ;;  %v1268_v8 = vld.sshfl [vmem:[#allocation1 + $0x8] sm:$0xff pattern:$0x75643120]  ;;  %v795_v11 = vsel %vm794_vm9, %v3100_v36, %v793_v53 }
 0x216   : > { %1272 = vrot.lane.b32.xlu0 %v1268_v8, %s3479_s17  ;;  %1283 = vst [vmem:[#allocation1 + $0x1] ss:$2 sm:$0xff] %v1280_v3  ;;  %1270 = vrot.lane.b32.xlu2 %v1266_v7, %s3479_s17  ;;  %v1420_v53 = vld [vmem:[%s2854_s21 + $0x2] sm:$0x3f]  ;;  %s3503_s17 = smov 121  }
 0x217   : > { %1017 = vst [vmem:[#allocation2 + $0xb0] sm:$0xcc] %v1015_v47 }
 0x218   : > { %v1026_v41 = vpop.permute.xlu0 %1025  ;;  %v1028_v59 = vpop.permute.xlu1 %1027  ;;  %797 = vst [vmem:[#allocation2 + $0x80] sm:$0x33] %v795_v11 }
 0x219   : > { %v1029_v54 = vrot.slane %v1026_v41, 4  ;;  %v1030_v63 = vrot.slane %v1028_v59, 4 }
 0x21b   : > { %v1031_v2 = vsel %vm219_vm2, %v1029_v54, %v1030_v63 }
 0x21c   : > { %v1032_v7 = vsel %vm387_vm10, %v1026_v41, %v1031_v2  ;;  %vm3494_vm10 = vcmask 474112  }
 0x21d   : > { %v1286_v20 = vld.sshfl [vmem:[#allocation1 + $0x8] sm:$0xff pattern:$0x75643120]  ;;  %v1284_v21 = vld.sshfl [vmem:[#allocation1] sm:$0xff pattern:$0x75643120] }
 0x21e   : > { %1288 = vrot.lane.b32.xlu1 %v1284_v21, %s3480_s24  ;;  %1300 = vst [vmem:[#allocation1] ss:$2 sm:$0xff] %v1298_v17  ;;  %1290 = vrot.lane.b32.xlu2 %v1286_v20, %s3480_s24  ;;  %s2391_s24 = smul.u32 12, %s2671_s13 }
 0x21f   : > { %1034 = vst [vmem:[#allocation2 + $0xb8] sm:$0x33] %v1032_v7 }
 0x221   : > { %v1046_v60 = vpop.permute.xlu0 %1045  ;;  %v1096_v1 = vpop.permute.xlu2 %1095 }
 0x222   : > { %v1048_v0 = vrot.slane %v1046_v60, 4  ;;  %v1099_v23 = vrot.slane %v1096_v1, 4 }
 0x224   : > { %v1049_v3 = vsel %vm219_vm2, %v1047_v52, %v1048_v0 }
 0x225   : > { %v1301_v38 = vld.sshfl [vmem:[#allocation1] sm:$0xff pattern:$0x75643120]  ;;  %v1303_v39 = vld.sshfl [vmem:[#allocation1 + $0x8] sm:$0xff pattern:$0x75643120]  ;;  %v1050_v8 = vsel %vm406_vm11, %v1044_v28, %v1049_v3 }
 0x226   : > { %1305 = vrot.lane.b32.xlu0 %v1301_v38, %s3481_s25  ;;  %1307 = vrot.lane.b32.xlu1 %v1303_v39, %s3481_s25  ;;  %1318 = vst [vmem:[#allocation1 + $0x1] ss:$2 sm:$0xff] %v1315_v35  ;;  %v1385_v39 = vld [vmem:[%s2854_s21 + $0x2] sm:$0x3f]  ;;  %vm3496_vm11 = vcmask 465920   ;;  %s2326_s25 = sshll.u32 %s2667_s12, 1 }
 0x227   : > { %1052 = vst [vmem:[#allocation2 + $0xb8] sm:$0xcc] %v1050_v8 }
 0x229   : > { %v1061_v17 = vpop.permute.xlu1 %1060  ;;  %v1116_v21 = vpop.permute.xlu2 %1115 }
 0x22a   : > { %v1064_v19 = vrot.slane %v1061_v17, 4  ;;  %v1118_v40 = vrot.slane %v1116_v21, 4 }
 0x22c   : > { %v1066_v20 = vsel %vm219_vm2, %v1064_v19, %v1065_v10 }
 0x22d   : > { %v1321_v55 = vld.sshfl [vmem:[#allocation1 + $0x8] sm:$0xff pattern:$0x75643120]  ;;  %v1319_v56 = vld.sshfl [vmem:[#allocation1] sm:$0xff pattern:$0x75643120]  ;;  %v1067_v36 = vsel %vm424_vm12, %v1061_v17, %v1066_v20 }
 0x22e   : > { %1325 = vrot.lane.b32.xlu0 %v1321_v55, %s3482_s26  ;;  %1323 = vrot.lane.b32.xlu2 %v1319_v56, %s3482_s26  ;;  %1335 = vst [vmem:[#allocation1] ss:$2 sm:$0xff] %v1333_v48  ;;  %v1403_v55 = vld [vmem:[%s2854_s21 + $0x2] sm:$0x3f]  ;;  %vm3498_vm12 = vcmask 457728   ;;  %s2036_s26 = sadd.s32 %s2391_s24, %s2326_s25 }
 0x22f   : > { %1069 = vst [vmem:[#allocation2 + $0xc0] sm:$0x33] %v1067_v36 }
 0x231   : > { %v1079_v18 = vpop.permute.xlu0 %1078  ;;  %v1081_v28 = vpop.permute.xlu1 %1080 }
 0x232   : > { %v1082_v49 = vrot.slane %v1079_v18, 4  ;;  %v1083_v30 = vrot.slane %v1081_v28, 4  ;;  %v1131_v41 = vpop.permute.xlu2 %1130 }
 0x233   : > { %v1134_v47 = vrot.slane %v1131_v41, 4 }
 0x234   : > { %v1084_v34 = vsel %vm219_vm2, %v1082_v49, %v1083_v30 }
 0x235   : > { %v1336_v12 = vld.sshfl [vmem:[#allocation1] sm:$0xff pattern:$0x75643120]  ;;  %v1338_v13 = vld.sshfl [vmem:[#allocation1 + $0x8] sm:$0xff pattern:$0x75643120]  ;;  %v1085_v37 = vsel %vm443_vm13, %v1079_v18, %v1084_v34 }
 0x236   : > { %1340 = vrot.lane.b32.xlu1 %v1336_v12, %s3483_s27  ;;  %1353 = vst [vmem:[#allocation1 + $0x1] ss:$2 sm:$0xff] %v1350_v9  ;;  %1342 = vrot.lane.b32.xlu2 %v1338_v13, %s3483_s27  ;;  %v1438_v12 = vld [vmem:[%s2854_s21 + $0x2] sm:$0x3f]  ;;  %vm3500_vm13 = vcmask 261120   ;;  %s2327_s27 = sshll.u32 %s2036_s26, 3 }
 0x237   : > { %1087 = vst [vmem:[#allocation2 + $0xc0] sm:$0xcc] %v1085_v37  ;;  %v1473_v37 = vld [vmem:[%s2854_s21 + $0x4] sm:$0xf] }
 0x239   : > { %v1098_v29 = vpop.permute.xlu0 %1097 }
 0x23a   : > { %v1100_v31 = vrot.slane %v1098_v29, 4  ;;  %v1151_v60 = vpop.permute.xlu2 %1150 }
 0x23b   : > { %v1153_v63 = vrot.slane %v1151_v60, 4 }
 0x23c   : > { %v1101_v35 = vsel %vm219_vm2, %v1099_v23, %v1100_v31 }
 0x23d   : > { %v1356_v26 = vld.sshfl [vmem:[#allocation1 + $0x8] sm:$0xff pattern:$0x75643120]  ;;  %v1354_v27 = vld.sshfl [vmem:[#allocation1] sm:$0xff pattern:$0x75643120]  ;;  %v1102_v38 = vsel %vm461_vm14, %v1096_v1, %v1101_v35 }
 0x23e   : > { %1360 = vrot.lane.b32.xlu1 %v1356_v26, %s3484_s3  ;;  %1358 = vrot.lane.b32.xlu0 %v1354_v27, %s3484_s3  ;;  %1370 = vst [vmem:[#allocation1] ss:$2 sm:$0xff] %v1368_v22  ;;  %v1455_v22 = vld [vmem:[%s2854_s21 + $0x2] sm:$0x3f]  ;;  %vm3502_vm14 = vcmask 252928  }
 0x23f   : > { %1104 = vst [vmem:[#allocation2 + $0xc8] sm:$0x33] %v1102_v38 }
 0x240   : > { %v1114_v46 = vpop.permute.xlu1 %1113 }
 0x241   : > { %v1117_v48 = vrot.slane %v1114_v46, 4 }
 0x243   : > { %v1119_v51 = vsel %vm219_vm2, %v1117_v48, %v1118_v40  ;;  %v1479_v48 = vld [vmem:[%s2854_s21 + $0x4] sm:$0x3f] }
 0x244   : > { %v1120_v54 = vsel %vm480_vm15, %v1114_v46, %v1119_v51  ;;  %vm3504_vm15 = vcmask 244736  }
 0x245   : > { %v1373_v44 = vld.sshfl [vmem:[#allocation1 + $0x8] sm:$0xff pattern:$0x75643120]  ;;  %v1371_v45 = vld.sshfl [vmem:[#allocation1] sm:$0xff pattern:$0x75643120] }
 0x246   : > { %1377 = vrot.lane.b32.xlu0 %v1373_v44, %s3485_s6  ;;  %1388 = vst [vmem:[#allocation1 + $0x1] ss:$2 sm:$0xff] %v1385_v39  ;;  %1375 = vrot.lane.b32.xlu2 %v1371_v45, %s3485_s6 }
 0x247   : > { %1122 = vst [vmem:[#allocation2 + $0xc8] sm:$0xcc] %v1120_v54 }
 0x248   : > { %v1133_v50 = vpop.permute.xlu0 %1132  ;;  %v1184_v13 = vpop.permute.xlu2 %1183 }
 0x249   : > { %v1135_v52 = vrot.slane %v1133_v50, 4  ;;  %v1187_v20 = vrot.slane %v1184_v13, 4 }
 0x24b   : > { %v1136_v56 = vsel %vm219_vm2, %v1134_v47, %v1135_v52 }
 0x24c   : > { %v1137_v57 = vsel %vm498_vm7, %v1131_v41, %v1136_v56  ;;  %vm3492_vm7 = vcmask 482304  }
 0x24d   : > { %v1389_v58 = vld.sshfl [vmem:[#allocation1] sm:$0xff pattern:$0x75643120]  ;;  %v1391_v59 = vld.sshfl [vmem:[#allocation1 + $0x8] sm:$0xff pattern:$0x75643120] }
 0x24e   : > { %1393 = vrot.lane.b32.xlu1 %v1389_v58, %s3486_s8  ;;  %1405 = vst [vmem:[#allocation1] ss:$2 sm:$0xff] %v1403_v55  ;;  %1395 = vrot.lane.b32.xlu2 %v1391_v59, %s3486_s8  ;;  %v1497_v58 = vld [vmem:[%s2854_s21 + $0x4] sm:$0x3f]  ;;  %s2038_s8 = scalar_lea.hbm %s3407_s2, %s2327_s27 }
 0x24f   : > { %1139 = vst [vmem:[#allocation2 + $0xd0] sm:$0x33] %v1137_v57  ;;  %s2041_s12 = sshll.u32 %s2038_s8, 4  ;;  %s2042_s12 = int_to_ptr.hbm [resolvable:$true] %s2041_s12 }
 0x250   : > { %v1149_v0 = vpop.permute.xlu1 %1148  ;;  %v1203_v28 = vpop.permute.xlu2 %1202 }
 0x251   : > { %v1152_v1 = vrot.slane %v1149_v0, 4  ;;  %v1205_v29 = vrot.slane %v1203_v28, 4 }
 0x253   : > { %v1154_v2 = vsel %vm219_vm2, %v1152_v1, %v1153_v63 }
 0x254   : > { %v1155_v3 = vsel %vm517_vm6, %v1149_v0, %v1154_v2  ;;  %vm3491_vm6 = vcmask 490496  }
 0x255   : > { %v1408_v4 = vld.sshfl [vmem:[#allocation1 + $0x8] sm:$0xff pattern:$0x75643120]  ;;  %v1406_v7 = vld.sshfl [vmem:[#allocation1] sm:$0xff pattern:$0x75643120] }
 0x256   : > { %1412 = vrot.lane.b32.xlu1 %v1408_v4, %s3487_s19  ;;  %1410 = vrot.lane.b32.xlu0 %v1406_v7, %s3487_s19  ;;  %1423 = vst [vmem:[#allocation1 + $0x1] ss:$2 sm:$0xff] %v1420_v53  ;;  %s2025_s19 = scalar_lea.sflag [#allocation5], %s2850_s30 }
 0x257   : > { %1157 = vst [vmem:[#allocation2 + $0xd0] sm:$0xcc] %v1155_v3  ;;  %v1514_v3 = vld [vmem:[%s2854_s21 + $0x4] sm:$0x3f] }
 0x258   : > { %v1166_v8 = vpop.permute.xlu0 %1165  ;;  %v1168_v9 = vpop.permute.xlu1 %1167 }
 0x259   : > { %v1169_v10 = vrot.slane %v1166_v8, 4  ;;  %v1170_v11 = vrot.slane %v1168_v9, 4 }
 0x25b   : > { %v1171_v14 = vsel %vm219_vm2, %v1169_v10, %v1170_v11 }
 0x25c   : > { %v1172_v17 = vsel %vm535_vm5, %v1166_v8, %v1171_v14  ;;  %vm3489_vm5 = vcmask 506880  }
 0x25d   : > { %v1426_v18 = vld.sshfl [vmem:[#allocation1 + $0x8] sm:$0xff pattern:$0x75643120]  ;;  %v1424_v19 = vld.sshfl [vmem:[#allocation1] sm:$0xff pattern:$0x75643120] }
 0x25e   : > { %1430 = vrot.lane.b32.xlu0 %v1426_v18, %s3488_s4  ;;  %1440 = vst [vmem:[#allocation1] ss:$2 sm:$0xff] %v1438_v12  ;;  %1428 = vrot.lane.b32.xlu2 %v1424_v19, %s3488_s4  ;;  %s2595_s4 = sshra.s32 %s2042_s12, 4  ;;  %s2596_s4 = int_to_ptr.hbm [resolvable:$true] %s2595_s4 }
 0x25f   : > { %1174 = vst [vmem:[#allocation2 + $0xd8] sm:$0x33] %v1172_v17  ;;  %v1532_v17 = vld [vmem:[%s2854_s21 + $0x4] sm:$0x3f]  ;;  %p2602_p8 = scmp.lt.s32.totalorder %s2596_s4, %s3407_s2 }
 0x260   : > { %v1186_v36 = vpop.permute.xlu0 %1185  ;;  %v1236_v40 = vpop.permute.xlu2 %1235 }
 0x261   : > { %v1188_v21 = vrot.slane %v1186_v36, 4  ;;  %v1239_v52 = vrot.slane %v1236_v40, 4 }
 0x263   : > { %v1189_v23 = vsel %vm219_vm2, %v1187_v20, %v1188_v21 }
 0x264   : > { %v1190_v49 = vsel %vm554_vm3, %v1184_v13, %v1189_v23  ;;  %vm3490_vm3 = vcmask 498688  }
 0x265   : > { %v1441_v26 = vld.sshfl [vmem:[#allocation1] sm:$0xff pattern:$0x75643120]  ;;  %v1443_v27 = vld.sshfl [vmem:[#allocation1 + $0x8] sm:$0xff pattern:$0x75643120] }
 0x266   : > { %1445 = vrot.lane.b32.xlu1 %v1441_v26, %s2721_s22  ;;  %1458 = vst [vmem:[#allocation1 + $0x1] ss:$2 sm:$0xff] %v1455_v22  ;;  %1447 = vrot.lane.b32.xlu2 %v1443_v27, %s2721_s22  ;;  %v1549_v26 = vld [vmem:[%s2854_s21 + $0x4] sm:$0x3f]  ;;  %s3497_s22 = smov 124  }
 0x267   : > { %1192 = vst [vmem:[#allocation2 + $0xd8] sm:$0xcc] %v1190_v49 }
 0x268   : > { %v1201_v30 = vpop.permute.xlu1 %1200  ;;  %v1256_v56 = vpop.permute.xlu2 %1255 }
 0x269   : > { %v1204_v31 = vrot.slane %v1201_v30, 4  ;;  %v1258_v0 = vrot.slane %v1256_v56, 4 }
 0x26b   : > { %v1206_v34 = vsel %vm219_vm2, %v1204_v31, %v1205_v29 }
 0x26c   : > { %v1207_v35 = vsel %vm3489_vm5, %v1201_v30, %v1206_v34  ;;  %vm3505_vm5 = vcmask 236544  }
 0x26d   : > { %v1461_v38 = vld.sshfl [vmem:[#allocation1 + $0x8] sm:$0xff pattern:$0x75643120]  ;;  %v1459_v39 = vld.sshfl [vmem:[#allocation1] sm:$0xff pattern:$0x75643120] }
 0x26e   : > { %1465 = vrot.lane.b32.xlu1 %v1461_v38, %s2722_s18  ;;  %1463 = vrot.lane.b32.xlu0 %v1459_v39, %s2722_s18  ;;  %1209 = vst [vmem:[#allocation2 + $0xe0] sm:$0x33] %v1207_v35  ;;  %s3493_s18 = smov 126   ;;  %v1567_v39 = vld [vmem:[%s2854_s21 + $0x4] sm:$0x3f] }
 0x26f   : > { %1475 = vst [vmem:[#allocation1] ss:$2 sm:$0xff] %v1473_v37 }
 0x270   : > { %v1219_v41 = vpop.permute.xlu0 %1218  ;;  %v1221_v44 = vpop.permute.xlu1 %1220 }
 0x271   : > { %v1222_v45 = vrot.slane %v1219_v41, 4  ;;  %v1223_v46 = vrot.slane %v1221_v44, 4  ;;  %v1271_v7 = vpop.permute.xlu2 %1270 }
 0x272   : > { %v1274_v10 = vrot.slane %v1271_v7, 4 }
 0x273   : > { %v1224_v47 = vsel %vm219_vm2, %v1222_v45, %v1223_v46 }
 0x274   : > { %v1225_v50 = vsel %vm3490_vm3, %v1219_v41, %v1224_v47  ;;  %vm3506_vm3 = vcmask 228352  }
 0x275   : > { %1227 = vst [vmem:[#allocation2 + $0xe0] sm:$0xcc] %v1225_v50  ;;  %v1584_v50 = vld [vmem:[%s2854_s21 + $0x4] sm:$0x3f] }
 0x276   : > { %v1476_v51 = vld.sshfl [vmem:[#allocation1] sm:$0xff pattern:$0x75643120] }
 0x277   : > { %1482 = vst [vmem:[#allocation1 + $0x1] ss:$2 sm:$0xff] %v1479_v48 }
 0x278   : > { %1478 = vst [vmem:[#allocation2 + $0x120] sm:$0x33] %v1476_v51  ;;  %v1238_v54 = vpop.permute.xlu0 %1237 }
 0x279   : > { %v1240_v55 = vrot.slane %v1238_v54, 4  ;;  %v1291_v20 = vpop.permute.xlu2 %1290 }
 0x27a   : > { %v1293_v36 = vrot.slane %v1291_v20, 4  ;;  %v2268_v20 = vld [vmem:[#allocation2 + $0xd0] sm:$0xf] }
 0x27b   : > { %v1241_v57 = vsel %vm219_vm2, %v1239_v52, %v1240_v55 }
 0x27c   : > { %v1242_v59 = vsel %vm3491_vm6, %v1236_v40, %v1241_v57  ;;  %vm3512_vm6 = vcmask 990208  }
 0x27d   : > { %1244 = vst [vmem:[#allocation2 + $0xe8] sm:$0x33] %v1242_v59 }
 0x27e   : > { %v1483_v60 = vld.sshfl [vmem:[#allocation1] sm:$0xff pattern:$0x75643120]  ;;  %v1485_v63 = vld.sshfl [vmem:[#allocation1 + $0x8] sm:$0xff pattern:$0x75643120] }
 0x27f   : > { %1487 = vrot.lane.b32.xlu1 %v1483_v60, %s2688_s1  ;;  %1499 = vst [vmem:[#allocation1] ss:$2 sm:$0xff] %v1497_v58  ;;  %1489 = vrot.lane.b32.xlu2 %v1485_v63, %s2688_s1  ;;  %s3495_s1 = smov 125   ;;  %v2276_v60 = vld [vmem:[#allocation2 + $0xe0] sm:$0xf] }
 0x280   : > { %v1254_v1 = vpop.permute.xlu1 %1253  ;;  %v1602_v63 = vld [vmem:[%s2854_s21 + $0x4] sm:$0x3f]  ;;  %s2390_s21 = smul.u32 48, %s2850_s30 }
 0x281   : > { %v1257_v53 = vrot.slane %v1254_v1, 4 }
 0x283   : > { %v1259_v2 = vsel %vm219_vm2, %v1257_v53, %v1258_v0 }
 0x284   : > { %v1260_v4 = vsel %vm3492_vm7, %v1254_v1, %v1259_v2  ;;  %vm3513_vm7 = vcmask 982016  }
 0x285   : > { %1262 = vst [vmem:[#allocation2 + $0xe8] sm:$0xcc] %v1260_v4 }
 0x286   : > { %v1500_v8 = vld.sshfl [vmem:[#allocation1] sm:$0xff pattern:$0x75643120]  ;;  %v1502_v9 = vld.sshfl [vmem:[#allocation1 + $0x8] sm:$0xff pattern:$0x75643120] }
 0x287   : > { %1504 = vrot.lane.b32.xlu0 %v1500_v8, %s3493_s18  ;;  %1506 = vrot.lane.b32.xlu1 %v1502_v9, %s3493_s18  ;;  %1517 = vst [vmem:[#allocation1 + $0x1] ss:$2 sm:$0xff] %v1514_v3  ;;  %v2361_v8 = vld [vmem:[#allocation2 + $0xe4] sm:$0xf] }
 0x288   : > { %v1273_v11 = vpop.permute.xlu0 %1272  ;;  %v1324_v38 = vpop.permute.xlu2 %1323 }
 0x289   : > { %v1275_v12 = vrot.slane %v1273_v11, 4  ;;  %v1327_v44 = vrot.slane %v1324_v38, 4 }
 0x28b   : > { %v1276_v13 = vsel %vm219_vm2, %v1274_v10, %v1275_v12 }
 0x28c   : > { %v1277_v14 = vsel %vm3494_vm10, %v1271_v7, %v1276_v13  ;;  %v2362_v2 = vld [vmem:[#allocation2 + $0xe4] sm:$0xf0]  ;;  %v2278_v9 = vld [vmem:[#allocation2 + $0xe8] sm:$0xf0] }
 0x28d   : > { %1279 = vst [vmem:[#allocation2 + $0xf0] sm:$0x33] %v1277_v14  ;;  %v2277_v12 = vor.u32 %v2362_v2, %v2276_v60  ;;  %v3242_v13 = vor.u32 %v2361_v8, %v2278_v9 }
 0x28e   : > { %v1520_v18 = vld.sshfl [vmem:[#allocation1 + $0x8] sm:$0xff pattern:$0x75643120]  ;;  %v1518_v19 = vld.sshfl [vmem:[#allocation1] sm:$0xff pattern:$0x75643120] }
 0x28f   : > { %1524 = vrot.lane.b32.xlu0 %v1520_v18, %s3495_s1  ;;  %1534 = vst [vmem:[#allocation1] ss:$2 sm:$0xff] %v1532_v17  ;;  %1522 = vrot.lane.b32.xlu2 %v1518_v19, %s3495_s1 }
 0x290   : > { %v1289_v21 = vpop.permute.xlu1 %1288  ;;  %v1343_v54 = vpop.permute.xlu2 %1342 }
 0x291   : > { %v1292_v22 = vrot.slane %v1289_v21, 4  ;;  %v1345_v55 = vrot.slane %v1343_v54, 4 }
 0x293   : > { %v1294_v23 = vsel %vm219_vm2, %v1292_v22, %v1293_v36  ;;  %v2359_v22 = vld [vmem:[#allocation2 + $0xd4] sm:$0xf] }
 0x294   : > { %v1295_v49 = vsel %vm3496_vm11, %v1289_v21, %v1294_v23  ;;  %v2360_v21 = vld [vmem:[#allocation2 + $0xd4] sm:$0xf0]  ;;  %v2270_v23 = vld [vmem:[#allocation2 + $0xd8] sm:$0xf0]  ;;  %vm1903_vm11 = vcmask 1041408  }
 0x295   : > { %1297 = vst [vmem:[#allocation2 + $0xf0] sm:$0xcc] %v1295_v49 }
 0x296   : > { %v1535_v27 = vld.sshfl [vmem:[#allocation1] sm:$0xff pattern:$0x75643120]  ;;  %v1537_v28 = vld.sshfl [vmem:[#allocation1 + $0x8] sm:$0xff pattern:$0x75643120] }
 0x297   : > { %1539 = vrot.lane.b32.xlu0 %v1535_v27, %s3497_s22  ;;  %1541 = vrot.lane.b32.xlu1 %v1537_v28, %s3497_s22  ;;  %1552 = vst [vmem:[#allocation1 + $0x1] ss:$2 sm:$0xff] %v1549_v26  ;;  %v2260_v27 = vld [vmem:[#allocation2 + $0xc0] sm:$0xf]  ;;  %v2358_v28 = vld [vmem:[#allocation2 + $0xc4] sm:$0xf0] }
 0x298   : > { %v1306_v29 = vpop.permute.xlu0 %1305  ;;  %v1308_v30 = vpop.permute.xlu1 %1307 }
 0x299   : > { %v1309_v31 = vrot.slane %v1306_v29, 4  ;;  %v1310_v34 = vrot.slane %v1308_v30, 4 }
 0x29b   : > { %v1311_v35 = vsel %vm219_vm2, %v1309_v31, %v1310_v34  ;;  %v2269_v31 = vor.u32 %v2360_v21, %v2268_v20  ;;  %v3249_v34 = vor.u32 %v2359_v22, %v2270_v23 }
 0x29c   : > { %v1312_v37 = vsel %vm3498_vm12, %v1306_v29, %v1311_v35  ;;  %v2284_v58 = vld [vmem:[#allocation2 + $0xf0] sm:$0xf]  ;;  %v2363_v59 = vld [vmem:[#allocation2 + $0xf4] sm:$0xf]  ;;  %v2262_v35 = vld [vmem:[#allocation2 + $0xc8] sm:$0xf0] }
 0x29d   : > { %1314 = vst [vmem:[#allocation2 + $0xf8] sm:$0x33] %v1312_v37 }
 0x29e   : > { %v1555_v40 = vld.sshfl [vmem:[#allocation1 + $0x8] sm:$0xff pattern:$0x75643120]  ;;  %v1553_v41 = vld.sshfl [vmem:[#allocation1] sm:$0xff pattern:$0x75643120] }
 0x29f   : > { %1559 = vrot.lane.b32.xlu0 %v1555_v40, %s3499_s29  ;;  %1569 = vst [vmem:[#allocation1] ss:$2 sm:$0xff] %v1567_v39  ;;  %1557 = vrot.lane.b32.xlu2 %v1553_v41, %s3499_s29  ;;  %v2261_v40 = vor.u32 %v2358_v28, %v2260_v27 }
 0x2a0   : > { %v1326_v45 = vpop.permute.xlu0 %1325  ;;  %v1376_v36 = vpop.permute.xlu2 %1375 }
 0x2a1   : > { %v1328_v46 = vrot.slane %v1326_v45, 4  ;;  %v1379_v37 = vrot.slane %v1376_v36, 4  ;;  %v2356_v45 = vld [vmem:[#allocation2 + $0xb4] sm:$0xf0] }
 0x2a3   : > { %v1329_v47 = vsel %vm219_vm2, %v1327_v44, %v1328_v46  ;;  %v2252_v44 = vld [vmem:[#allocation2 + $0xb0] sm:$0xf]  ;;  %v2355_v46 = vld [vmem:[#allocation2 + $0xb4] sm:$0xf] }
 0x2a4   : > { %v1330_v48 = vsel %vm3500_vm13, %v1324_v38, %v1329_v47  ;;  %v2254_v47 = vld [vmem:[#allocation2 + $0xb8] sm:$0xf0] }
 0x2a5   : > { %1332 = vst [vmem:[#allocation2 + $0xf8] sm:$0xcc] %v1330_v48  ;;  %v3261_v54 = vor.u32 %v2355_v46, %v2254_v47 }
 0x2a6   : > { %v1570_v51 = vld.sshfl [vmem:[#allocation1] sm:$0xff pattern:$0x75643120]  ;;  %v1572_v52 = vld.sshfl [vmem:[#allocation1 + $0x8] sm:$0xff pattern:$0x75643120] }
 0x2a7   : > { %1574 = vrot.lane.b32.xlu1 %v1570_v51, %s3501_s28  ;;  %1587 = vst [vmem:[#allocation1 + $0x1] ss:$2 sm:$0xff] %v1584_v50  ;;  %1576 = vrot.lane.b32.xlu2 %v1572_v52, %s3501_s28  ;;  %v2253_v52 = vor.u32 %v2356_v45, %v2252_v44 }
 0x2a8   : > { %v1341_v56 = vpop.permute.xlu1 %1340  ;;  %v1396_v51 = vpop.permute.xlu2 %1395 }
 0x2a9   : > { %v1344_v57 = vrot.slane %v1341_v56, 4 }
 0x2ab   : > { %v1346_v0 = vsel %vm219_vm2, %v1344_v57, %v1345_v55 }
 0x2ac   : > { %v2364_v1 = vld [vmem:[#allocation2 + $0xf4] sm:$0xf0]  ;;  %v2286_v53 = vld [vmem:[#allocation2 + $0xf8] sm:$0xf0]  ;;  %v1347_v3 = vsel %vm3502_vm14, %v1341_v56, %v1346_v0  ;;  %vm3517_vm14 = vmmov %vm3512_vm6 }
 0x2ad   : > { %v2285_v4 = vor.u32 %v2364_v1, %v2284_v58  ;;  %v3237_v7 = vor.u32 %v2363_v59, %v2286_v53  ;;  %1349 = vst [vmem:[#allocation2 + $0x100] sm:$0x33] %v1347_v3 }
 0x2ae   : > { %v1590_v10 = vld.sshfl [vmem:[#allocation1 + $0x8] sm:$0xff pattern:$0x75643120]  ;;  %v1588_v11 = vld.sshfl [vmem:[#allocation1] sm:$0xff pattern:$0x75643120] }
 0x2af   : > { %1594 = vrot.lane.b32.xlu1 %v1590_v10, %s3503_s17  ;;  %1592 = vrot.lane.b32.xlu0 %v1588_v11, %s3503_s17  ;;  %1604 = vst [vmem:[#allocation1] ss:$2 sm:$0xff] %v1602_v63 }
 0x2b0   : > { %1928 = vmatpush.bf16.msra.mxu1 %v2285_v4  ;;  %2373 = vmatpush.bf16.msrb.mxu3 %v3237_v7  ;;  %v1361_v14 = vpop.permute.xlu1 %1360  ;;  %v1359_v17 = vpop.permute.xlu0 %1358 }
 0x2b1   : > { %v1363_v18 = vrot.slane %v1361_v14, 4  ;;  %v1362_v19 = vrot.slane %v1359_v17, 4  ;;  %938 = vrot.lane.b32.xlu2 %v3043_v24, %s3499_s29  ;;  %v2357_v24 = vld [vmem:[#allocation2 + $0xc4] sm:$0xf] }
 0x2b2   : > { %v3256_v41 = vor.u32 %v2357_v24, %v2262_v35 }
 0x2b3   : > { %v1364_v49 = vsel %vm219_vm2, %v1362_v19, %v1363_v18 }
 0x2b4   : > { %1929 = vmatpush.bf16.msra.mxu1 %v2277_v12  ;;  %2374 = vmatpush.bf16.msrb.mxu3 %v3242_v13  ;;  %v1365_v26 = vsel %vm3504_vm15, %v1359_v17, %v1364_v49  ;;  %vm1896_vm15 = vcmask 556032  }
 0x2b5   : > { %1367 = vst [vmem:[#allocation2 + $0x100] sm:$0xcc] %v1365_v26 }
 0x2b6   : > { %v1607_v29 = vld.sshfl [vmem:[#allocation1 + $0x8] sm:$0xff pattern:$0x75643120]  ;;  %v1605_v30 = vld.sshfl [vmem:[#allocation1] sm:$0xff pattern:$0x75643120] }
 0x2b7   : > { %1611 = vrot.lane.b32.xlu1 %v1607_v29, %s2695_s23  ;;  %1609 = vrot.lane.b32.xlu0 %v1605_v30, %s2695_s23  ;;  %s3352_s23 = scalar_lea.vmem [#allocation8], %s2390_s21 }
 0x2b8   : > { %1930 = vmatpush.bf16.msra.mxu1 %v2269_v31  ;;  %2375 = vmatpush.bf16.msrb.mxu3 %v3249_v34  ;;  %v1378_v38 = vpop.permute.xlu0 %1377  ;;  %v1429_v63 = vpop.permute.xlu2 %1428  ;;  %s2039_s13 = sshll.u32 %s3352_s23, 4  ;;  %s2040_s13 = int_to_ptr.vmem [resolvable:$true] %s2039_s13 }
 0x2b9   : > { %v1380_v39 = vrot.slane %v1378_v38, 4  ;;  %957 = vrot.lane.b32.xlu2 %v3052_v33, %s3501_s28  ;;  %v1398_v33 = vrot.slane %v1396_v51, 4 }
 0x2bb   : > { %v1381_v48 = vsel %vm219_vm2, %v1379_v37, %v1380_v39 }
 0x2bc   : > { %1931 = vmatpush.bf16.msra.mxu1 %v2261_v40  ;;  %2376 = vmatpush.bf16.msrb.mxu3 %v3256_v41  ;;  %v1382_v50 = vsel %vm3505_vm5, %v1376_v36, %v1381_v48 }
 0x2bd   : > { %1384 = vst [vmem:[#allocation2 + $0x108] sm:$0x33] %v1382_v50 }
 0x2bf   : > { %922 = vrot.lane.b32.xlu1 %v3038_v16, %s3497_s22  ;;  %920 = vrot.lane.b32.xlu0 %v3036_v15, %s3497_s22 }
 0x2c0   : > { %1932 = vmatpush.bf16.msra.mxu1 %v2253_v52  ;;  %2377 = vmatpush.bf16.msrb.mxu3 %v3261_v54  ;;  %v1394_v55 = vpop.permute.xlu1 %1393 }
 0x2c1   : > { %v1397_v56 = vrot.slane %v1394_v55, 4  ;;  %885 = vrot.lane.b32.xlu2 %v3022_v61, %s3493_s18 }
 0x2c3   : > { %v1399_v57 = vsel %vm219_vm2, %v1397_v56, %v1398_v33 }
 0x2c4   : > { %v1400_v58 = vsel %vm3506_vm3, %v1394_v55, %v1399_v57 }
 0x2c5   : > { %1402 = vst [vmem:[#allocation2 + $0x108] sm:$0xcc] %v1400_v58 }
 0x2c7   : > { %955 = vrot.lane.b32.xlu1 %v3050_v32, %s3501_s28  ;;  %940 = vrot.lane.b32.xlu0 %v3045_v25, %s3499_s29  ;;  %v1432_v25 = vrot.slane %v1429_v63, 4  ;;  %s2601_s29 = scalar_lea.hbm %s3407_s2, 192 }
 0x2c8   : > { %v1413_v15 = vpop.permute.xlu1 %1412  ;;  %v1411_v16 = vpop.permute.xlu0 %1410 }
 0x2c9   : > { %v1415_v59 = vrot.slane %v1413_v15, 4  ;;  %v1414_v60 = vrot.slane %v1411_v16, 4  ;;  %905 = vrot.lane.b32.xlu2 %v3031_v6, %s3495_s1  ;;  %v1448_v6 = vpop.permute.xlu2 %1447 }
 0x2ca   : > { %v1450_v3 = vrot.slane %v1448_v6, 4 }
 0x2cb   : > { %v1416_v61 = vsel %vm219_vm2, %v1414_v60, %v1415_v59 }
 0x2cc   : > { %v1417_v0 = vsel %vm794_vm9, %v1411_v16, %v1416_v61  ;;  %vm3511_vm9 = vcmask 998400  }
 0x2cd   : > { %1419 = vst [vmem:[#allocation2 + $0x110] sm:$0x33] %v1417_v0  ;;  %vm3515_vm12 = vmmov %vm3511_vm9 }
 0x2cf   : > { %975 = vrot.lane.b32.xlu1 %v3059_v43, %s3503_s17  ;;  %973 = vrot.lane.b32.xlu0 %v3057_v42, %s3503_s17 }
 0x2d0   : > { %v1431_v32 = vpop.permute.xlu0 %1430 }
 0x2d1   : > { %v1433_v1 = vrot.slane %v1431_v32, 4  ;;  %v2152_v32 = vld [vmem:[#allocation6] sm:$0xf] }
 0x2d3   : > { %v1434_v53 = vsel %vm219_vm2, %v1432_v25, %v1433_v1  ;;  %v2331_v1 = vld [vmem:[#allocation6 + $0x8] sm:$0xf0] }
 0x2d4   : > { %v1435_v2 = vsel %vm813_vm1, %v1429_v63, %v1434_v53  ;;  %vm3507_vm1 = vcmask 1031168   ;;  %v2153_v53 = vor.u32 %v2331_v1, %v2152_v32 }
 0x2d5   : > { %1437 = vst [vmem:[#allocation2 + $0x110] sm:$0xcc] %v1435_v2  ;;  %vm3519_vm3 = vmmov %vm3507_vm1 }
 0x2d6   : > { %1972 = vmatmul.bf16.vlgmr.msra.gmra.mxu3 %v2153_v53  ;;  %1918 = vmatmul.bf16.vlgmr.msra.gmra.mxu0 %v2153_v53 }
 0x2d7   : > { %903 = vrot.lane.b32.xlu1 %v3029_v5, %s3495_s1  ;;  %887 = vrot.lane.b32.xlu0 %v3024_v62, %s3493_s18  ;;  %s2597_s18 = scalar_lea.hbm %s2596_s4, 48 }
 0x2d8   : > { %v1446_v43 = vpop.permute.xlu1 %1445  ;;  %p2598_p1 = scmp.ne.s32.totalorder %s2596_s4, %s2597_s18  ;;  %p2603_p10 = scmp.lt.s32.totalorder %s2601_s29, %s2597_s18 }
 0x2d9   : > { %v1449_v4 = vrot.slane %v1446_v43, 4  ;;  %v1490_v5 = vpop.permute.xlu2 %1489 }
 0x2da   : > { %v1492_v18 = vrot.slane %v1490_v5, 4  ;;  %p2599_p3 = pnand %p2598_p1, %p2824_p0  ;;  %p2604_p11 = por %p2603_p10, %p2602_p8 }
 0x2db   : > { %v1451_v42 = vsel %vm219_vm2, %v1449_v4, %v1450_v3 }
 0x2dc   : > { %v1452_v8 = vsel %vm831_vm4, %v1446_v43, %v1451_v42  ;;  %vm3508_vm4 = vcmask 1022976   ;;  %p2600_p7 = pneg %p2599_p3 }
 0x2dd   : > { %1454 = vst [vmem:[#allocation2 + $0x118] sm:$0x33] %v1452_v8  ;;  %vm3518_vm5 = vmmov %vm3508_vm4 }
 0x2de   : > { %p2605_p12 = pnand %p2604_p11, %p2600_p7 }
 0x2e0   : > { %v1466_v9 = vpop.permute.xlu1 %1465  ;;  %v1464_v10 = vpop.permute.xlu0 %1463 }
 0x2e1   : > { %v1468_v11 = vrot.slane %v1466_v9, 4  ;;  %v1467_v12 = vrot.slane %v1464_v10, 4 }
 0x2e3   : > { %v1469_v14 = vsel %vm219_vm2, %v1467_v12, %v1468_v11 }
 0x2e4   : > { %v1470_v17 = vsel %vm850_vm8, %v1464_v10, %v1469_v14  ;;  %vm3510_vm8 = vcmask 1006592  }
 0x2e5   : > { %1472 = vst [vmem:[#allocation2 + $0x118] sm:$0xcc] %v1470_v17  ;;  %vm3516_vm13 = vmmov %vm3510_vm8 }
 0x2e9   : > { %v1523_v28 = vpop.permute.xlu2 %1522 }
 0x2ea   : > { %v1526_v29 = vrot.slane %v1523_v28, 4 }
 0x2f1   : > { %v1488_v62 = vpop.permute.xlu1 %1487 }
 0x2f2   : > { %v1491_v19 = vrot.slane %v1488_v62, 4 }
 0x2f4   : > { %v1493_v20 = vsel %vm219_vm2, %v1491_v19, %v1492_v18  ;;  %v3312_v18 = vld [vmem:[#allocation6 + $0x18] sm:$0xff] }
 0x2f5   : > { %v1494_v36 = vsel %vm221_vm0, %v1488_v62, %v1493_v20  ;;  %vm3509_vm0 = vcmask 1014784   ;;  %v1678_v20 = vunpack.c.l.b16 %v3312_v18 }
 0x2f6   : > { %1496 = vst [vmem:[#allocation2 + $0x120] sm:$0xcc] %v1494_v36  ;;  %vm3514_vm10 = vmmov %vm3509_vm0 }
 0x2f9   : > { %v1505_v21 = vpop.permute.xlu0 %1504  ;;  %v1507_v22 = vpop.permute.xlu1 %1506 }
 0x2fa   : > { %v1508_v23 = vrot.slane %v1505_v21, 4  ;;  %v1509_v49 = vrot.slane %v1507_v22, 4  ;;  %v1558_v44 = vpop.permute.xlu2 %1557 }
 0x2fb   : > { %v1561_v47 = vrot.slane %v1558_v44, 4 }
 0x2fc   : > { %v1510_v26 = vsel %vm219_vm2, %v1508_v23, %v1509_v49  ;;  %v1684_v23 = vpack.c.b16 %v1678_v20, %v1678_v20 }
 0x2fd   : > { %v1511_v27 = vsel %vm3507_vm1, %v1505_v21, %v1510_v26 }
 0x2fe   : > { %1513 = vst [vmem:[#allocation2 + $0x128] sm:$0x33] %v1511_v27  ;;  %1977 = vmatmul.bf16.gmra.mxu3 %v1684_v23  ;;  %1923 = vmatmul.bf16.gmra.mxu0 %v1684_v23 }
 0x301   : > { %v1525_v30 = vpop.permute.xlu0 %1524 }
 0x302   : > { %v1527_v31 = vrot.slane %v1525_v30, 4  ;;  %v1577_v33 = vpop.permute.xlu2 %1576 }
 0x303   : > { %v1579_v55 = vrot.slane %v1577_v33, 4  ;;  %v2369_v33 = vld [vmem:[#allocation2 + $0x124] sm:$0xf] }
 0x304   : > { %v1528_v24 = vsel %vm219_vm2, %v1526_v29, %v1527_v31 }
 0x305   : > { %v1529_v35 = vsel %vm3508_vm4, %v1523_v28, %v1528_v24 }
 0x306   : > { %1531 = vst [vmem:[#allocation2 + $0x128] sm:$0xcc] %v1529_v35 }
 0x309   : > { %v1540_v37 = vpop.permute.xlu0 %1539  ;;  %v1542_v38 = vpop.permute.xlu1 %1541 }
 0x30a   : > { %v1543_v39 = vrot.slane %v1540_v37, 4  ;;  %v1544_v40 = vrot.slane %v1542_v38, 4 }
 0x30b   : > { %v939_v25 = vpop.permute.xlu2 %938 }
 0x30c   : > { %v1545_v45 = vsel %vm219_vm2, %v1543_v39, %v1544_v40  ;;  %v942_v49 = vrot.slane %v939_v25, 4 }
 0x30d   : > { %v1546_v46 = vsel %vm3509_vm0, %v1540_v37, %v1545_v45 }
 0x30e   : > { %1548 = vst [vmem:[#allocation2 + $0x130] sm:$0x33] %v1546_v46 }
 0x311   : > { %v1560_v48 = vpop.permute.xlu0 %1559 }
 0x312   : > { %v1562_v50 = vrot.slane %v1560_v48, 4 }
 0x313   : > { %v958_v8 = vpop.permute.xlu2 %957 }
 0x314   : > { %v1563_v51 = vsel %vm219_vm2, %v1561_v47, %v1562_v50  ;;  %v960_v36 = vrot.slane %v958_v8, 4  ;;  %v2370_v50 = vld [vmem:[#allocation2 + $0x124] sm:$0xf0] }
 0x315   : > { %v1564_v52 = vsel %vm3510_vm8, %v1558_v44, %v1563_v51  ;;  %v2310_v51 = vld [vmem:[#allocation2 + $0x128] sm:$0xf0] }
 0x316   : > { %1566 = vst [vmem:[#allocation2 + $0x130] sm:$0xcc] %v1564_v52  ;;  %v2308_v52 = vld [vmem:[#allocation2 + $0x120] sm:$0xf] }
 0x319   : > { %v1575_v56 = vpop.permute.xlu1 %1574 }
 0x31a   : > { %v1578_v57 = vrot.slane %v1575_v56, 4 }
 0x31b   : > { %v886_v37 = vpop.permute.xlu2 %885 }
 0x31c   : > { %v1580_v58 = vsel %vm219_vm2, %v1578_v57, %v1579_v55  ;;  %v2309_v57 = vor.u32 %v2370_v50, %v2308_v52  ;;  %v2154_v50 = vld [vmem:[#allocation6 + $0xc] sm:$0xf0] }
 0x31d   : > { %v1581_v15 = vsel %vm3511_vm9, %v1575_v56, %v1580_v58  ;;  %v2316_v40 = vld [vmem:[#allocation2 + $0x130] sm:$0xf]  ;;  %v2371_v44 = vld [vmem:[#allocation2 + $0x134] sm:$0xf]  ;;  %v3325_v58 = vor.u32 %v2369_v33, %v2310_v51 }
 0x31e   : > { %1583 = vst [vmem:[#allocation2 + $0x138] sm:$0x33] %v1581_v15  ;;  %v2300_v15 = vld [vmem:[#allocation2 + $0x110] sm:$0xf] }
 0x321   : > { %v1595_v16 = vpop.permute.xlu1 %1594  ;;  %v1593_v59 = vpop.permute.xlu0 %1592 }
 0x322   : > { %v1597_v60 = vrot.slane %v1595_v16, 4  ;;  %v1596_v63 = vrot.slane %v1593_v59, 4  ;;  %v2367_v16 = vld [vmem:[#allocation2 + $0x114] sm:$0xf] }
 0x323   : > { %v906_v53 = vpop.permute.xlu2 %905 }
 0x324   : > { %v1598_v61 = vsel %vm219_vm2, %v1596_v63, %v1597_v60  ;;  %v2368_v63 = vld [vmem:[#allocation2 + $0x114] sm:$0xf0]  ;;  %v908_v8 = vrot.slane %v906_v53, 4 }
 0x325   : > { %v1599_v0 = vsel %vm3512_vm6, %v1593_v59, %v1598_v61  ;;  %v2302_v61 = vld [vmem:[#allocation2 + $0x118] sm:$0xf0]  ;;  %v2301_v32 = vor.u32 %v2368_v63, %v2300_v15 }
 0x326   : > { %1601 = vst [vmem:[#allocation2 + $0x138] sm:$0xcc] %v1599_v0  ;;  %v3330_v1 = vor.u32 %v2367_v16, %v2302_v61 }
 0x329   : > { %v1612_v2 = vpop.permute.xlu1 %1611  ;;  %v1610_v6 = vpop.permute.xlu0 %1609 }
 0x32a   : > { %v1614_v3 = vrot.slane %v1612_v2, 4  ;;  %v1613_v43 = vrot.slane %v1610_v6, 4  ;;  %v2292_v2 = vld [vmem:[#allocation2 + $0x100] sm:$0xf] }
 0x32c   : > { %v1615_v4 = vsel %vm219_vm2, %v1613_v43, %v1614_v3  ;;  %v2366_v3 = vld [vmem:[#allocation2 + $0x104] sm:$0xf0]  ;;  %v2294_v43 = vld [vmem:[#allocation2 + $0x108] sm:$0xf0] }
 0x32d   : > { %v1616_v42 = vsel %vm3513_vm7, %v1610_v6, %v1615_v4  ;;  %v2372_v28 = vld [vmem:[#allocation2 + $0x134] sm:$0xf0]  ;;  %v2318_v35 = vld [vmem:[#allocation2 + $0x138] sm:$0xf0]  ;;  %v2365_v6 = vld [vmem:[#allocation2 + $0x104] sm:$0xf] }
 0x32e   : > { %1618 = vst [vmem:[#allocation2 + $0x140] sm:$0x33] %v1616_v42  ;;  %v2317_v47 = vor.u32 %v2372_v28, %v2316_v40  ;;  %v3322_v48 = vor.u32 %v2371_v44, %v2318_v35  ;;  %v2160_v4 = vld [vmem:[#allocation6 + $0x8] sm:$0xf]  ;;  %v2332_v42 = vld [vmem:[#allocation6 + $0x10] sm:$0xf0] }
 0x32f   : > { %v2228_v40 = vld [vmem:[#allocation2 + $0x80] sm:$0xf]  ;;  %v2350_v44 = vld [vmem:[#allocation2 + $0x84] sm:$0xf0] }
 0x330   : > { %v2229_v51 = vor.u32 %v2350_v44, %v2228_v40 }
 0x331   : > { %v923_v9 = vpop.permute.xlu1 %922  ;;  %v921_v10 = vpop.permute.xlu0 %920 }
 0x332   : > { %v925_v11 = vrot.slane %v923_v9, 4  ;;  %v924_v12 = vrot.slane %v921_v10, 4 }
 0x334   : > { %v926_v14 = vsel %vm219_vm2, %v924_v12, %v925_v11  ;;  %v2293_v11 = vor.u32 %v2366_v3, %v2292_v2  ;;  %v2297_v12 = vor.u32 %v2365_v6, %v2294_v43 }
 0x335   : > { %v927_v17 = vsel %vm3514_vm10, %v921_v10, %v926_v14  ;;  %v1665_v5 = vld [vmem:[#allocation2 + $0x140] sm:$0x33]  ;;  %v889_v14 = vrot.slane %v886_v37, 4 }
 0x336   : > { %929 = vst [vmem:[#allocation2 + $0xa0] sm:$0x33] %v927_v17  ;;  %v1812_v62 = vunpack.c.l.b16 %v1665_v5  ;;  %v1813_v19 = vunpack.c.h.b16 %v1665_v5 }
 0x338   : > { %v1854_v21 = vpack.c.b16 %v1812_v62, %v1812_v62  ;;  %v1855_v22 = vpack.c.b16 %v1813_v19, %v1813_v19  ;;  %v2161_v62 = vor.u32 %v2332_v42, %v2160_v4 }
 0x339   : > { %v956_v26 = vpop.permute.xlu1 %955  ;;  %v941_v27 = vpop.permute.xlu0 %940 }
 0x33a   : > { %v959_v29 = vrot.slane %v956_v26, 4  ;;  %v943_v30 = vrot.slane %v941_v27, 4  ;;  %v1905_v31 = vsel %vm1903_vm11, %v1854_v21, 0  ;;  %v3315_v24 = vsel %vm1903_vm11, %v1855_v22, 0 }
 0x33b   : > { %1949 = vmatpush.bf16.msra.mxu2 %v1905_v31  ;;  %2003 = vmatpush.bf16.msrb.mxu0 %v3315_v24  ;;  %v2351_v31 = vld [vmem:[#allocation2 + $0x94] sm:$0xf] }
 0x33c   : > { %v961_v38 = vsel %vm219_vm2, %v959_v29, %v960_v36  ;;  %v944_v39 = vsel %vm219_vm2, %v942_v49, %v943_v30  ;;  %v2236_v29 = vld [vmem:[#allocation2 + $0x90] sm:$0xf] }
 0x33d   : > { %v962_v45 = vsel %vm3515_vm12, %v956_v26, %v961_v38  ;;  %v945_v46 = vsel %vm3516_vm13, %v939_v25, %v944_v39 }
 0x33e   : > { %964 = vst [vmem:[#allocation2 + $0xa8] sm:$0x33] %v962_v45  ;;  %v2349_v45 = vld [vmem:[#allocation2 + $0x84] sm:$0xf] }
 0x33f   : > { %947 = vst [vmem:[#allocation2 + $0xa0] sm:$0xcc] %v945_v46  ;;  %1950 = vmatpush.bf16.msra.mxu2 %v2317_v47  ;;  %2004 = vmatpush.bf16.msrb.mxu0 %v3322_v48  ;;  %v2230_v46 = vld [vmem:[#allocation2 + $0x88] sm:$0xf0]  ;;  %v2330_v47 = vld [vmem:[#allocation6 + $0x4] sm:$0xf] }
 0x340   : > { %v2233_v52 = vor.u32 %v2349_v45, %v2230_v46  ;;  %v2157_v33 = vor.u32 %v2330_v47, %v2154_v50 }
 0x341   : > { %v976_v55 = vpop.permute.xlu1 %975  ;;  %v974_v56 = vpop.permute.xlu0 %973 }
 0x342   : > { %v978_v59 = vrot.slane %v976_v55, 4  ;;  %v977_v60 = vrot.slane %v974_v56, 4 }
 0x343   : > { %1951 = vmatpush.bf16.msra.mxu2 %v2309_v57  ;;  %2005 = vmatpush.bf16.msrb.mxu0 %v3325_v58 }
 0x344   : > { %v979_v0 = vsel %vm219_vm2, %v977_v60, %v978_v59 }
 0x345   : > { %v980_v25 = vsel %vm3517_vm14, %v974_v56, %v979_v0 }
 0x346   : > { %982 = vst [vmem:[#allocation2 + $0xa8] sm:$0xcc] %v980_v25  ;;  %v2244_v36 = vld [vmem:[#allocation2 + $0xa0] sm:$0xf]  ;;  %v2353_v49 = vld [vmem:[#allocation2 + $0xa4] sm:$0xf] }
 0x347   : > { %1952 = vmatpush.bf16.msra.mxu2 %v2301_v32  ;;  %2006 = vmatpush.bf16.msrb.mxu0 %v3330_v1 }
 0x349   : > { %v904_v9 = vpop.permute.xlu1 %903  ;;  %v888_v10 = vpop.permute.xlu0 %887 }
 0x34a   : > { %v907_v17 = vrot.slane %v904_v9, 4  ;;  %v890_v5 = vrot.slane %v888_v10, 4 }
 0x34b   : > { %1953 = vmatpush.bf16.msra.mxu2 %v2293_v11  ;;  %2007 = vmatpush.bf16.msrb.mxu0 %v2297_v12 }
 0x34c   : > { %v909_v19 = vsel %vm219_vm2, %v907_v17, %v908_v8  ;;  %v891_v20 = vsel %vm219_vm2, %v889_v14, %v890_v5 }
 0x34d   : > { %v910_v21 = vsel %vm3518_vm5, %v904_v9, %v909_v19  ;;  %v892_v22 = vsel %vm3519_vm3, %v886_v37, %v891_v20  ;;  %v2354_v23 = vld [vmem:[#allocation2 + $0xa4] sm:$0xf0]  ;;  %v2246_v26 = vld [vmem:[#allocation2 + $0xa8] sm:$0xf0] }
 0x34e   : > { %912 = vst [vmem:[#allocation2 + $0x98] sm:$0xcc] %v910_v21  ;;  %2322 = vmatmul.msk.bf16.vlgmr.msra.gmra.mxu2 %vm1896_vm15, %v2161_v62  ;;  %v2245_v27 = vor.u32 %v2354_v23, %v2244_v36  ;;  %v2249_v28 = vor.u32 %v2353_v49, %v2246_v26  ;;  %2324 = vmatmul.msk.bf16.vlgmr.msrb.gmra.mxu0 %vm1896_vm15, %v2161_v62 }
 0x34f   : > { %1982 = vmatpush.bf16.msrb.mxu2 %v3237_v7  ;;  %894 = vst [vmem:[#allocation2 + $0x98] sm:$0x33] %v892_v22  ;;  %v1624_v7 = vld [vmem:[#allocation6 + $0x20] sm:$0xf] }
 0x350   : > { %1933 = vmatpush.bf16.msra.mxu1 %v2245_v27  ;;  %2378 = vmatpush.bf16.msrb.mxu3 %v2249_v28  ;;  %v1680_v37 = vunpack.c.l.b16 %v1624_v7 }
 0x353   : > { %1983 = vmatpush.bf16.msrb.mxu2 %v3242_v13  ;;  %v1679_v13 = vunpack.c.h.b16 %v3312_v18 }
 0x355   : > { %v1685_v55 = vpack.c.b16 %v1679_v13, %v1679_v13 }
 0x356   : > { %v2352_v30 = vld [vmem:[#allocation2 + $0x94] sm:$0xf0]  ;;  %v2238_v35 = vld [vmem:[#allocation2 + $0x98] sm:$0xf0] }
 0x357   : > { %1984 = vmatpush.bf16.msrb.mxu2 %v3249_v34  ;;  %v2237_v38 = vor.u32 %v2352_v30, %v2236_v29  ;;  %v2241_v39 = vor.u32 %v2351_v31, %v2238_v35  ;;  %v1686_v34 = vpack.c.b16 %v1680_v37, %v1680_v37 }
 0x359   : > { %1934 = vmatpush.bf16.msra.mxu1 %v2237_v38  ;;  %2379 = vmatpush.bf16.msrb.mxu3 %v2241_v39 }
 0x35b   : > { %1985 = vmatpush.bf16.msrb.mxu2 %v3256_v41  ;;  %v1973_v41 = vpop.f32.mrf.mxu3 }
 0x35d   : > { %1935 = vmatpush.bf16.msra.mxu1 %v2229_v51  ;;  %2380 = vmatpush.bf16.msrb.mxu3 %v2233_v52 }
 0x35e   : > { %2323 = vmatmul.msk.bf16.gmra.mxu2 %vm1896_vm15, %v1686_v34 }
 0x35f   : > { %1986 = vmatpush.bf16.msrb.mxu2 %v3261_v54  ;;  %v1919_v54 = vpop.f32.mrf.mxu0 }
 0x360   : > { %1936 = vmatmul.bf16.vlgmr.msra.gmra.mxu1 %v2157_v33  ;;  %1995 = vmatmul.bf16.vlgmr.msrb.gmra.mxu3 %v1685_v55 }
 0x361   : > { %2381 = vmatpush.bf16.msrb.mxu1 %v3315_v24 }
 0x363   : > { %1987 = vmatpush.bf16.msrb.mxu2 %v2249_v28  ;;  %v1975_v18 = vpop.f32.mrf.mxu3 }
 0x365   : > { %2382 = vmatpush.bf16.msrb.mxu1 %v3322_v48 }
 0x367   : > { %1988 = vmatpush.bf16.msrb.mxu2 %v2241_v39  ;;  %v1921_v24 = vpop.f32.mrf.mxu0 }
 0x369   : > { %2383 = vmatpush.bf16.msrb.mxu1 %v3325_v58 }
 0x36b   : > { %1989 = vmatpush.bf16.msrb.mxu2 %v2233_v52 }
 0x36d   : > { %2384 = vmatpush.bf16.msrb.mxu1 %v3330_v1 }
 0x36e   : > { %1990 = vmatmul.bf16.vlgmr.msrb.gmra.mxu2 %v2157_v33 }
 0x370   : > { %1941 = vmatmul.bf16.gmra.mxu1 %v1685_v55 }
 0x371   : > { %2385 = vmatpush.bf16.msrb.mxu1 %v2297_v12 }
 0x37b   : > { %v1924_v57 = vpop.f32.mrf.mxu0 }
 0x380   : > { %2325 = vmatmul.msk.bf16.vlgmr.msrb.gmra.mxu1 %vm1896_vm15, %v1686_v34 }
 0x381   : > { %v1978_v56 = vpop.f32.mrf.mxu3 }
 0x383   : > { %v1926_v48 = vpop.f32.mrf.mxu0 }
 0x389   : > { %v1980_v15 = vpop.f32.mrf.mxu3 }
 0x3cb   : > { %v2009_v4 = vpop.f32.mrf.mxu0 }
 0x3d1   : > { %v1955_v16 = vpop.f32.mrf.mxu2 }
 0x3d3   : > { %v2011_v14 = vpop.f32.mrf.mxu0 }
 0x3d9   : > { %v1957_v59 = vpop.f32.mrf.mxu2 }
 0x3dd   : > { %v1937_v58 = vpop.f32.mrf.mxu1 }
 0x3de   : > { %v1938_v60 = vadd.f32 %v1937_v58, %v1919_v54 }
 0x3e0   : > { %v1956_v63 = vadd.f32 %v1955_v16, %v1938_v60 }
 0x3e1   : > { %v1960_v61 = vpop.f32.mrf.mxu2 }
 0x3e2   : > { %2018 = vst [vmem:[%s3352_s23] sm:$0xff] %v1956_v63 }
 0x3e3   : > { %v1996_v0 = vpop.f32.mrf.mxu3 }
 0x3e4   : > { %v1997_v17 = vadd.f32 %v1996_v0, %v1978_v56 }
 0x3e5   : > { %v1939_v25 = vpop.f32.mrf.mxu1 }
 0x3e6   : > { %v1940_v32 = vadd.f32 %v1939_v25, %v1921_v24 }
 0x3e8   : > { %v1958_v1 = vadd.f32 %v1957_v59, %v1940_v32 }
 0x3e9   : > { %v1962_v53 = vpop.f32.mrf.mxu2 }
 0x3ea   : > { %2020 = vst [vmem:[%s3352_s23 + $0x10] sm:$0xff] %v1958_v1 }
 0x3eb   : > { %v1998_v2 = vpop.f32.mrf.mxu3 }
 0x3ed   : > { %v1942_v6 = vpop.f32.mrf.mxu1 }
 0x3ee   : > { %v1943_v3 = vadd.f32 %v1942_v6, %v1924_v57 }
 0x3f0   : > { %v1961_v43 = vadd.f32 %v1960_v61, %v1943_v3 }
 0x3f1   : > { %v1991_v42 = vpop.f32.mrf.mxu2 }
 0x3f2   : > { %2022 = vst [vmem:[%s3352_s23 + $0x20] sm:$0xff] %v1961_v43  ;;  %v1992_v8 = vadd.f32 %v1991_v42, %v1973_v41 }
 0x3f4   : > { %v2010_v9 = vadd.f32 %v2009_v4, %v1992_v8 }
 0x3f5   : > { %v1944_v10 = vpop.f32.mrf.mxu1 }
 0x3f6   : > { %2019 = vst [vmem:[%s3352_s23 + $0x8] sm:$0xff] %v2010_v9 }
 0x3f9   : > { %v1993_v11 = vpop.f32.mrf.mxu2 }
 0x3fa   : > { %v1994_v12 = vadd.f32 %v1993_v11, %v1975_v18 }
 0x3fc   : > { %v2012_v5 = vadd.f32 %v2011_v14, %v1994_v12 }
 0x3fd   : > { %v2014_v62 = vpop.f32.mrf.mxu1 }
 0x3fe   : > { %2021 = vst [vmem:[%s3352_s23 + $0x18] sm:$0xff] %v2012_v5  ;;  %v2015_v19 = vadd.f32 %v2014_v62, %v1997_v17 }
 0x400   : > { %2023 = vst [vmem:[%s3352_s23 + $0x28] sm:$0xff] %v2015_v19 }
 0x401   : > { %2608 = shalt.err (!%p2605_p12)
}
 0x402   : > { %s2723_s30 = smov 256   ;;  %s2724_s21 = smov 512  }
 0x403   : > { %s2725_s23 = smov 16  }
 0x404   : > { %2398 = dma.vmem_to_hbm [thread:$0]  (%p2824_p0), %s2040_s13, 768, %s2042_s12, %s2025_s19, %s2723_s30, %s2724_s21, %s2725_s23  }
 0x405   : > { %v2016_v20 = vpop.f32.mrf.mxu1 }
 0x406 PF: > { %p2415_p13 = scmp.ge.s32.totalorder %s2683_s16, 2  ;;  %s2056_s24 = sand.u32 1, %s2655_s9  }
 0x407   : > { %s2057_s25 = scalar_lea.sflag [#allocation5], %s2056_s24 }
 0x408   : > { %p2409_p4 = pnand %p2415_p13, %p2830_p2 }
 0x40a   : > { %p2410_p5 = pneg %p2409_p4 }
 0x40c   : > { %2650 = dma.done.wait (%p2410_p5), %s2057_s25, 768  }
 0x40d   : > { %2652 = vsyncadd (%p2410_p5), %s2057_s25, 4294966528  ;;  %s19_s16 = sadd.s32 1, %s2683_s16   ;;  %s3520_s5 = sld [smem:[#allocation12_spill]] }
 0x40e   : > { %p16_p6 = scmp.ge.s32.totalorder %s19_s16, 6   ;;  %s3521_s26 = sld [smem:[#allocation13_spill]] }
 0x40f   : > { %s3522_s9 = smov %s2659_s10  ;;  %s3523_s10 = smov %s2663_s11 }
 0x410   : > { %s3524_s11 = smov %s2840_s20  ;;  %s3525_s12 = smov %s2675_s14 }
 0x411   : > { %s3526_s13 = smov %s2679_s15  ;;  %18 = sbr.rel (!%p16_p6) target bundleno = 10 (0xa), region = 117 }
 0x413   : > { %s3527_s14 = smov %s3520_s5 }
 0x414   : > { %s3528_s15 = smov %s3521_s26 }
 0x416   :  { %2063 = vsyncpa [#allocation4], 1 }
 0x417   :  { %2065 = vsyncpa [#allocation4 + $0x1], 1 }
 0x418   :  { %2066 = vsyncpa [#allocation7], 1 }
 0x419   :  { %2067 = vsyncpa [#allocation5], 1 }
 0x41a   :  { %2069 = vsyncpa [#allocation5 + $0x1], 1 }

</bundles_post_ra>
